<compile_context>
chip_gen: v7x
topology: tpu7x:2x2x1
jax: 0.10.0
libtpu: 0.0.40
codegen_flags: <defaults>
</compile_context>

<pallas_src>
import functools

import jax
import jax.numpy as jnp
from jax.experimental import pallas as pl
from jax.experimental.pallas import tpu as pltpu


# ---------------------------------------------------------------------------
# tile-size pickers (static Python; budgets are conservative for v7x's 64 MiB
# VMEM with double-buffered blocks)
# ---------------------------------------------------------------------------
def _pick_row_tile(H, W, Cin, Cout, budget=8 << 20):
    """Largest row tile TH that divides H, keeps the output block's sublane dim a
    multiple of 8, and keeps the per-step working set small.  Prefer >= 2 row
    tiles so a second TensorCore gets work even at N == 1."""
    divs = [d for d in range(H, 0, -1) if H % d == 0]
    cands = [d for d in divs if (d * W) % 8 == 0] or [H]
    if len(cands) > 1 and cands[0] == H:
        cands = cands[1:] + [H]          # full-image tile only as a last resort
    Wp = W + 2
    for th in cands:
        need = 4 * ((th + 2) * Wp * Cin          # assembled padded tile scratch
                    + th * W * 9 * Cin            # im2col slab scratch
                    + 2 * (th + 2) * Wp * Cin     # double-buffered input blocks
                    + 2 * (th * W + 2) * Cout)    # double-buffered output blocks
        if need <= budget:
            return th
    return cands[-1]


def _pick_flat_rows(R, L, budget=4 << 20):
    """Row-tile for the lane-dense elementwise kernel on an (R, L) view."""
    max_rows = max(1, budget // (4 * L))
    if R <= max_rows:
        return R
    for tb in range(min(R, max_rows), 0, -1):
        if R % tb == 0 and tb % 8 == 0:
            return tb
    return R                              # fallback: single block (always valid)


# ---------------------------------------------------------------------------
# Kernel 1: fused [optional BN-affine + ReLU on the input] -> 3x3 "same" conv
#           -> partial BN statistics, for one (image, row-tile) grid step.
# ---------------------------------------------------------------------------
def _conv_stage_kernel(xm_ref, xt_ref, xb_ref, w_ref, s_ref, b_ref,
                       y_ref, ssum_ref, ssq_ref, xs_ref, slab_ref,
                       *, TH, H, W, Cin, input_act):
    # xm_ref  : (1, TH, W+2, Cin)  padded-input rows [t*TH, t*TH+TH)
    # xt_ref  : (1, 1,  W+2, Cin)  padded-input row   t*TH+TH       (halo)
    # xb_ref  : (1, 1,  W+2, Cin)  padded-input row   t*TH+TH+1     (halo)
    # w_ref   : (9*Cin, Cout)      weights, rows ordered (ky, kx, ci)
    # s_ref, b_ref : (1, 1, Cin)   folded BN scale / bias of the previous stage
    # y_ref   : (1, TH*W, Cout)    conv output (spatially flattened)
    # ssum_ref, ssq_ref : (1, 1, 1, Cout)  per-tile partial BN statistics
    # xs_ref  : (TH+2, W+2, Cin)   VMEM scratch: assembled (activated) padded tile
    # slab_ref: (TH*W, 9*Cin)      VMEM scratch: im2col slab
    t = pl.program_id(1)
    Wp = W + 2

    # assemble the haloed, padded input tile in VMEM
    xs_ref[0:TH] = xm_ref[0]
    xs_ref[TH:TH + 1] = xt_ref[0]
    xs_ref[TH + 1:TH + 2] = xb_ref[0]

    if input_act:
        # Fuse the previous stage's BN-affine + ReLU into this conv's input path.
        # The spatial zero padding must stay zero, so mask the border back to 0.
        row = t * TH + jax.lax.broadcasted_iota(jnp.int32, (TH + 2, Wp, 1), 0)
        col = jax.lax.broadcasted_iota(jnp.int32, (TH + 2, Wp, 1), 1)
        interior = (row >= 1) & (row <= H) & (col >= 1) & (col <= W)
        act = jnp.maximum(xs_ref[...] * s_ref[...] + b_ref[...], 0.0)
        xs_ref[...] = jnp.where(interior, act, 0.0)

    # im2col slab (built once per tile) + a single MXU matmul with K = 9*Cin.
    x = xs_ref[...]
    for ky in range(3):
        for kx in range(3):
            k = ky * 3 + kx
            slab_ref[:, k * Cin:(k + 1) * Cin] = (
                x[ky:ky + TH, kx:kx + W, :].reshape(TH * W, Cin))
    acc = jnp.dot(slab_ref[...], w_ref[...],
                  preferred_element_type=jnp.float32)          # (TH*W, Cout)
    # TODO(synk): cast slab/weights to bf16 on v6e/v7x once accuracy budget allows.

    y_ref[0] = acc
    # per-tile partial BN statistics; the tiny cross-tile reduce happens in JAX
    ssum_ref[0, 0] = jnp.sum(acc, axis=0, keepdims=True)
    ssq_ref[0, 0] = jnp.sum(acc * acc, axis=0, keepdims=True)


def _conv_stage(xp, w_mat, in_scale, in_bias, *, H, W, TH, input_act):
    """xp: (N, H+2, W+2, Cin) zero-padded NHWC input.  Returns
    y: (N, H*W, Cout), ssum/ssq: (N, HT, 1, Cout) partial BN stats."""
    N, _, Wp, Cin = xp.shape
    Cout = w_mat.shape[1]
    HT = H // TH
    kern = functools.partial(_conv_stage_kernel, TH=TH, H=H, W=W, Cin=Cin,
                             input_act=input_act)
    return pl.pallas_call(
        kern,
        out_shape=(
            jax.ShapeDtypeStruct((N, H * W, Cout), jnp.float32),
            jax.ShapeDtypeStruct((N, HT, 1, Cout), jnp.float32),
            jax.ShapeDtypeStruct((N, HT, 1, Cout), jnp.float32),
        ),
        grid=(N, HT),
        in_specs=[
            pl.BlockSpec((1, TH, Wp, Cin), lambda n, t: (n, t, 0, 0)),
            pl.BlockSpec((1, 1, Wp, Cin), lambda n, t: (n, (t + 1) * TH, 0, 0)),
            pl.BlockSpec((1, 1, Wp, Cin), lambda n, t: (n, (t + 1) * TH + 1, 0, 0)),
            pl.BlockSpec((9 * Cin, Cout), lambda n, t: (0, 0)),
            pl.BlockSpec((1, 1, Cin), lambda n, t: (0, 0, 0)),
            pl.BlockSpec((1, 1, Cin), lambda n, t: (0, 0, 0)),
        ],
        out_specs=(
            pl.BlockSpec((1, TH * W, Cout), lambda n, t: (n, t, 0)),
            pl.BlockSpec((1, 1, 1, Cout), lambda n, t: (n, t, 0, 0)),
            pl.BlockSpec((1, 1, 1, Cout), lambda n, t: (n, t, 0, 0)),
        ),
        scratch_shapes=[
            pltpu.VMEM((TH + 2, Wp, Cin), jnp.float32),
            pltpu.VMEM((TH * W, 9 * Cin), jnp.float32),
        ],
        compiler_params=pltpu.CompilerParams(
            dimension_semantics=("parallel", "parallel")),
    )(xp, xp, xp, w_mat, in_scale, in_bias)


# ---------------------------------------------------------------------------
# Kernel 2: final BN-affine + ReLU, lane-dense on a (N*H, W*Cout) view.
# ---------------------------------------------------------------------------
def _affine_relu_kernel(y_ref, s_ref, b_ref, o_ref):
    o_ref[...] = jnp.maximum(y_ref[...] * s_ref[...] + b_ref[...], 0.0)


def _affine_relu_lane_dense(y2, scale, bias, *, N, H, W, Cout):
    L = W * Cout
    yl = y2.reshape(N * H, L)                        # free: same memory order
    s = jnp.tile(scale, (W,)).reshape(1, L)          # per-(w, c) scale pattern
    b = jnp.tile(bias, (W,)).reshape(1, L)
    R = N * H
    TB = _pick_flat_rows(R, L)
    out = pl.pallas_call(
        _affine_relu_kernel,
        out_shape=jax.ShapeDtypeStruct((R, L), jnp.float32),
        grid=(R // TB,),
        in_specs=[pl.BlockSpec((TB, L), lambda r: (r, 0)),
                  pl.BlockSpec((1, L), lambda r: (0, 0)),
                  pl.BlockSpec((1, L), lambda r: (0, 0))],
        out_specs=pl.BlockSpec((TB, L), lambda r: (r, 0)),
        compiler_params=pltpu.CompilerParams(dimension_semantics=("parallel",)),
    )(yl, s, b)
    return out.reshape(N, H, W, Cout)


# ---------------------------------------------------------------------------
# BatchNorm (training mode) parameter folding from the in-kernel partial stats.
# ---------------------------------------------------------------------------
def _finish_bn(ssum, ssq, count, gamma, beta, eps):
    s = jnp.sum(ssum, axis=(0, 1, 2))
    ss = jnp.sum(ssq, axis=(0, 1, 2))
    mean = s / count
    var = jnp.maximum(ss / count - mean * mean, 0.0)     # biased batch variance
    scale = gamma * jax.lax.rsqrt(var + eps)
    bias = beta - mean * scale
    return scale, bias


# ---------------------------------------------------------------------------
# DoubleConv forward: (conv3x3 -> BN(train) -> ReLU) x 2, NCHW in / NCHW out.
# ---------------------------------------------------------------------------
@jax.jit
def double_conv(x_nchw, params):
    eps = 1e-5
    N, Cin, H, W = x_nchw.shape
    Cout = params["w1"].shape[-1]
    count = N * H * W

    x = jnp.transpose(x_nchw, (0, 2, 3, 1))                       # NCHW -> NHWC
    xp = jnp.pad(x, ((0, 0), (1, 1), (1, 1), (0, 0)))
    # TODO(synk): fold the spatial zero-pad of the stage-2 input into the stage-1
    # kernel (write y1 pre-padded) to save one more HBM round trip of y1.

    w1 = params["w1"].reshape(9 * Cin, Cout)
    w2 = params["w2"].reshape(9 * Cout, Cout)

    # ---- stage 1: conv1 (+ BN1 partial statistics) ----
    th1 = _pick_row_tile(H, W, Cin, Cout)
    one = jnp.ones((1, 1, Cin), jnp.float32)
    zero = jnp.zeros((1, 1, Cin), jnp.float32)
    y1, s1, q1 = _conv_stage(xp, w1, one, zero, H=H, W=W, TH=th1, input_act=False)
    scale1, bias1 = _finish_bn(s1, q1, count, params["g1"], params["be1"], eps)

    # ---- stage 2: BN1 + ReLU fused into conv2's input (+ BN2 partial stats) ----
    th2 = _pick_row_tile(H, W, Cout, Cout)
    y1p = jnp.pad(y1.reshape(N, H, W, Cout), ((0, 0), (1, 1), (1, 1), (0, 0)))
    y2, s2, q2 = _conv_stage(y1p, w2, scale1.reshape(1, 1, Cout),
                             bias1.reshape(1, 1, Cout), H=H, W=W, TH=th2,
                             input_act=True)
    scale2, bias2 = _finish_bn(s2, q2, count, params["g2"], params["be2"], eps)

    # ---- final BN2-affine + ReLU (lane-dense elementwise) ----
    out = _affine_relu_lane_dense(y2, scale2, bias2, N=N, H=H, W=W, Cout=Cout)
    return jnp.transpose(out, (0, 3, 1, 2))                       # NHWC -> NCHW


# ---------------------------------------------------------------------------
# Pure-JAX reference mirroring the PyTorch module exactly (including the conv
# biases, which training-mode BN cancels — the assert also validates that).
# ---------------------------------------------------------------------------
def ref_double_conv(x_nchw, params, eps=1e-5):
    def stage(x, w, b, g, be):
        y = jax.lax.conv_general_dilated(
            x, w, window_strides=(1, 1), padding="SAME",
            dimension_numbers=("NHWC", "HWIO", "NHWC")) + b
        mean = jnp.mean(y, axis=(0, 1, 2))
        var = jnp.mean(jnp.square(y - mean), axis=(0, 1, 2))
        y = (y - mean) * jax.lax.rsqrt(var + eps) * g + be
        return jnp.maximum(y, 0.0)

    x = jnp.transpose(x_nchw, (0, 2, 3, 1))
    h = stage(x, params["w1"], params["b1"], params["g1"], params["be1"])
    h = stage(h, params["w2"], params["b2"], params["g2"], params["be2"])
    return jnp.transpose(h, (0, 3, 1, 2))


def init_params(key, in_channels, out_channels):
    k1, k2, k3, k4 = jax.random.split(key, 4)
    w1 = 0.1 * jax.random.normal(k1, (out_channels, in_channels, 3, 3), jnp.float32)
    w2 = 0.1 * jax.random.normal(k2, (out_channels, out_channels, 3, 3), jnp.float32)
    return {
        "w1": jnp.transpose(w1, (2, 3, 1, 0)),   # (Cout,Cin,3,3) -> HWIO (3,3,Cin,Cout)
        "w2": jnp.transpose(w2, (2, 3, 1, 0)),
        # Conv biases are kept only for the reference: a per-channel pre-BN bias is
        # exactly cancelled by training-mode BN's mean subtraction, so the Pallas
        # path skips the add (same reason PyTorch uses bias=False before BN).
        "b1": 0.1 * jax.random.normal(k3, (out_channels,), jnp.float32),
        "b2": 0.1 * jax.random.normal(k4, (out_channels,), jnp.float32),
        "g1": jnp.ones((out_channels,), jnp.float32),
        "be1": jnp.zeros((out_channels,), jnp.float32),
        "g2": jnp.ones((out_channels,), jnp.float32),
        "be2": jnp.zeros((out_channels,), jnp.float32),
    }


if __name__ == "__main__":
    key = jax.random.PRNGKey(0)
    kx, kp = jax.random.split(key)

    N, Cin, Cout, H, W = 2, 4, 8, 16, 16
    x = jax.random.normal(kx, (N, Cin, H, W), jnp.float32)      # NCHW like PyTorch
    params = init_params(kp, Cin, Cout)

    out = jax.block_until_ready(double_conv(x, params))
    ref = ref_double_conv(x, params)

    assert out.shape == (N, Cout, H, W), out.shape
    max_err = float(jnp.max(jnp.abs(out - ref)))
    assert jnp.allclose(out, ref, atol=2e-3, rtol=2e-3), max_err

    print("KERNEL_OK")
</pallas_src>

<mosaic_0001>
module attributes {stable_mosaic.version = 11 : i64} {
  func.func @_conv_stage_kernel(%arg0: i32, %arg1: i32, %arg2: memref<1x8x18x4xf32, #tpu.memory_space<vmem>>, %arg3: memref<1x1x18x4xf32, #tpu.memory_space<vmem>>, %arg4: memref<1x1x18x4xf32, #tpu.memory_space<vmem>>, %arg5: memref<36x8xf32, #tpu.memory_space<vmem>>, %arg6: memref<1x1x4xf32, #tpu.memory_space<vmem>>, %arg7: memref<1x1x4xf32, #tpu.memory_space<vmem>>, %arg8: memref<1x128x8xf32, #tpu.memory_space<vmem>>, %arg9: memref<1x1x1x8xf32, #tpu.memory_space<vmem>>, %arg10: memref<1x1x1x8xf32, #tpu.memory_space<vmem>>, %arg11: memref<10x18x4xf32, #tpu.memory_space<vmem>>, %arg12: memref<128x36xf32, #tpu.memory_space<vmem>>) attributes {dimension_semantics = [#tpu.dimension_semantics<parallel>, #tpu.dimension_semantics<parallel>], iteration_bounds = array<i64: 2, 2>, scalar_prefetch = 0 : i64, scratch_operands = 2 : i64, tpu.core_type = #tpu.core_type<tc>, window_params = [{transform_indices = @transform_0, window_bounds = array<i64: 1, 8, 18, 4>}, {transform_indices = @transform_1, window_bounds = array<i64: 1, 1, 18, 4>}, {transform_indices = @transform_2, window_bounds = array<i64: 1, 1, 18, 4>}, {pipeline_mode = #tpu.pipeline_mode<synchronous>, transform_indices = @transform_3, window_bounds = array<i64: 36, 8>}, {pipeline_mode = #tpu.pipeline_mode<synchronous>, transform_indices = @transform_4, window_bounds = array<i64: 1, 1, 4>}, {pipeline_mode = #tpu.pipeline_mode<synchronous>, transform_indices = @transform_5, window_bounds = array<i64: 1, 1, 4>}, {transform_indices = @transform_6, window_bounds = array<i64: 1, 128, 8>}, {transform_indices = @transform_7, window_bounds = array<i64: 1, 1, 1, 8>}, {transform_indices = @transform_8, window_bounds = array<i64: 1, 1, 1, 8>}]} {
    %c0 = arith.constant 0 : index
    %c0_0 = arith.constant 0 : index
    %c0_1 = arith.constant 0 : index
    %c0_2 = arith.constant 0 : index
    %0 = vector.load %arg2[%c0, %c0_0, %c0_1, %c0_2] : memref<1x8x18x4xf32, #tpu.memory_space<vmem>>, vector<1x8x18x4xf32>
    %1 = vector.shape_cast %0 : vector<1x8x18x4xf32> to vector<8x18x4xf32>
    %c0_3 = arith.constant 0 : index
    %c0_4 = arith.constant 0 : index
    %c0_5 = arith.constant 0 : index
    %2 = vector.load %arg11[%c0_3, %c0_4, %c0_5] : memref<10x18x4xf32, #tpu.memory_space<vmem>>, vector<8x18x4xf32>
    tpu.vector_store %arg11[%c0_3, %c0_4, %c0_5], %1 {strides = array<i32>} : memref<10x18x4xf32, #tpu.memory_space<vmem>>, vector<8x18x4xf32>,
    %c0_6 = arith.constant 0 : index
    %c0_7 = arith.constant 0 : index
    %c0_8 = arith.constant 0 : index
    %c0_9 = arith.constant 0 : index
    %3 = vector.load %arg3[%c0_6, %c0_7, %c0_8, %c0_9] : memref<1x1x18x4xf32, #tpu.memory_space<vmem>>, vector<1x1x18x4xf32>
    %4 = vector.shape_cast %3 : vector<1x1x18x4xf32> to vector<1x18x4xf32>
    %c8 = arith.constant 8 : index
    %c0_10 = arith.constant 0 : index
    %c0_11 = arith.constant 0 : index
    %5 = vector.load %arg11[%c8, %c0_10, %c0_11] : memref<10x18x4xf32, #tpu.memory_space<vmem>>, vector<1x18x4xf32>
    tpu.vector_store %arg11[%c8, %c0_10, %c0_11], %4 {strides = array<i32>} : memref<10x18x4xf32, #tpu.memory_space<vmem>>, vector<1x18x4xf32>,
    %c0_12 = arith.constant 0 : index
    %c0_13 = arith.constant 0 : index
    %c0_14 = arith.constant 0 : index
    %c0_15 = arith.constant 0 : index
    %6 = vector.load %arg4[%c0_12, %c0_13, %c0_14, %c0_15] : memref<1x1x18x4xf32, #tpu.memory_space<vmem>>, vector<1x1x18x4xf32>
    %7 = vector.shape_cast %6 : vector<1x1x18x4xf32> to vector<1x18x4xf32>
    %c9 = arith.constant 9 : index
    %c0_16 = arith.constant 0 : index
    %c0_17 = arith.constant 0 : index
    %8 = vector.load %arg11[%c9, %c0_16, %c0_17] : memref<10x18x4xf32, #tpu.memory_space<vmem>>, vector<1x18x4xf32>
    tpu.vector_store %arg11[%c9, %c0_16, %c0_17], %7 {strides = array<i32>} : memref<10x18x4xf32, #tpu.memory_space<vmem>>, vector<1x18x4xf32>,
    %c0_18 = arith.constant 0 : index
    %c0_19 = arith.constant 0 : index
    %c0_20 = arith.constant 0 : index
    %9 = vector.load %arg11[%c0_18, %c0_19, %c0_20] : memref<10x18x4xf32, #tpu.memory_space<vmem>>, vector<10x18x4xf32>
    %10 = vector.extract_strided_slice %9 {offsets = [0, 0, 0], sizes = [8, 16, 4], strides = [1, 1, 1]} : vector<10x18x4xf32> to vector<8x16x4xf32>
    %11 = vector.shape_cast %10 : vector<8x16x4xf32> to vector<128x4xf32>
    %c0_21 = arith.constant 0 : index
    %c0_22 = arith.constant 0 : index
    %12 = vector.load %arg12[%c0_21, %c0_22] : memref<128x36xf32, #tpu.memory_space<vmem>>, vector<128x4xf32>
    tpu.vector_store %arg12[%c0_21, %c0_22], %11 {strides = array<i32>} : memref<128x36xf32, #tpu.memory_space<vmem>>, vector<128x4xf32>,
    %13 = vector.extract_strided_slice %9 {offsets = [0, 1, 0], sizes = [8, 16, 4], strides = [1, 1, 1]} : vector<10x18x4xf32> to vector<8x16x4xf32>
    %14 = vector.shape_cast %13 : vector<8x16x4xf32> to vector<128x4xf32>
    %c0_23 = arith.constant 0 : index
    %c4 = arith.constant 4 : index
    %15 = vector.load %arg12[%c0_23, %c4] : memref<128x36xf32, #tpu.memory_space<vmem>>, vector<128x4xf32>
    tpu.vector_store %arg12[%c0_23, %c4], %14 {strides = array<i32>} : memref<128x36xf32, #tpu.memory_space<vmem>>, vector<128x4xf32>,
    %16 = vector.extract_strided_slice %9 {offsets = [0, 2, 0], sizes = [8, 16, 4], strides = [1, 1, 1]} : vector<10x18x4xf32> to vector<8x16x4xf32>
    %17 = vector.shape_cast %16 : vector<8x16x4xf32> to vector<128x4xf32>
    %c0_24 = arith.constant 0 : index
    %c8_25 = arith.constant 8 : index
    %18 = vector.load %arg12[%c0_24, %c8_25] : memref<128x36xf32, #tpu.memory_space<vmem>>, vector<128x4xf32>
    tpu.vector_store %arg12[%c0_24, %c8_25], %17 {strides = array<i32>} : memref<128x36xf32, #tpu.memory_space<vmem>>, vector<128x4xf32>,
    %19 = vector.extract_strided_slice %9 {offsets = [1, 0, 0], sizes = [8, 16, 4], strides = [1, 1, 1]} : vector<10x18x4xf32> to vector<8x16x4xf32>
    %20 = vector.shape_cast %19 : vector<8x16x4xf32> to vector<128x4xf32>
    %c0_26 = arith.constant 0 : index
    %c12 = arith.constant 12 : index
    %21 = vector.load %arg12[%c0_26, %c12] : memref<128x36xf32, #tpu.memory_space<vmem>>, vector<128x4xf32>
    tpu.vector_store %arg12[%c0_26, %c12], %20 {strides = array<i32>} : memref<128x36xf32, #tpu.memory_space<vmem>>, vector<128x4xf32>,
    %22 = vector.extract_strided_slice %9 {offsets = [1, 1, 0], sizes = [8, 16, 4], strides = [1, 1, 1]} : vector<10x18x4xf32> to vector<8x16x4xf32>
    %23 = vector.shape_cast %22 : vector<8x16x4xf32> to vector<128x4xf32>
    %c0_27 = arith.constant 0 : index
    %c16 = arith.constant 16 : index
    %24 = vector.load %arg12[%c0_27, %c16] : memref<128x36xf32, #tpu.memory_space<vmem>>, vector<128x4xf32>
    tpu.vector_store %arg12[%c0_27, %c16], %23 {strides = array<i32>} : memref<128x36xf32, #tpu.memory_space<vmem>>, vector<128x4xf32>,
    %25 = vector.extract_strided_slice %9 {offsets = [1, 2, 0], sizes = [8, 16, 4], strides = [1, 1, 1]} : vector<10x18x4xf32> to vector<8x16x4xf32>
    %26 = vector.shape_cast %25 : vector<8x16x4xf32> to vector<128x4xf32>
    %c0_28 = arith.constant 0 : index
    %c20 = arith.constant 20 : index
    %27 = vector.load %arg12[%c0_28, %c20] : memref<128x36xf32, #tpu.memory_space<vmem>>, vector<128x4xf32>
    tpu.vector_store %arg12[%c0_28, %c20], %26 {strides = array<i32>} : memref<128x36xf32, #tpu.memory_space<vmem>>, vector<128x4xf32>,
    %28 = vector.extract_strided_slice %9 {offsets = [2, 0, 0], sizes = [8, 16, 4], strides = [1, 1, 1]} : vector<10x18x4xf32> to vector<8x16x4xf32>
    %29 = vector.shape_cast %28 : vector<8x16x4xf32> to vector<128x4xf32>
    %c0_29 = arith.constant 0 : index
    %c24 = arith.constant 24 : index
    %30 = vector.load %arg12[%c0_29, %c24] : memref<128x36xf32, #tpu.memory_space<vmem>>, vector<128x4xf32>
    tpu.vector_store %arg12[%c0_29, %c24], %29 {strides = array<i32>} : memref<128x36xf32, #tpu.memory_space<vmem>>, vector<128x4xf32>,
    %31 = vector.extract_strided_slice %9 {offsets = [2, 1, 0], sizes = [8, 16, 4], strides = [1, 1, 1]} : vector<10x18x4xf32> to vector<8x16x4xf32>
    %32 = vector.shape_cast %31 : vector<8x16x4xf32> to vector<128x4xf32>
    %c0_30 = arith.constant 0 : index
    %c28 = arith.constant 28 : index
    %33 = vector.load %arg12[%c0_30, %c28] : memref<128x36xf32, #tpu.memory_space<vmem>>, vector<128x4xf32>
    tpu.vector_store %arg12[%c0_30, %c28], %32 {strides = array<i32>} : memref<128x36xf32, #tpu.memory_space<vmem>>, vector<128x4xf32>,
    %34 = vector.extract_strided_slice %9 {offsets = [2, 2, 0], sizes = [8, 16, 4], strides = [1, 1, 1]} : vector<10x18x4xf32> to vector<8x16x4xf32>
    %35 = vector.shape_cast %34 : vector<8x16x4xf32> to vector<128x4xf32>
    %c0_31 = arith.constant 0 : index
    %c32 = arith.constant 32 : index
    %36 = vector.load %arg12[%c0_31, %c32] : memref<128x36xf32, #tpu.memory_space<vmem>>, vector<128x4xf32>
    tpu.vector_store %arg12[%c0_31, %c32], %35 {strides = array<i32>} : memref<128x36xf32, #tpu.memory_space<vmem>>, vector<128x4xf32>,
    %c0_32 = arith.constant 0 : index
    %c0_33 = arith.constant 0 : index
    %37 = vector.load %arg12[%c0_32, %c0_33] : memref<128x36xf32, #tpu.memory_space<vmem>>, vector<128x36xf32>
    %c0_34 = arith.constant 0 : index
    %c0_35 = arith.constant 0 : index
    %38 = vector.load %arg5[%c0_34, %c0_35] : memref<36x8xf32, #tpu.memory_space<vmem>>, vector<36x8xf32>
    %cst = arith.constant dense<0.000000e+00> : vector<128x8xf32>
    %39 = tpu.matmul %37, %38, %cst {dimension_numbers = #tpu.dot_dimension_numbers<[1], [0], [0], [1], [0, 0, 1, 1], [], []>} : vector<128x36xf32>, vector<36x8xf32>, vector<128x8xf32> -> vector<128x8xf32>
    %c0_36 = arith.constant 0 : index
    %c0_37 = arith.constant 0 : index
    %c0_38 = arith.constant 0 : index
    %40 = vector.load %arg8[%c0_36, %c0_37, %c0_38] : memref<1x128x8xf32, #tpu.memory_space<vmem>>, vector<1x128x8xf32>
    %41 = vector.shape_cast %40 : vector<1x128x8xf32> to vector<128x8xf32>
    %42 = vector.shape_cast %39 : vector<128x8xf32> to vector<1x128x8xf32>
    tpu.vector_store %arg8[%c0_36, %c0_37, %c0_38], %42 {strides = array<i32>} : memref<1x128x8xf32, #tpu.memory_space<vmem>>, vector<1x128x8xf32>,
    %cst_39 = arith.constant dense<0.000000e+00> : vector<8xf32>
    %43 = vector.multi_reduction <add>, %39, %cst_39 [0] : vector<128x8xf32> to vector<8xf32>
    %44 = vector.shape_cast %43 : vector<8xf32> to vector<1x8xf32>
    %c0_40 = arith.constant 0 : index
    %c0_41 = arith.constant 0 : index
    %c0_42 = arith.constant 0 : index
    %c0_43 = arith.constant 0 : index
    %45 = vector.load %arg9[%c0_40, %c0_41, %c0_42, %c0_43] : memref<1x1x1x8xf32, #tpu.memory_space<vmem>>, vector<1x1x1x8xf32>
    %46 = vector.shape_cast %45 : vector<1x1x1x8xf32> to vector<1x8xf32>
    %47 = vector.shape_cast %44 : vector<1x8xf32> to vector<1x1x1x8xf32>
    tpu.vector_store %arg9[%c0_40, %c0_41, %c0_42, %c0_43], %47 {strides = array<i32>} : memref<1x1x1x8xf32, #tpu.memory_space<vmem>>, vector<1x1x1x8xf32>,
    %48 = arith.mulf %39, %39 : vector<128x8xf32>
    %cst_44 = arith.constant dense<0.000000e+00> : vector<8xf32>
    %49 = vector.multi_reduction <add>, %48, %cst_44 [0] : vector<128x8xf32> to vector<8xf32>
    %50 = vector.shape_cast %49 : vector<8xf32> to vector<1x8xf32>
    %c0_45 = arith.constant 0 : index
    %c0_46 = arith.constant 0 : index
    %c0_47 = arith.constant 0 : index
    %c0_48 = arith.constant 0 : index
    %51 = vector.load %arg10[%c0_45, %c0_46, %c0_47, %c0_48] : memref<1x1x1x8xf32, #tpu.memory_space<vmem>>, vector<1x1x1x8xf32>
    %52 = vector.shape_cast %51 : vector<1x1x1x8xf32> to vector<1x8xf32>
    %53 = vector.shape_cast %50 : vector<1x8xf32> to vector<1x1x1x8xf32>
    tpu.vector_store %arg10[%c0_45, %c0_46, %c0_47, %c0_48], %53 {strides = array<i32>} : memref<1x1x1x8xf32, #tpu.memory_space<vmem>>, vector<1x1x1x8xf32>,
    return
  }
  func.func @transform_0(%arg0: i32, %arg1: i32) -> (i32, i32, i32, i32) {
    %c0_i32 = arith.constant 0 : i32
    %c0_i32_0 = arith.constant 0 : i32
    %c0_i32_1 = arith.constant 0 : i32
    return %arg0, %arg1, %c0_i32, %c0_i32_0 : i32, i32, i32, i32
  }
  func.func @transform_1(%arg0: i32, %arg1: i32) -> (i32, i32, i32, i32) {
    %c1_i32 = arith.constant 1 : i32
    %0 = arith.addi %arg1, %c1_i32 : i32
    %c8_i32 = arith.constant 8 : i32
    %1 = arith.muli %0, %c8_i32 : i32
    %c0_i32 = arith.constant 0 : i32
    %c0_i32_0 = arith.constant 0 : i32
    %c0_i32_1 = arith.constant 0 : i32
    return %arg0, %1, %c0_i32, %c0_i32_0 : i32, i32, i32, i32
  }
  func.func @transform_2(%arg0: i32, %arg1: i32) -> (i32, i32, i32, i32) {
    %c1_i32 = arith.constant 1 : i32
    %0 = arith.addi %arg1, %c1_i32 : i32
    %c8_i32 = arith.constant 8 : i32
    %1 = arith.muli %0, %c8_i32 : i32
    %c1_i32_0 = arith.constant 1 : i32
    %2 = arith.addi %1, %c1_i32_0 : i32
    %c0_i32 = arith.constant 0 : i32
    %c0_i32_1 = arith.constant 0 : i32
    %c0_i32_2 = arith.constant 0 : i32
    return %arg0, %2, %c0_i32, %c0_i32_1 : i32, i32, i32, i32
  }
  func.func @transform_3(%arg0: i32, %arg1: i32) -> (i32, i32) {
    %c0_i32 = arith.constant 0 : i32
    %c0_i32_0 = arith.constant 0 : i32
    %c0_i32_1 = arith.constant 0 : i32
    return %c0_i32, %c0_i32_0 : i32, i32
  }
  func.func @transform_4(%arg0: i32, %arg1: i32) -> (i32, i32, i32) {
    %c0_i32 = arith.constant 0 : i32
    %c0_i32_0 = arith.constant 0 : i32
    %c0_i32_1 = arith.constant 0 : i32
    %c0_i32_2 = arith.constant 0 : i32
    return %c0_i32, %c0_i32_0, %c0_i32_1 : i32, i32, i32
  }
  func.func @transform_5(%arg0: i32, %arg1: i32) -> (i32, i32, i32) {
    %c0_i32 = arith.constant 0 : i32
    %c0_i32_0 = arith.constant 0 : i32
    %c0_i32_1 = arith.constant 0 : i32
    %c0_i32_2 = arith.constant 0 : i32
    return %c0_i32, %c0_i32_0, %c0_i32_1 : i32, i32, i32
  }
  func.func @transform_6(%arg0: i32, %arg1: i32) -> (i32, i32, i32) {
    %c0_i32 = arith.constant 0 : i32
    %c0_i32_0 = arith.constant 0 : i32
    return %arg0, %arg1, %c0_i32 : i32, i32, i32
  }
  func.func @transform_7(%arg0: i32, %arg1: i32) -> (i32, i32, i32, i32) {
    %c0_i32 = arith.constant 0 : i32
    %c0_i32_0 = arith.constant 0 : i32
    %c0_i32_1 = arith.constant 0 : i32
    return %arg0, %arg1, %c0_i32, %c0_i32_0 : i32, i32, i32, i32
  }
  func.func @transform_8(%arg0: i32, %arg1: i32) -> (i32, i32, i32, i32) {
    %c0_i32 = arith.constant 0 : i32
    %c0_i32_0 = arith.constant 0 : i32
    %c0_i32_1 = arith.constant 0 : i32
    return %arg0, %arg1, %c0_i32, %c0_i32_0 : i32, i32, i32, i32
  }
}

module attributes {stable_mosaic.version = 11 : i64} {
  func.func @_conv_stage_kernel(%arg0: i32, %arg1: i32, %arg2: memref<1x8x18x8xf32, #tpu.memory_space<vmem>>, %arg3: memref<1x1x18x8xf32, #tpu.memory_space<vmem>>, %arg4: memref<1x1x18x8xf32, #tpu.memory_space<vmem>>, %arg5: memref<72x8xf32, #tpu.memory_space<vmem>>, %arg6: memref<1x1x8xf32, #tpu.memory_space<vmem>>, %arg7: memref<1x1x8xf32, #tpu.memory_space<vmem>>, %arg8: memref<1x128x8xf32, #tpu.memory_space<vmem>>, %arg9: memref<1x1x1x8xf32, #tpu.memory_space<vmem>>, %arg10: memref<1x1x1x8xf32, #tpu.memory_space<vmem>>, %arg11: memref<10x18x8xf32, #tpu.memory_space<vmem>>, %arg12: memref<128x72xf32, #tpu.memory_space<vmem>>) attributes {dimension_semantics = [#tpu.dimension_semantics<parallel>, #tpu.dimension_semantics<parallel>], iteration_bounds = array<i64: 2, 2>, scalar_prefetch = 0 : i64, scratch_operands = 2 : i64, tpu.core_type = #tpu.core_type<tc>, window_params = [{transform_indices = @transform_0, window_bounds = array<i64: 1, 8, 18, 8>}, {transform_indices = @transform_1, window_bounds = array<i64: 1, 1, 18, 8>}, {transform_indices = @transform_2, window_bounds = array<i64: 1, 1, 18, 8>}, {pipeline_mode = #tpu.pipeline_mode<synchronous>, transform_indices = @transform_3, window_bounds = array<i64: 72, 8>}, {pipeline_mode = #tpu.pipeline_mode<synchronous>, transform_indices = @transform_4, window_bounds = array<i64: 1, 1, 8>}, {pipeline_mode = #tpu.pipeline_mode<synchronous>, transform_indices = @transform_5, window_bounds = array<i64: 1, 1, 8>}, {transform_indices = @transform_6, window_bounds = array<i64: 1, 128, 8>}, {transform_indices = @transform_7, window_bounds = array<i64: 1, 1, 1, 8>}, {transform_indices = @transform_8, window_bounds = array<i64: 1, 1, 1, 8>}]} {
    %c0 = arith.constant 0 : index
    %c0_0 = arith.constant 0 : index
    %c0_1 = arith.constant 0 : index
    %c0_2 = arith.constant 0 : index
    %0 = vector.load %arg2[%c0, %c0_0, %c0_1, %c0_2] : memref<1x8x18x8xf32, #tpu.memory_space<vmem>>, vector<1x8x18x8xf32>
    %1 = vector.shape_cast %0 : vector<1x8x18x8xf32> to vector<8x18x8xf32>
    %c0_3 = arith.constant 0 : index
    %c0_4 = arith.constant 0 : index
    %c0_5 = arith.constant 0 : index
    %2 = vector.load %arg11[%c0_3, %c0_4, %c0_5] : memref<10x18x8xf32, #tpu.memory_space<vmem>>, vector<8x18x8xf32>
    tpu.vector_store %arg11[%c0_3, %c0_4, %c0_5], %1 {strides = array<i32>} : memref<10x18x8xf32, #tpu.memory_space<vmem>>, vector<8x18x8xf32>,
    %c0_6 = arith.constant 0 : index
    %c0_7 = arith.constant 0 : index
    %c0_8 = arith.constant 0 : index
    %c0_9 = arith.constant 0 : index
    %3 = vector.load %arg3[%c0_6, %c0_7, %c0_8, %c0_9] : memref<1x1x18x8xf32, #tpu.memory_space<vmem>>, vector<1x1x18x8xf32>
    %4 = vector.shape_cast %3 : vector<1x1x18x8xf32> to vector<1x18x8xf32>
    %c8 = arith.constant 8 : index
    %c0_10 = arith.constant 0 : index
    %c0_11 = arith.constant 0 : index
    %5 = vector.load %arg11[%c8, %c0_10, %c0_11] : memref<10x18x8xf32, #tpu.memory_space<vmem>>, vector<1x18x8xf32>
    tpu.vector_store %arg11[%c8, %c0_10, %c0_11], %4 {strides = array<i32>} : memref<10x18x8xf32, #tpu.memory_space<vmem>>, vector<1x18x8xf32>,
    %c0_12 = arith.constant 0 : index
    %c0_13 = arith.constant 0 : index
    %c0_14 = arith.constant 0 : index
    %c0_15 = arith.constant 0 : index
    %6 = vector.load %arg4[%c0_12, %c0_13, %c0_14, %c0_15] : memref<1x1x18x8xf32, #tpu.memory_space<vmem>>, vector<1x1x18x8xf32>
    %7 = vector.shape_cast %6 : vector<1x1x18x8xf32> to vector<1x18x8xf32>
    %c9 = arith.constant 9 : index
    %c0_16 = arith.constant 0 : index
    %c0_17 = arith.constant 0 : index
    %8 = vector.load %arg11[%c9, %c0_16, %c0_17] : memref<10x18x8xf32, #tpu.memory_space<vmem>>, vector<1x18x8xf32>
    tpu.vector_store %arg11[%c9, %c0_16, %c0_17], %7 {strides = array<i32>} : memref<10x18x8xf32, #tpu.memory_space<vmem>>, vector<1x18x8xf32>,
    %c8_i32 = arith.constant 8 : i32
    %9 = arith.muli %arg1, %c8_i32 : i32
    %10 = tpu.iota {dimensions = array<i32: 0>} : vector<10x18x1xi32>
    %11 = vector.broadcast %9 : i32 to vector<10x18x1xi32>
    %12 = arith.addi %11, %10 : vector<10x18x1xi32>
    %13 = tpu.iota {dimensions = array<i32: 1>} : vector<10x18x1xi32>
    %c1_i32 = arith.constant 1 : i32
    %14 = vector.broadcast %c1_i32 : i32 to vector<10x18x1xi32>
    %15 = arith.cmpi sge, %12, %14 : vector<10x18x1xi32>
    %c16_i32 = arith.constant 16 : i32
    %16 = vector.broadcast %c16_i32 : i32 to vector<10x18x1xi32>
    %17 = arith.cmpi sle, %12, %16 : vector<10x18x1xi32>
    %18 = arith.andi %15, %17 : vector<10x18x1xi1>
    %c1_i32_18 = arith.constant 1 : i32
    %19 = vector.broadcast %c1_i32_18 : i32 to vector<10x18x1xi32>
    %20 = arith.cmpi sge, %13, %19 : vector<10x18x1xi32>
    %21 = arith.andi %18, %20 : vector<10x18x1xi1>
    %c16_i32_19 = arith.constant 16 : i32
    %22 = vector.broadcast %c16_i32_19 : i32 to vector<10x18x1xi32>
    %23 = arith.cmpi sle, %13, %22 : vector<10x18x1xi32>
    %24 = arith.andi %21, %23 : vector<10x18x1xi1>
    %c0_20 = arith.constant 0 : index
    %c0_21 = arith.constant 0 : index
    %c0_22 = arith.constant 0 : index
    %25 = vector.load %arg11[%c0_20, %c0_21, %c0_22] : memref<10x18x8xf32, #tpu.memory_space<vmem>>, vector<10x18x8xf32>
    %c0_23 = arith.constant 0 : index
    %c0_24 = arith.constant 0 : index
    %c0_25 = arith.constant 0 : index
    %26 = vector.load %arg6[%c0_23, %c0_24, %c0_25] : memref<1x1x8xf32, #tpu.memory_space<vmem>>, vector<1x1x8xf32>
    %27 = vector.broadcast %26 : vector<1x1x8xf32> to vector<10x18x8xf32>
    %28 = arith.mulf %25, %27 : vector<10x18x8xf32>
    %c0_26 = arith.constant 0 : index
    %c0_27 = arith.constant 0 : index
    %c0_28 = arith.constant 0 : index
    %29 = vector.load %arg7[%c0_26, %c0_27, %c0_28] : memref<1x1x8xf32, #tpu.memory_space<vmem>>, vector<1x1x8xf32>
    %30 = vector.broadcast %29 : vector<1x1x8xf32> to vector<10x18x8xf32>
    %31 = arith.addf %28, %30 : vector<10x18x8xf32>
    %cst = arith.constant 0.000000e+00 : f32
    %32 = vector.broadcast %cst : f32 to vector<10x18x8xf32>
    %33 = arith.maximumf %31, %32 : vector<10x18x8xf32>
    %cst_29 = arith.constant 0.000000e+00 : f32
    %34 = vector.shape_cast %24 : vector<10x18x1xi1> to vector<10x18x1xi1>
    %35 = vector.broadcast %34 : vector<10x18x1xi1> to vector<10x18x8xi1>
    %36 = vector.broadcast %cst_29 : f32 to vector<10x18x8xf32>
    %37 = arith.select %35, %33, %36 : vector<10x18x8xi1>, vector<10x18x8xf32>
    %c0_30 = arith.constant 0 : index
    %c0_31 = arith.constant 0 : index
    %c0_32 = arith.constant 0 : index
    %38 = vector.load %arg11[%c0_30, %c0_31, %c0_32] : memref<10x18x8xf32, #tpu.memory_space<vmem>>, vector<10x18x8xf32>
    tpu.vector_store %arg11[%c0_30, %c0_31, %c0_32], %37 {strides = array<i32>} : memref<10x18x8xf32, #tpu.memory_space<vmem>>, vector<10x18x8xf32>,
    %c0_33 = arith.constant 0 : index
    %c0_34 = arith.constant 0 : index
    %c0_35 = arith.constant 0 : index
    %39 = vector.load %arg11[%c0_33, %c0_34, %c0_35] : memref<10x18x8xf32, #tpu.memory_space<vmem>>, vector<10x18x8xf32>
    %40 = vector.extract_strided_slice %39 {offsets = [0, 0, 0], sizes = [8, 16, 8], strides = [1, 1, 1]} : vector<10x18x8xf32> to vector<8x16x8xf32>
    %41 = vector.shape_cast %40 : vector<8x16x8xf32> to vector<128x8xf32>
    %c0_36 = arith.constant 0 : index
    %c0_37 = arith.constant 0 : index
    %42 = vector.load %arg12[%c0_36, %c0_37] : memref<128x72xf32, #tpu.memory_space<vmem>>, vector<128x8xf32>
    tpu.vector_store %arg12[%c0_36, %c0_37], %41 {strides = array<i32>} : memref<128x72xf32, #tpu.memory_space<vmem>>, vector<128x8xf32>,
    %43 = vector.extract_strided_slice %39 {offsets = [0, 1, 0], sizes = [8, 16, 8], strides = [1, 1, 1]} : vector<10x18x8xf32> to vector<8x16x8xf32>
    %44 = vector.shape_cast %43 : vector<8x16x8xf32> to vector<128x8xf32>
    %c0_38 = arith.constant 0 : index
    %c8_39 = arith.constant 8 : index
    %45 = vector.load %arg12[%c0_38, %c8_39] : memref<128x72xf32, #tpu.memory_space<vmem>>, vector<128x8xf32>
    tpu.vector_store %arg12[%c0_38, %c8_39], %44 {strides = array<i32>} : memref<128x72xf32, #tpu.memory_space<vmem>>, vector<128x8xf32>,
    %46 = vector.extract_strided_slice %39 {offsets = [0, 2, 0], sizes = [8, 16, 8], strides = [1, 1, 1]} : vector<10x18x8xf32> to vector<8x16x8xf32>
    %47 = vector.shape_cast %46 : vector<8x16x8xf32> to vector<128x8xf32>
    %c0_40 = arith.constant 0 : index
    %c16 = arith.constant 16 : index
    %48 = vector.load %arg12[%c0_40, %c16] : memref<128x72xf32, #tpu.memory_space<vmem>>, vector<128x8xf32>
    tpu.vector_store %arg12[%c0_40, %c16], %47 {strides = array<i32>} : memref<128x72xf32, #tpu.memory_space<vmem>>, vector<128x8xf32>,
    %49 = vector.extract_strided_slice %39 {offsets = [1, 0, 0], sizes = [8, 16, 8], strides = [1, 1, 1]} : vector<10x18x8xf32> to vector<8x16x8xf32>
    %50 = vector.shape_cast %49 : vector<8x16x8xf32> to vector<128x8xf32>
    %c0_41 = arith.constant 0 : index
    %c24 = arith.constant 24 : index
    %51 = vector.load %arg12[%c0_41, %c24] : memref<128x72xf32, #tpu.memory_space<vmem>>, vector<128x8xf32>
    tpu.vector_store %arg12[%c0_41, %c24], %50 {strides = array<i32>} : memref<128x72xf32, #tpu.memory_space<vmem>>, vector<128x8xf32>,
    %52 = vector.extract_strided_slice %39 {offsets = [1, 1, 0], sizes = [8, 16, 8], strides = [1, 1, 1]} : vector<10x18x8xf32> to vector<8x16x8xf32>
    %53 = vector.shape_cast %52 : vector<8x16x8xf32> to vector<128x8xf32>
    %c0_42 = arith.constant 0 : index
    %c32 = arith.constant 32 : index
    %54 = vector.load %arg12[%c0_42, %c32] : memref<128x72xf32, #tpu.memory_space<vmem>>, vector<128x8xf32>
    tpu.vector_store %arg12[%c0_42, %c32], %53 {strides = array<i32>} : memref<128x72xf32, #tpu.memory_space<vmem>>, vector<128x8xf32>,
    %55 = vector.extract_strided_slice %39 {offsets = [1, 2, 0], sizes = [8, 16, 8], strides = [1, 1, 1]} : vector<10x18x8xf32> to vector<8x16x8xf32>
    %56 = vector.shape_cast %55 : vector<8x16x8xf32> to vector<128x8xf32>
    %c0_43 = arith.constant 0 : index
    %c40 = arith.constant 40 : index
    %57 = vector.load %arg12[%c0_43, %c40] : memref<128x72xf32, #tpu.memory_space<vmem>>, vector<128x8xf32>
    tpu.vector_store %arg12[%c0_43, %c40], %56 {strides = array<i32>} : memref<128x72xf32, #tpu.memory_space<vmem>>, vector<128x8xf32>,
    %58 = vector.extract_strided_slice %39 {offsets = [2, 0, 0], sizes = [8, 16, 8], strides = [1, 1, 1]} : vector<10x18x8xf32> to vector<8x16x8xf32>
    %59 = vector.shape_cast %58 : vector<8x16x8xf32> to vector<128x8xf32>
    %c0_44 = arith.constant 0 : index
    %c48 = arith.constant 48 : index
    %60 = vector.load %arg12[%c0_44, %c48] : memref<128x72xf32, #tpu.memory_space<vmem>>, vector<128x8xf32>
    tpu.vector_store %arg12[%c0_44, %c48], %59 {strides = array<i32>} : memref<128x72xf32, #tpu.memory_space<vmem>>, vector<128x8xf32>,
    %61 = vector.extract_strided_slice %39 {offsets = [2, 1, 0], sizes = [8, 16, 8], strides = [1, 1, 1]} : vector<10x18x8xf32> to vector<8x16x8xf32>
    %62 = vector.shape_cast %61 : vector<8x16x8xf32> to vector<128x8xf32>
    %c0_45 = arith.constant 0 : index
    %c56 = arith.constant 56 : index
    %63 = vector.load %arg12[%c0_45, %c56] : memref<128x72xf32, #tpu.memory_space<vmem>>, vector<128x8xf32>
    tpu.vector_store %arg12[%c0_45, %c56], %62 {strides = array<i32>} : memref<128x72xf32, #tpu.memory_space<vmem>>, vector<128x8xf32>,
    %64 = vector.extract_strided_slice %39 {offsets = [2, 2, 0], sizes = [8, 16, 8], strides = [1, 1, 1]} : vector<10x18x8xf32> to vector<8x16x8xf32>
    %65 = vector.shape_cast %64 : vector<8x16x8xf32> to vector<128x8xf32>
    %c0_46 = arith.constant 0 : index
    %c64 = arith.constant 64 : index
    %66 = vector.load %arg12[%c0_46, %c64] : memref<128x72xf32, #tpu.memory_space<vmem>>, vector<128x8xf32>
    tpu.vector_store %arg12[%c0_46, %c64], %65 {strides = array<i32>} : memref<128x72xf32, #tpu.memory_space<vmem>>, vector<128x8xf32>,
    %c0_47 = arith.constant 0 : index
    %c0_48 = arith.constant 0 : index
    %67 = vector.load %arg12[%c0_47, %c0_48] : memref<128x72xf32, #tpu.memory_space<vmem>>, vector<128x72xf32>
    %c0_49 = arith.constant 0 : index
    %c0_50 = arith.constant 0 : index
    %68 = vector.load %arg5[%c0_49, %c0_50] : memref<72x8xf32, #tpu.memory_space<vmem>>, vector<72x8xf32>
    %cst_51 = arith.constant dense<0.000000e+00> : vector<128x8xf32>
    %69 = tpu.matmul %67, %68, %cst_51 {dimension_numbers = #tpu.dot_dimension_numbers<[1], [0], [0], [1], [0, 0, 1, 1], [], []>} : vector<128x72xf32>, vector<72x8xf32>, vector<128x8xf32> -> vector<128x8xf32>
    %c0_52 = arith.constant 0 : index
    %c0_53 = arith.constant 0 : index
    %c0_54 = arith.constant 0 : index
    %70 = vector.load %arg8[%c0_52, %c0_53, %c0_54] : memref<1x128x8xf32, #tpu.memory_space<vmem>>, vector<1x128x8xf32>
    %71 = vector.shape_cast %70 : vector<1x128x8xf32> to vector<128x8xf32>
    %72 = vector.shape_cast %69 : vector<128x8xf32> to vector<1x128x8xf32>
    tpu.vector_store %arg8[%c0_52, %c0_53, %c0_54], %72 {strides = array<i32>} : memref<1x128x8xf32, #tpu.memory_space<vmem>>, vector<1x128x8xf32>,
    %cst_55 = arith.constant dense<0.000000e+00> : vector<8xf32>
    %73 = vector.multi_reduction <add>, %69, %cst_55 [0] : vector<128x8xf32> to vector<8xf32>
    %74 = vector.shape_cast %73 : vector<8xf32> to vector<1x8xf32>
    %c0_56 = arith.constant 0 : index
    %c0_57 = arith.constant 0 : index
    %c0_58 = arith.constant 0 : index
    %c0_59 = arith.constant 0 : index
    %75 = vector.load %arg9[%c0_56, %c0_57, %c0_58, %c0_59] : memref<1x1x1x8xf32, #tpu.memory_space<vmem>>, vector<1x1x1x8xf32>
    %76 = vector.shape_cast %75 : vector<1x1x1x8xf32> to vector<1x8xf32>
    %77 = vector.shape_cast %74 : vector<1x8xf32> to vector<1x1x1x8xf32>
    tpu.vector_store %arg9[%c0_56, %c0_57, %c0_58, %c0_59], %77 {strides = array<i32>} : memref<1x1x1x8xf32, #tpu.memory_space<vmem>>, vector<1x1x1x8xf32>,
    %78 = arith.mulf %69, %69 : vector<128x8xf32>
    %cst_60 = arith.constant dense<0.000000e+00> : vector<8xf32>
    %79 = vector.multi_reduction <add>, %78, %cst_60 [0] : vector<128x8xf32> to vector<8xf32>
    %80 = vector.shape_cast %79 : vector<8xf32> to vector<1x8xf32>
    %c0_61 = arith.constant 0 : index
    %c0_62 = arith.constant 0 : index
    %c0_63 = arith.constant 0 : index
    %c0_64 = arith.constant 0 : index
    %81 = vector.load %arg10[%c0_61, %c0_62, %c0_63, %c0_64] : memref<1x1x1x8xf32, #tpu.memory_space<vmem>>, vector<1x1x1x8xf32>
    %82 = vector.shape_cast %81 : vector<1x1x1x8xf32> to vector<1x8xf32>
    %83 = vector.shape_cast %80 : vector<1x8xf32> to vector<1x1x1x8xf32>
    tpu.vector_store %arg10[%c0_61, %c0_62, %c0_63, %c0_64], %83 {strides = array<i32>} : memref<1x1x1x8xf32, #tpu.memory_space<vmem>>, vector<1x1x1x8xf32>,
    return
  }
  func.func @transform_0(%arg0: i32, %arg1: i32) -> (i32, i32, i32, i32) {
    %c0_i32 = arith.constant 0 : i32
    %c0_i32_0 = arith.constant 0 : i32
    %c0_i32_1 = arith.constant 0 : i32
    return %arg0, %arg1, %c0_i32, %c0_i32_0 : i32, i32, i32, i32
  }
  func.func @transform_1(%arg0: i32, %arg1: i32) -> (i32, i32, i32, i32) {
    %c1_i32 = arith.constant 1 : i32
    %0 = arith.addi %arg1, %c1_i32 : i32
    %c8_i32 = arith.constant 8 : i32
    %1 = arith.muli %0, %c8_i32 : i32
    %c0_i32 = arith.constant 0 : i32
    %c0_i32_0 = arith.constant 0 : i32
    %c0_i32_1 = arith.constant 0 : i32
    return %arg0, %1, %c0_i32, %c0_i32_0 : i32, i32, i32, i32
  }
  func.func @transform_2(%arg0: i32, %arg1: i32) -> (i32, i32, i32, i32) {
    %c1_i32 = arith.constant 1 : i32
    %0 = arith.addi %arg1, %c1_i32 : i32
    %c8_i32 = arith.constant 8 : i32
    %1 = arith.muli %0, %c8_i32 : i32
    %c1_i32_0 = arith.constant 1 : i32
    %2 = arith.addi %1, %c1_i32_0 : i32
    %c0_i32 = arith.constant 0 : i32
    %c0_i32_1 = arith.constant 0 : i32
    %c0_i32_2 = arith.constant 0 : i32
    return %arg0, %2, %c0_i32, %c0_i32_1 : i32, i32, i32, i32
  }
  func.func @transform_3(%arg0: i32, %arg1: i32) -> (i32, i32) {
    %c0_i32 = arith.constant 0 : i32
    %c0_i32_0 = arith.constant 0 : i32
    %c0_i32_1 = arith.constant 0 : i32
    return %c0_i32, %c0_i32_0 : i32, i32
  }
  func.func @transform_4(%arg0: i32, %arg1: i32) -> (i32, i32, i32) {
    %c0_i32 = arith.constant 0 : i32
    %c0_i32_0 = arith.constant 0 : i32
    %c0_i32_1 = arith.constant 0 : i32
    %c0_i32_2 = arith.constant 0 : i32
    return %c0_i32, %c0_i32_0, %c0_i32_1 : i32, i32, i32
  }
  func.func @transform_5(%arg0: i32, %arg1: i32) -> (i32, i32, i32) {
    %c0_i32 = arith.constant 0 : i32
    %c0_i32_0 = arith.constant 0 : i32
    %c0_i32_1 = arith.constant 0 : i32
    %c0_i32_2 = arith.constant 0 : i32
    return %c0_i32, %c0_i32_0, %c0_i32_1 : i32, i32, i32
  }
  func.func @transform_6(%arg0: i32, %arg1: i32) -> (i32, i32, i32) {
    %c0_i32 = arith.constant 0 : i32
    %c0_i32_0 = arith.constant 0 : i32
    return %arg0, %arg1, %c0_i32 : i32, i32, i32
  }
  func.func @transform_7(%arg0: i32, %arg1: i32) -> (i32, i32, i32, i32) {
    %c0_i32 = arith.constant 0 : i32
    %c0_i32_0 = arith.constant 0 : i32
    %c0_i32_1 = arith.constant 0 : i32
    return %arg0, %arg1, %c0_i32, %c0_i32_0 : i32, i32, i32, i32
  }
  func.func @transform_8(%arg0: i32, %arg1: i32) -> (i32, i32, i32, i32) {
    %c0_i32 = arith.constant 0 : i32
    %c0_i32_0 = arith.constant 0 : i32
    %c0_i32_1 = arith.constant 0 : i32
    return %arg0, %arg1, %c0_i32, %c0_i32_0 : i32, i32, i32, i32
  }
}

module attributes {stable_mosaic.version = 11 : i64} {
  func.func @_affine_relu_kernel(%arg0: i32, %arg1: memref<32x128xf32, #tpu.memory_space<vmem>>, %arg2: memref<1x128xf32, #tpu.memory_space<vmem>>, %arg3: memref<1x128xf32, #tpu.memory_space<vmem>>, %arg4: memref<32x128xf32, #tpu.memory_space<vmem>>) attributes {dimension_semantics = [#tpu.dimension_semantics<parallel>], iteration_bounds = array<i64: 1>, scalar_prefetch = 0 : i64, scratch_operands = 0 : i64, tpu.core_type = #tpu.core_type<tc>, window_params = [{transform_indices = @transform_0, window_bounds = array<i64: 32, 128>}, {pipeline_mode = #tpu.pipeline_mode<synchronous>, transform_indices = @transform_1, window_bounds = array<i64: 1, 128>}, {pipeline_mode = #tpu.pipeline_mode<synchronous>, transform_indices = @transform_2, window_bounds = array<i64: 1, 128>}, {transform_indices = @transform_3, window_bounds = array<i64: 32, 128>}]} {
    %c0 = arith.constant 0 : index
    %c0_0 = arith.constant 0 : index
    %0 = vector.load %arg1[%c0, %c0_0] : memref<32x128xf32, #tpu.memory_space<vmem>>, vector<32x128xf32>
    %c0_1 = arith.constant 0 : index
    %c0_2 = arith.constant 0 : index
    %1 = vector.load %arg2[%c0_1, %c0_2] : memref<1x128xf32, #tpu.memory_space<vmem>>, vector<1x128xf32>
    %2 = vector.broadcast %1 : vector<1x128xf32> to vector<32x128xf32>
    %3 = arith.mulf %0, %2 : vector<32x128xf32>
    %c0_3 = arith.constant 0 : index
    %c0_4 = arith.constant 0 : index
    %4 = vector.load %arg3[%c0_3, %c0_4] : memref<1x128xf32, #tpu.memory_space<vmem>>, vector<1x128xf32>
    %5 = vector.broadcast %4 : vector<1x128xf32> to vector<32x128xf32>
    %6 = arith.addf %3, %5 : vector<32x128xf32>
    %cst = arith.constant 0.000000e+00 : f32
    %7 = vector.broadcast %cst : f32 to vector<32x128xf32>
    %8 = arith.maximumf %6, %7 : vector<32x128xf32>
    %c0_5 = arith.constant 0 : index
    %c0_6 = arith.constant 0 : index
    %9 = vector.load %arg4[%c0_5, %c0_6] : memref<32x128xf32, #tpu.memory_space<vmem>>, vector<32x128xf32>
    tpu.vector_store %arg4[%c0_5, %c0_6], %8 {strides = array<i32>} : memref<32x128xf32, #tpu.memory_space<vmem>>, vector<32x128xf32>,
    return
  }
  func.func @transform_0(%arg0: i32) -> (i32, i32) {
    %c0_i32 = arith.constant 0 : i32
    %c0_i32_0 = arith.constant 0 : i32
    return %arg0, %c0_i32 : i32, i32
  }
  func.func @transform_1(%arg0: i32) -> (i32, i32) {
    %c0_i32 = arith.constant 0 : i32
    %c0_i32_0 = arith.constant 0 : i32
    %c0_i32_1 = arith.constant 0 : i32
    return %c0_i32, %c0_i32_0 : i32, i32
  }
  func.func @transform_2(%arg0: i32) -> (i32, i32) {
    %c0_i32 = arith.constant 0 : i32
    %c0_i32_0 = arith.constant 0 : i32
    %c0_i32_1 = arith.constant 0 : i32
    return %c0_i32, %c0_i32_0 : i32, i32
  }
  func.func @transform_3(%arg0: i32) -> (i32, i32) {
    %c0_i32 = arith.constant 0 : i32
    %c0_i32_0 = arith.constant 0 : i32
    return %arg0, %c0_i32 : i32, i32
  }
}

</mosaic_0001>

<bundles_post_ra>
// kernel: tile.18
= control target key start
LH: loop header
LB: loop body
LE: loop exit
PB: predicated region body
PF: predicated region fallthrough
CT: control target
= control target key end

     0   :  { %s28_s0 = inlined_call_operand.vmem [shape: f32[8], index: 0, kind: input, shape index: {}]   ;;  %s29_s1 = inlined_call_operand.vmem [shape: f32[16,8], index: 1, kind: output, shape index: {}]  }
   0x1   :  { %v4_v0 = vld [vmem:[%s28_s0] ss:$0 sm:$0xff] }
   0x2   :  { %5 = vst [vmem:[%s29_s1] sm:$0xff] %v4_v0  ;;  %8 = vst [vmem:[%s29_s1 + $0x8] sm:$0xff] %v4_v0 }

// kernel: tile.19
= control target key start
LH: loop header
LB: loop body
LE: loop exit
PB: predicated region body
PF: predicated region fallthrough
CT: control target
= control target key end

     0   :  { %s131_s10 = smov 120   ;;  %s132_s11 = smov 104   ;;  %vm3_vm0 = vcmask 64512   ;;  %vm9_vm1 = vcmask 1048512   ;;  %vm15_vm2 = vcmask 982912   ;;  %vm21_vm3 = vcmask 917312   ;;  %s207_s0 = inlined_call_operand.vmem [shape: f32[16,8], index: 0, kind: input, shape index: {}]   ;;  %s208_s1 = inlined_call_operand.vmem [shape: f32[1,128], index: 1, kind: output, shape index: {}]  }
   0x1   :  { %v101_v0 = vld [vmem:[%s207_s0 + $0xf] sm:$0x1]   ;;  %v103_v1 = vld [vmem:[%s207_s0 + $0xd] sm:$0x1]   ;;  %v102_v2 = vld [vmem:[%s207_s0 + $0xe] sm:$0x1]  }
   0x2   :  { %7 = vrot.lane.b32.xlu0 %v101_v0, %s131_s10  ;;  %19 = vrot.lane.b32.xlu1 %v103_v1, %s132_s11  ;;  %v104_v3 = vld [vmem:[%s207_s0 + $0xc] sm:$0x1]   ;;  %s133_s16 = smov 112   ;;  %s134_s17 = smov 96   ;;  %v105_v4 = vld [vmem:[%s207_s0 + $0xb] sm:$0x1]  }
   0x3   :  { %v106_v5 = vld [vmem:[%s207_s0 + $0xa] sm:$0x1]   ;;  %v2_v6 = vld [vmem:[%s207_s0] sm:$0x1]   ;;  %s135_s24 = smov 88   ;;  %s136_s25 = smov 80  }
   0x4   :  { %4 = vst.msk [vmem:[#allocation0] sm:$0x1] %vm3_vm0, %v2_v6   ;;  %v107_v7 = vld [vmem:[%s207_s0 + $0x9] sm:$0x1]   ;;  %v108_v8 = vld [vmem:[%s207_s0 + $0x8] sm:$0x1]  }
   0x5   :  { %s137_s30 = smov 72   ;;  %s138_s2 = smov 64   ;;  %v109_v9 = vld [vmem:[%s207_s0 + $0x7] sm:$0x1]   ;;  %v110_v10 = vld [vmem:[%s207_s0 + $0x6] sm:$0x1]  }
   0x6   :  { %13 = vrot.lane.b32.xlu0 %v102_v2, %s133_s16  ;;  %25 = vrot.lane.b32.xlu1 %v104_v3, %s134_s17  ;;  %s139_s7 = smov 56   ;;  %s140_s8 = smov 48   ;;  %v111_v11 = vld [vmem:[%s207_s0 + $0x5] sm:$0x1]   ;;  %v112_v12 = vld [vmem:[%s207_s0 + $0x4] sm:$0x1]  }
   0x7   :  { %s141_s13 = smov 40   ;;  %s142_s14 = smov 32   ;;  %v113_v13 = vld [vmem:[%s207_s0 + $0x3] sm:$0x1]   ;;  %v114_v14 = vld [vmem:[%s207_s0 + $0x2] sm:$0x1]  }
   0x8   :  { %s143_s19 = smov 24   ;;  %s144_s20 = smov 16   ;;  %v115_v15 = vld [vmem:[%s207_s0 + $0x1] sm:$0x1]   ;;  %vm27_vm4 = vcmask 851712   ;;  %vm33_vm5 = vcmask 786112  }
   0x9   :  { %s145_s0 = smov 8   ;;  %vm39_vm6 = vcmask 720512   ;;  %vm45_vm7 = vcmask 654912   ;;  %vm51_vm8 = vcmask 589312   ;;  %vm57_vm9 = vcmask 523712  }
   0xa   :  { %31 = vrot.lane.b32.xlu0 %v105_v4, %s135_s24  ;;  %37 = vrot.lane.b32.xlu1 %v106_v5, %s136_s25  ;;  %vm63_vm10 = vcmask 458112   ;;  %vm69_vm11 = vcmask 392512   ;;  %vm75_vm12 = vcmask 326912   ;;  %vm81_vm13 = vcmask 261312  }
   0xb   :  { %vm87_vm14 = vcmask 195712   ;;  %vm93_vm15 = vcmask 130112  }
   0xe   :  { %43 = vrot.lane.b32.xlu0 %v107_v7, %s137_s30  ;;  %49 = vrot.lane.b32.xlu1 %v108_v8, %s138_s2 }
  0x12   :  { %55 = vrot.lane.b32.xlu0 %v109_v9, %s139_s7  ;;  %61 = vrot.lane.b32.xlu1 %v110_v10, %s140_s8 }
  0x16   :  { %67 = vrot.lane.b32.xlu0 %v111_v11, %s141_s13  ;;  %73 = vrot.lane.b32.xlu1 %v112_v12, %s142_s14 }
  0x1a   :  { %79 = vrot.lane.b32.xlu0 %v113_v13, %s143_s19  ;;  %85 = vrot.lane.b32.xlu1 %v114_v14, %s144_s20 }
  0x1e   :  { %91 = vrot.lane.b32.xlu0 %v115_v15, %s145_s0 }
  0x74   :  { %v8_v16 = vpop.permute.xlu0 %7   ;;  %v20_v17 = vpop.permute.xlu1 %19  }
  0x75   :  { %10 = vst.msk [vmem:[#allocation0] sm:$0x1] %vm9_vm1, %v8_v16  }
  0x78   :  { %v14_v18 = vpop.permute.xlu0 %13   ;;  %v26_v19 = vpop.permute.xlu1 %25  }
  0x79   :  { %16 = vst.msk [vmem:[#allocation0] sm:$0x1] %vm15_vm2, %v14_v18  }
  0x7a   :  { %22 = vst.msk [vmem:[#allocation0] sm:$0x1] %vm21_vm3, %v20_v17  }
  0x7b   :  { %28 = vst.msk [vmem:[#allocation0] sm:$0x1] %vm27_vm4, %v26_v19  }
  0x7c   :  { %v32_v20 = vpop.permute.xlu0 %31   ;;  %v38_v21 = vpop.permute.xlu1 %37  }
  0x7d   :  { %34 = vst.msk [vmem:[#allocation0] sm:$0x1] %vm33_vm5, %v32_v20  }
  0x7e   :  { %40 = vst.msk [vmem:[#allocation0] sm:$0x1] %vm39_vm6, %v38_v21  }
  0x80   :  { %v44_v22 = vpop.permute.xlu0 %43   ;;  %v50_v23 = vpop.permute.xlu1 %49  }
  0x81   :  { %46 = vst.msk [vmem:[#allocation0] sm:$0x1] %vm45_vm7, %v44_v22  }
  0x82   :  { %52 = vst.msk [vmem:[#allocation0] sm:$0x1] %vm51_vm8, %v50_v23  }
  0x84   :  { %v56_v24 = vpop.permute.xlu0 %55   ;;  %v62_v25 = vpop.permute.xlu1 %61  }
  0x85   :  { %58 = vst.msk [vmem:[#allocation0] sm:$0x1] %vm57_vm9, %v56_v24  }
  0x86   :  { %64 = vst.msk [vmem:[#allocation0] sm:$0x1] %vm63_vm10, %v62_v25  }
  0x88   :  { %v68_v26 = vpop.permute.xlu0 %67   ;;  %v74_v27 = vpop.permute.xlu1 %73  }
  0x89   :  { %70 = vst.msk [vmem:[#allocation0] sm:$0x1] %vm69_vm11, %v68_v26  }
  0x8a   :  { %76 = vst.msk [vmem:[#allocation0] sm:$0x1] %vm75_vm12, %v74_v27  }
  0x8c   :  { %v80_v28 = vpop.permute.xlu0 %79   ;;  %v86_v29 = vpop.permute.xlu1 %85  }
  0x8d   :  { %82 = vst.msk [vmem:[#allocation0] sm:$0x1] %vm81_vm13, %v80_v28  }
  0x8e   :  { %88 = vst.msk [vmem:[#allocation0] sm:$0x1] %vm87_vm14, %v86_v29  }
  0x90   :  { %v92_v30 = vpop.permute.xlu0 %91  }
  0x91   :  { %94 = vst.msk [vmem:[#allocation0] sm:$0x1] %vm93_vm15, %v92_v30  }
  0x98   :  { %v98_v31 = vld [vmem:[#allocation0] sm:$0x1] }
  0x99   :  { %100 = vst [vmem:[%s208_s1] sm:$0x1] %v98_v31 }

// kernel: double_conv.5
= control target key start
LH: loop header
LB: loop body
LE: loop exit
PB: predicated region body
PF: predicated region fallthrough
CT: control target
= control target key end

     0   :  { %s104_s0 = inlined_call_operand.vmem [shape: f32[32,128], index: 0, kind: input, shape index: {}]   ;;  %s105_s1 = inlined_call_operand.vmem [shape: f32[1,128], index: 1, kind: input, shape index: {}]   ;;  %s106_s2 = inlined_call_operand.vmem [shape: f32[1,128], index: 2, kind: input, shape index: {}]   ;;  %s107_s3 = inlined_call_operand.vmem [shape: f32[32,128], index: 3, kind: output, shape index: {}]  }
   0x1   :  { %v14_v0 = vld [vmem:[%s104_s0] sm:$0xff]  ;;  %v15_v4 = vld [vmem:[%s104_s0 + $0x8] sm:$0xff]  ;;  %v16_v5 = vld [vmem:[%s104_s0 + $0x10] sm:$0xff] }
   0x2   :  { %v52_v1 = vld [vmem:[%s105_s1] ss:$0 sm:$0xff]  ;;  %v17_v6 = vld [vmem:[%s104_s0 + $0x18] sm:$0xff] }
   0x3   :  { %v53_v2 = vld [vmem:[%s106_s2] ss:$0 sm:$0xff]  ;;  %v25_v3 = vmul.f32 %v52_v1, %v14_v0  ;;  %v26_v7 = vmul.f32 %v52_v1, %v15_v4  ;;  %v27_v8 = vmul.f32 %v52_v1, %v16_v5  ;;  %v28_v9 = vmul.f32 %v52_v1, %v17_v6 }
   0x5   :  { %v36_v10 = vadd.f32 %v53_v2, %v25_v3  ;;  %v37_v11 = vadd.f32 %v53_v2, %v26_v7  ;;  %v38_v12 = vadd.f32 %v53_v2, %v27_v8  ;;  %v39_v13 = vadd.f32 %v53_v2, %v28_v9 }
   0x7   :  { %v40_v14 = vmax.f32 %v36_v10, 0.0  ;;  %v41_v15 = vmax.f32 %v37_v11, 0.0  ;;  %v42_v16 = vmax.f32 %v38_v12, 0.0  ;;  %v43_v17 = vmax.f32 %v39_v13, 0.0 }
   0x9   :  { %44 = vst [vmem:[%s107_s3] sm:$0xff] %v40_v14  ;;  %45 = vst [vmem:[%s107_s3 + $0x8] sm:$0xff] %v41_v15 }
   0xa   :  { %46 = vst [vmem:[%s107_s3 + $0x10] sm:$0xff] %v42_v16  ;;  %47 = vst [vmem:[%s107_s3 + $0x18] sm:$0xff] %v43_v17 }

// kernel: double_conv.3
= control target key start
LH: loop header
LB: loop body
LE: loop exit
PB: predicated region body
PF: predicated region fallthrough
CT: control target
= control target key end

     0   :  { %s2086_s27 = smov 0   ;;  %s2088_s28 = smov 0   ;;  %s2739_s0 = inlined_call_operand.vmem [shape: f32[2,18,18,4], index: 0, kind: input, shape index: {}, may-alias: {0,1,2}]   ;;  %s2740_s1 = inlined_call_operand.vmem [shape: f32[2,18,18,4], index: 1, kind: input, shape index: {}, may-alias: {0,1,2}]   ;;  %s2741_s2 = inlined_call_operand.vmem [shape: f32[2,18,18,4], index: 2, kind: input, shape index: {}, may-alias: {0,1,2}]   ;;  %s2742_s3 = inlined_call_operand.vmem [shape: f32[36,8], index: 3, kind: input, shape index: {}]   ;;  %s2743_s4 = inlined_call_operand.vmem [shape: f32[1,1,4], index: 4, kind: input, shape index: {}]   ;;  %s2744_s5 = inlined_call_operand.vmem [shape: f32[1,1,4], index: 5, kind: input, shape index: {}]   ;;  %s2745_s6 = inlined_call_operand.vmem [shape: f32[2,256,8], index: 6, kind: output, shape index: {0}]   ;;  %s2746_s7 = inlined_call_operand.vmem [shape: f32[2,2,1,8], index: 7, kind: output, shape index: {1}]   ;;  %s2747_s8 = inlined_call_operand.vmem [shape: f32[2,2,1,8], index: 8, kind: output, shape index: {2}]  }
   0x1   :  { %s2090_s29 = smov 0   ;;  %s2092_s30 = smov 0  }
   0x2   :  { %s2094_s4 = smov 0  }
   0x3 LB: > { %s28_s5 = sadd.s32 1, %s2023_s29  ;;  %s31_s9 = sadd.s32 1, %s2027_s30  ;;  %s2031_s4 = sphi %s2094_s4, %s19_s4   ;;  %s2027_s30 = sphi %s2092_s30, %s2751_s30   ;;  %s2023_s29 = sphi %s2090_s29, %s2750_s29   ;;  %s2019_s28 = sphi %s2088_s28, %s2749_s28   ;;  %s2015_s27 = sphi %s2086_s27, %s2748_s27  }
   0x4   : > { %p29_p0 = scmp.ge.s32.totalorder %s28_s5, 2  ;;  %p1829_p1 = scmp.ge.s32.totalorder %s2031_s4, 1 }
   0x5   : > { %p355_p2 = scmp.lt.s32.totalorder %s2031_s4, 5 }
   0x6   : > { %s2753_s5 = smov (%p29_p0, %s28_s5), 0  ;;  %s2755_s9 = smov (!%p29_p0, %s31_s9), %s2027_s30 }
   0x7   : > { %p356_p3 = pnand %p1829_p1, %p355_p2  ;;  %p33_p4 = scmp.ge.s32.totalorder %s2755_s9, 2 }
   0x8   : > { %s2119_s10 = sshll.u32 (!%p356_p3), %s2015_s27, 3  ;;  %p446_p5 = scmp.lt.s32.totalorder (!%p356_p3), %s2019_s28, 1  ;;  %vm537_vm0 = vcmask (!%p356_p3), 31744   ;;  %vm540_vm1 = vcmask (!%p356_p3), 25600   ;;  %vm753_vm2 = vcmask (!%p356_p3), 1045504   ;;  %vm647_vm3 = vcmask (!%p356_p3), 1046528  }
   0x9   : > { %s2757_s9 = smov (%p33_p4, %s2755_s9), 0  ;;  %359 = sbr.rel (%p356_p3) target bundleno = 643 (0x283), region = 44 }
   0xa   : > { %p448_p6 = scmp.lt.s32.totalorder (!%p356_p3), %s2119_s10, 17  ;;  %s2033_s19 = smov (!%p356_p3), 12   ;;  %vm1345_vm4 = vcmask (!%p356_p3), 1043456   ;;  %vm736_vm5 = vcmask (!%p356_p3), 64544   ;;  %vm842_vm6 = vcmask (!%p356_p3), 97344   ;;  %vm909_vm7 = vcmask (!%p356_p3), 130144  }
   0xb   : > { %s2034_s20 = smov (!%p356_p3), 8   ;;  %s2035_s21 = smov (!%p356_p3), 4   ;;  %vm980_vm8 = vcmask (!%p356_p3), 162944   ;;  %vm1050_vm9 = vcmask (!%p356_p3), 195744   ;;  %vm1117_vm10 = vcmask (!%p356_p3), 228544   ;;  %vm1188_vm11 = vcmask (!%p356_p3), 261344  }
   0xc   : > { %s2036_s22 = smov (!%p356_p3), 16   ;;  %s2037_s23 = smov (!%p356_p3), 20   ;;  %vm1258_vm12 = vcmask (!%p356_p3), 294144   ;;  %vm1296_vm13 = vcmask (!%p356_p3), 293888   ;;  %vm1494_vm14 = vcmask (!%p356_p3), 64512   ;;  %vm1548_vm15 = vcmask (!%p356_p3), 57344  }
   0xd   : > { %s2038_s24 = smov (!%p356_p3), 24   ;;  %s2040_s26 = smov (!%p356_p3), 32  }
   0xe   : > { %p501_p10 = scmp.lt.s32.totalorder (!%p356_p3), %s2015_s27, 1 }
  0x10   : > { %s2759_s28 = smov (!%p446_p5, %s2019_s28), 1 }
  0x11   : > { %s449_s11 = scalar_select %p448_p6, %s2119_s10, 17 }
  0x12   : > { %s2126_s12 = smul.u32 54, %s2759_s28 }
  0x13   : > { %s1941_s13 = smul.u32 3, %s449_s11 }
  0x15   : > { %s452_s14 = sadd.s32 %s2126_s12, %s1941_s13 }
  0x16   : > { %s1831_s15 = sshll.u32 %s452_s14, 3  ;;  %s2039_s14 = smov 28  }
  0x17   : > { %s2132_s18 = scalar_lea.vmem %s2739_s0, %s1831_s15 }
  0x18   : > { %v517_v0 = vld [vmem:[%s2132_s18 + $0x20] sm:$0xff]  ;;  %v516_v1 = vld [vmem:[%s2132_s18 + $0x18] sm:$0xff]  ;;  %v514_v3 = vld [vmem:[%s2132_s18 + $0x8] sm:$0xff] }
  0x19   : > { %v513_v2 = vld [vmem:[%s2132_s18] sm:$0xff]  ;;  %543 = vst.msk [vmem:[#allocation2 + $0x20] sm:$0xff] %vm537_vm0, %v517_v0  ;;  %542 = vst.msk [vmem:[#allocation2 + $0x18] sm:$0xff] %vm537_vm0, %v516_v1  ;;  %v515_v4 = vld [vmem:[%s2132_s18 + $0x10] sm:$0x3] }
  0x1a   : > { %538 = vst.msk [vmem:[#allocation2] sm:$0xff] %vm537_vm0, %v513_v2  ;;  %v518_v5 = vld [vmem:[%s2132_s18 + $0x28] sm:$0x3]  ;;  %539 = vst.msk [vmem:[#allocation2 + $0x8] sm:$0xff] %vm537_vm0, %v514_v3  ;;  %v519_v6 = vld [vmem:[%s2132_s18 + $0x30] sm:$0xff] }
  0x1b   : > { %541 = vst.msk [vmem:[#allocation2 + $0x10] sm:$0x3] %vm540_vm1, %v515_v4  ;;  %544 = vst.msk [vmem:[#allocation2 + $0x28] sm:$0x3] %vm540_vm1, %v518_v5  ;;  %v520_v7 = vld [vmem:[%s2132_s18 + $0x38] sm:$0xff]  ;;  %v522_v9 = vld [vmem:[%s2132_s18 + $0x48] sm:$0xff] }
  0x1c   : > { %v521_v8 = vld [vmem:[%s2132_s18 + $0x40] sm:$0x3]  ;;  %545 = vst.msk [vmem:[#allocation2 + $0x30] sm:$0xff] %vm537_vm0, %v519_v6  ;;  %546 = vst.msk [vmem:[#allocation2 + $0x38] sm:$0xff] %vm537_vm0, %v520_v7  ;;  %v523_v10 = vld [vmem:[%s2132_s18 + $0x50] sm:$0xff] }
  0x1d   : > { %547 = vst.msk [vmem:[#allocation2 + $0x40] sm:$0x3] %vm540_vm1, %v521_v8  ;;  %v524_v11 = vld [vmem:[%s2132_s18 + $0x58] sm:$0x3]  ;;  %v525_v12 = vld [vmem:[%s2132_s18 + $0x60] sm:$0xff]  ;;  %v526_v13 = vld [vmem:[%s2132_s18 + $0x68] sm:$0xff] }
  0x1e   : > { %548 = vst.msk [vmem:[#allocation2 + $0x48] sm:$0xff] %vm537_vm0, %v522_v9  ;;  %549 = vst.msk [vmem:[#allocation2 + $0x50] sm:$0xff] %vm537_vm0, %v523_v10  ;;  %v527_v14 = vld [vmem:[%s2132_s18 + $0x70] sm:$0x3]  ;;  %v528_v15 = vld [vmem:[%s2132_s18 + $0x78] sm:$0xff] }
  0x1f   : > { %550 = vst.msk [vmem:[#allocation2 + $0x58] sm:$0x3] %vm540_vm1, %v524_v11  ;;  %553 = vst.msk [vmem:[#allocation2 + $0x70] sm:$0x3] %vm540_vm1, %v527_v14  ;;  %v529_v16 = vld [vmem:[%s2132_s18 + $0x80] sm:$0xff]  ;;  %v531_v53 = vld [vmem:[%s2132_s18 + $0x90] sm:$0xff] }
  0x20   : > { %551 = vst.msk [vmem:[#allocation2 + $0x60] sm:$0xff] %vm537_vm0, %v525_v12  ;;  %552 = vst.msk [vmem:[#allocation2 + $0x68] sm:$0xff] %vm537_vm0, %v526_v13  ;;  %v530_v17 = vld [vmem:[%s2132_s18 + $0x88] sm:$0x3]  ;;  %v2170_v18 = vld [vmem:[#allocation2 + $0x20] sm:$0xff] }
  0x21   : > { %554 = vst.msk [vmem:[#allocation2 + $0x78] sm:$0xff] %vm537_vm0, %v528_v15  ;;  %555 = vst.msk [vmem:[#allocation2 + $0x80] sm:$0xff] %vm537_vm0, %v529_v16  ;;  %v580_v19 = vld [vmem:[#allocation2 + $0x18] sm:$0xff]  ;;  %v577_v20 = vld [vmem:[#allocation2] sm:$0xff]  ;;  %863 = vrot.lane.b32.xlu1 %v2170_v18, %s2033_s19  ;;  %v654_v40 = vrot.slane %v2170_v18, 1  ;;  %v760_v48 = vrot.slane %v2170_v18, 2 }
  0x22   : > { %556 = vst.msk [vmem:[#allocation2 + $0x88] sm:$0x3] %vm540_vm1, %v530_v17  ;;  %861 = vrot.lane.b32.xlu0 %v580_v19, %s2033_s19  ;;  %v578_v21 = vld [vmem:[#allocation2 + $0x8] sm:$0xff]  ;;  %v754_v22 = vrot.slane %v577_v20, 2  ;;  %v648_v23 = vrot.slane %v577_v20, 1  ;;  %v653_v39 = vrot.slane %v580_v19, 1 }
  0x23   : > { %610 = vst.msk [vmem:[#allocation3 + $0x18] sm:$0xff] %vm537_vm0, %v2170_v18  ;;  %609 = vst.msk [vmem:[#allocation3 + $0x10] sm:$0xff] %vm537_vm0, %v580_v19  ;;  %v579_v24 = vld [vmem:[#allocation2 + $0x10] sm:$0x3]  ;;  %v755_v25 = vrot.slane %v578_v21, 2  ;;  %v649_v26 = vrot.slane %v578_v21, 1 }
  0x24   : > { %607 = vst.msk [vmem:[#allocation3] sm:$0xff] %vm537_vm0, %v577_v20  ;;  %608 = vst.msk [vmem:[#allocation3 + $0x8] sm:$0xff] %vm537_vm0, %v578_v21  ;;  %v757_v27 = vrot.slane %v579_v24, 2  ;;  %v651_v28 = vrot.slane %v579_v24, 1  ;;  %v2180_v29 = vld [vmem:[#allocation2 + $0x30] sm:$0xff]  ;;  %v2182_v30 = vld [vmem:[#allocation2 + $0x38] sm:$0xff]  ;;  %v655_v46 = vsel %vm647_vm3, %v653_v39, %v654_v40 }
  0x25   : > { %v756_v31 = vsel %vm753_vm2, %v754_v22, %v755_v25  ;;  %v650_v32 = vsel %vm647_vm3, %v648_v23, %v649_v26  ;;  %611 = vst.msk [vmem:[#allocation3 + $0x20] sm:$0xff] %vm537_vm0, %v2180_v29  ;;  %612 = vst.msk [vmem:[#allocation3 + $0x28] sm:$0xff] %vm537_vm0, %v2182_v30  ;;  %v2190_v33 = vld [vmem:[#allocation2 + $0x48] sm:$0xff]  ;;  %v2192_v34 = vld [vmem:[#allocation2 + $0x50] sm:$0xff]  ;;  %v759_v47 = vrot.slane %v580_v19, 2  ;;  %v658_v58 = vrot.slane %v2180_v29, 1 }
  0x26   : > { %794 = vrot.lane.b32.xlu1 %v756_v31, %s2034_s20  ;;  %688 = vrot.lane.b32.xlu0 %v650_v32, %s2035_s21  ;;  %613 = vst.msk [vmem:[#allocation3 + $0x30] sm:$0xff] %vm537_vm0, %v2190_v33  ;;  %614 = vst.msk [vmem:[#allocation3 + $0x38] sm:$0xff] %vm537_vm0, %v2192_v34  ;;  %v758_v37 = vsel %vm753_vm2, %v755_v25, %v757_v27  ;;  %v652_v38 = vsel %vm647_vm3, %v649_v26, %v651_v28  ;;  %v582_v41 = vld [vmem:[#allocation2 + $0x28] sm:$0x3]  ;;  %v769_v44 = vrot.slane %v2190_v33, 2  ;;  %v532_v55 = vld [vmem:[%s2132_s18 + $0x98] sm:$0xff] }
  0x27   : > { %v2200_v35 = vld [vmem:[#allocation2 + $0x60] sm:$0xff]  ;;  %v2202_v36 = vld [vmem:[#allocation2 + $0x68] sm:$0xff]  ;;  %v770_v45 = vrot.slane %v2192_v34, 2  ;;  %v656_v49 = vrot.slane %v582_v41, 1  ;;  %v761_v51 = vsel %vm753_vm2, %v759_v47, %v760_v48  ;;  %557 = vst.msk [vmem:[#allocation2 + $0x90] sm:$0xff] %vm537_vm0, %v531_v53  ;;  %v762_v54 = vrot.slane %v582_v41, 2 }
  0x28   : > { %615 = vst.msk [vmem:[#allocation3 + $0x40] sm:$0xff] %vm537_vm0, %v2200_v35  ;;  %616 = vst.msk [vmem:[#allocation3 + $0x48] sm:$0xff] %vm537_vm0, %v2202_v36  ;;  %v2211_v42 = vld [vmem:[#allocation2 + $0x78] sm:$0xff]  ;;  %v2213_v43 = vld [vmem:[#allocation2 + $0x80] sm:$0xff]  ;;  %v659_v59 = vrot.slane %v2182_v30, 1  ;;  %v764_v3 = vrot.slane %v2180_v29, 2 }
  0x29   : > { %617 = vst.msk [vmem:[#allocation3 + $0x50] sm:$0xff] %vm537_vm0, %v2211_v42  ;;  %618 = vst.msk [vmem:[#allocation3 + $0x58] sm:$0xff] %vm537_vm0, %v2213_v43  ;;  %v2228_v50 = vsel %vm753_vm2, %v769_v44, %v770_v45  ;;  %v657_v52 = vsel %vm647_vm3, %v654_v40, %v656_v49  ;;  %v763_v56 = vsel %vm753_vm2, %v760_v48, %v762_v54  ;;  %v533_v61 = vld [vmem:[%s2132_s18 + $0xa0] sm:$0x3]  ;;  %v1292_v1 = vld [vmem:[%s2742_s3 + $0x8] sm:$0xff]  ;;  %v765_v4 = vrot.slane %v2182_v30, 2 }
  0x2a   : > { %796 = vrot.lane.b32.xlu1 %v758_v37, %s2034_s20  ;;  %690 = vrot.lane.b32.xlu0 %v652_v38, %s2035_s21  ;;  %558 = vst.msk [vmem:[#allocation2 + $0x98] sm:$0xff] %vm537_vm0, %v532_v55  ;;  %v660_v62 = vsel %vm647_vm3, %v658_v58, %v659_v59  ;;  %v585_v63 = vld [vmem:[#allocation2 + $0x40] sm:$0x3]  ;;  %v1293_v6 = vld [vmem:[%s2742_s3 + $0x10] sm:$0xff]  ;;  %v1294_v7 = vld [vmem:[%s2742_s3 + $0x18] sm:$0xff]  ;;  %v663_v17 = vrot.slane %v2190_v33, 1 }
  0x2b   : > { %559 = vst.msk [vmem:[#allocation2 + $0xa0] sm:$0x3] %vm540_vm1, %v533_v61  ;;  %v1291_v0 = vld [vmem:[%s2742_s3] sm:$0xff]  ;;  %v661_v5 = vrot.slane %v585_v63, 1  ;;  %v1931_v8 = vpack.c.bf16 %v1294_v7, %v1293_v6  ;;  %v766_v9 = vsel %vm753_vm2, %v764_v3, %v765_v4  ;;  %v767_v12 = vrot.slane %v585_v63, 2  ;;  %v534_v14 = vld [vmem:[%s2132_s18 + $0xa8] sm:$0xff] }
  0x2c   : > { %v1927_v2 = vpack.c.bf16 %v1292_v1, %v1291_v0  ;;  %v1295_v11 = vld [vmem:[%s2742_s3 + $0x20] sm:$0xf]  ;;  %560 = vst.msk [vmem:[#allocation2 + $0xa8] sm:$0xff] %vm537_vm0, %v534_v14  ;;  %v535_v15 = vld [vmem:[%s2132_s18 + $0xb0] sm:$0xff]  ;;  %v664_v18 = vrot.slane %v2192_v34, 1  ;;  %v669_v31 = vrot.slane %v2202_v36, 1 }
  0x2d   : > { %v662_v10 = vsel %vm647_vm3, %v659_v59, %v661_v5  ;;  %v768_v13 = vsel %vm753_vm2, %v765_v4, %v767_v12  ;;  %561 = vst.msk [vmem:[#allocation2 + $0xb0] sm:$0xff] %vm537_vm0, %v535_v15  ;;  %v536_v20 = vld [vmem:[%s2132_s18 + $0xb8] sm:$0x3]  ;;  %s2327_s18 = sadd.s32 8, %s2119_s10  ;;  %v775_v37 = vrot.slane %v2202_v36, 2  ;;  %v779_v59 = vrot.slane %v2211_v42, 2 }
  0x2e   : > { %692 = vrot.lane.b32.xlu1 %v655_v46, %s2035_s21  ;;  %932 = vrot.lane.b32.xlu0 %v655_v46, %s2036_s22  ;;  %v2243_v57 = vld [vmem:[#allocation2 + $0x90] sm:$0xff]  ;;  %v665_v21 = vsel %vm647_vm3, %v663_v17, %v664_v18  ;;  %562 = vst.msk [vmem:[#allocation2 + $0xb8] sm:$0x3] %vm540_vm1, %v536_v20  ;;  %v588_v22 = vld [vmem:[#allocation2 + $0x58] sm:$0x3]  ;;  %p465_p7 = scmp.lt.s32.totalorder %s2327_s18, 17 }
  0x2f   : > { %619 = vst.msk [vmem:[#allocation3 + $0x60] sm:$0xff] %vm537_vm0, %v2243_v57  ;;  %1928 = vmatprep.subr.bf16.mxu0 %v1927_v2  ;;  %1935 = vmatprep.subr.bf16.mxu1 %v1927_v2  ;;  %v666_v23 = vrot.slane %v588_v22, 1  ;;  %v772_v25 = vrot.slane %v588_v22, 2  ;;  %v594_v58 = vld [vmem:[#allocation2 + $0x88] sm:$0x3]  ;;  %v780_v61 = vrot.slane %v2213_v43, 2 }
  0x30   : > { %1930 = vmatpush3.bf16.msra.mxu0 %v1927_v2  ;;  %1938 = vmatpush3.bf16.msra.mxu1 %v1927_v2  ;;  %s466_s15 = scalar_select %p465_p7, %s2327_s18, 17  ;;  %v782_v4 = vrot.slane %v594_v58, 2 }
  0x31   : > { %v2255_v60 = vld [vmem:[#allocation2 + $0x98] sm:$0xff]  ;;  %1932 = vmatprep.subr.bf16.mxu0 %v1931_v8  ;;  %1936 = vmatprep.subr.bf16.mxu1 %v1931_v8  ;;  %v667_v24 = vsel %vm647_vm3, %v664_v18, %v666_v23  ;;  %v773_v26 = vsel %vm753_vm2, %v770_v45, %v772_v25  ;;  %v781_v1 = vsel %vm753_vm2, %v779_v59, %v780_v61  ;;  %v784_v23 = vrot.slane %v2243_v57, 2 }
  0x32   : > { %1002 = vrot.lane.b32.xlu1 %v761_v51, %s2037_s23  ;;  %934 = vrot.lane.b32.xlu0 %v657_v52, %s2036_s22  ;;  %620 = vst.msk [vmem:[#allocation3 + $0x68] sm:$0xff] %vm537_vm0, %v2255_v60  ;;  %s1943_s16 = smul.u32 3, %s466_s15  ;;  %s476_s15 = sadd.s32 1, %s2327_s18  ;;  %v679_v14 = vrot.slane %v2255_v60, 1  ;;  %v597_v22 = vld [vmem:[#allocation2 + $0xa0] sm:$0x3] }
  0x33   : > { %v2300_v16 = vld [vmem:[#allocation2 + $0xa8] sm:$0xff]  ;;  %p479_p8 = scmp.lt.s32.totalorder %s476_s15, 17  ;;  %v681_v25 = vrot.slane %v597_v22, 1 }
  0x34   : > { %1934 = vmatpush3.bf16.msra.mxu0 %v1931_v8  ;;  %1939 = vmatpush3.bf16.msra.mxu1 %v1931_v8  ;;  %621 = vst.msk [vmem:[#allocation3 + $0x70] sm:$0xff] %vm537_vm0, %v2300_v16  ;;  %v2312_v19 = vld [vmem:[#allocation2 + $0xb0] sm:$0xff]  ;;  %s469_s10 = sadd.s32 %s1943_s16, %s2126_s12 }
  0x35   : > { %1901 = vmatprep.subr.msk.mxu0 %vm1345_vm4, %v1295_v11  ;;  %1937 = vmatprep.subr.msk.mxu1 %vm1345_vm4, %v1295_v11  ;;  %622 = vst.msk [vmem:[#allocation3 + $0x78] sm:$0xff] %vm537_vm0, %v2312_v19  ;;  %s1833_s17 = sshll.u32 %s469_s10, 3  ;;  %s2761_s15 = smov (!%p479_p8, %s476_s15), 17 }
  0x36   : > { %798 = vrot.lane.b32.xlu1 %v761_v51, %s2034_s20  ;;  %694 = vrot.lane.b32.xlu0 %v657_v52, %s2035_s21  ;;  %s471_s13 = scalar_lea.vmem %s2740_s1, %s1833_s17  ;;  %s1944_s16 = smul.u32 3, %s2761_s15  ;;  %v674_v51 = vrot.slane %v2213_v43, 1 }
  0x37   : > { %v563_v27 = vld [vmem:[%s471_s13] sm:$0xff]  ;;  %v564_v28 = vld [vmem:[%s471_s13 + $0x8] sm:$0xff] }
  0x38   : > { %1902 = vmatpush3.msk.msra.mxu0 %vm1345_vm4, %v1295_v11  ;;  %1940 = vmatpush3.msk.msra.mxu1 %vm1345_vm4, %v1295_v11  ;;  %567 = vst.msk [vmem:[#allocation2 + $0xc0] sm:$0xff] %vm537_vm0, %v563_v27  ;;  %568 = vst.msk [vmem:[#allocation2 + $0xc8] sm:$0xff] %vm537_vm0, %v564_v28  ;;  %s483_s10 = sadd.s32 %s1944_s16, %s2126_s12  ;;  %s1836_s12 = sshll.u32 %s2015_s27, 4 }
  0x39   : > { %s1835_s17 = sshll.u32 %s483_s10, 3  ;;  %p492_p9 = scmp.lt.s32.totalorder %s1836_s12, 31 }
  0x3a   : > { %1069 = vrot.lane.b32.xlu1 %v2180_v29, %s2038_s24  ;;  %1004 = vrot.lane.b32.xlu0 %v763_v56, %s2037_s23  ;;  %s485_s11 = scalar_lea.vmem %s2741_s2, %s1835_s17  ;;  %s2765_s27 = smov (!%p501_p10, %s2015_s27), 1 }
  0x3b   : > { %v570_v41 = vld [vmem:[%s485_s11] sm:$0xff]  ;;  %v572_v45 = vld [vmem:[%s485_s11 + $0x10] sm:$0x3]  ;;  %s2763_s12 = smov (!%p492_p9, %s1836_s12), 31 }
  0x3c   : > { %574 = vst.msk [vmem:[#allocation2 + $0xd8] sm:$0xff] %vm537_vm0, %v570_v41 }
  0x3d   : > { %576 = vst.msk [vmem:[#allocation2 + $0xe8] sm:$0x3] %vm540_vm1, %v572_v45  ;;  %v684_v45 = vrot.slane %v2312_v19, 1 }
  0x3e   : > { %865 = vrot.lane.b32.xlu1 %v2180_v29, %s2033_s19  ;;  %800 = vrot.lane.b32.xlu0 %v763_v56, %s2034_s20  ;;  %v565_v29 = vld [vmem:[%s471_s13 + $0x10] sm:$0x3] }
  0x3f   : > { %569 = vst.msk [vmem:[#allocation2 + $0xd0] sm:$0x3] %vm540_vm1, %v565_v29 }
  0x42   : > { %1140 = vrot.lane.b32.xlu1 %v660_v62, %s2039_s14  ;;  %1071 = vrot.lane.b32.xlu0 %v2182_v30, %s2038_s24 }
  0x46   : > { %936 = vrot.lane.b32.xlu1 %v660_v62, %s2036_s22  ;;  %867 = vrot.lane.b32.xlu0 %v2182_v30, %s2033_s19  ;;  %v668_v30 = vrot.slane %v2200_v35, 1 }
  0x48   : > { %v670_v32 = vsel %vm647_vm3, %v668_v30, %v669_v31 }
  0x4a   : > { %1210 = vrot.lane.b32.xlu1 %v766_v9, %s2040_s26  ;;  %1142 = vrot.lane.b32.xlu0 %v662_v10, %s2039_s14 }
  0x4e   : > { %938 = vrot.lane.b32.xlu1 %v662_v10, %s2036_s22  ;;  %696 = vrot.lane.b32.xlu0 %v660_v62, %s2035_s21  ;;  %v676_v62 = vrot.slane %v594_v58, 1 }
  0x50   : > { %v677_v2 = vsel %vm647_vm3, %v674_v51, %v676_v62 }
  0x52   : > { %1212 = vrot.lane.b32.xlu1 %v768_v13, %s2040_s26  ;;  %1006 = vrot.lane.b32.xlu0 %v766_v9, %s2037_s23 }
  0x56   : > { %802 = vrot.lane.b32.xlu1 %v766_v9, %s2034_s20  ;;  %698 = vrot.lane.b32.xlu0 %v662_v10, %s2035_s21 }
  0x5a   : > { %1073 = vrot.lane.b32.xlu1 %v2190_v33, %s2038_s24  ;;  %1008 = vrot.lane.b32.xlu0 %v768_v13, %s2037_s23 }
  0x5e   : > { %869 = vrot.lane.b32.xlu1 %v2190_v33, %s2033_s19  ;;  %804 = vrot.lane.b32.xlu0 %v768_v13, %s2034_s20  ;;  %v591_v33 = vld [vmem:[#allocation2 + $0x70] sm:$0x3]  ;;  %v678_v13 = vrot.slane %v2243_v57, 1 }
  0x5f   : > { %v671_v38 = vrot.slane %v591_v33, 1 }
  0x60   : > { %v680_v18 = vsel %vm647_vm3, %v678_v13, %v679_v14 }
  0x61   : > { %v672_v40 = vsel %vm647_vm3, %v669_v31, %v671_v38 }
  0x62   : > { %1144 = vrot.lane.b32.xlu1 %v665_v21, %s2039_s14  ;;  %1075 = vrot.lane.b32.xlu0 %v2192_v34, %s2038_s24 }
  0x66   : > { %940 = vrot.lane.b32.xlu1 %v665_v21, %s2036_s22  ;;  %871 = vrot.lane.b32.xlu0 %v2192_v34, %s2033_s19  ;;  %v774_v34 = vrot.slane %v2200_v35, 2 }
  0x68   : > { %v776_v39 = vsel %vm753_vm2, %v774_v34, %v775_v37 }
  0x6a   : > { %1214 = vrot.lane.b32.xlu1 %v2228_v50, %s2040_s26  ;;  %1146 = vrot.lane.b32.xlu0 %v667_v24, %s2039_s14 }
  0x6e   : > { %942 = vrot.lane.b32.xlu1 %v667_v24, %s2036_s22  ;;  %700 = vrot.lane.b32.xlu0 %v665_v21, %s2035_s21 }
  0x72   : > { %1216 = vrot.lane.b32.xlu1 %v773_v26, %s2040_s26  ;;  %1010 = vrot.lane.b32.xlu0 %v2228_v50, %s2037_s23 }
  0x76   : > { %806 = vrot.lane.b32.xlu1 %v2228_v50, %s2034_s20  ;;  %702 = vrot.lane.b32.xlu0 %v667_v24, %s2035_s21  ;;  %v673_v50 = vrot.slane %v2211_v42, 1  ;;  %v785_v24 = vrot.slane %v2255_v60, 2 }
  0x78   : > { %v675_v54 = vsel %vm647_vm3, %v673_v50, %v674_v51  ;;  %v786_v29 = vsel %vm753_vm2, %v784_v23, %v785_v24  ;;  %v600_v51 = vld [vmem:[#allocation2 + $0xb8] sm:$0x3] }
  0x7a   : > { %1077 = vrot.lane.b32.xlu1 %v2200_v35, %s2038_s24  ;;  %1012 = vrot.lane.b32.xlu0 %v773_v26, %s2037_s23 }
  0x7e   : > { %873 = vrot.lane.b32.xlu1 %v2200_v35, %s2033_s19  ;;  %808 = vrot.lane.b32.xlu0 %v773_v26, %s2034_s20  ;;  %v777_v35 = vrot.slane %v591_v33, 2 }
  0x80   : > { %v778_v44 = vsel %vm753_vm2, %v775_v37, %v777_v35 }
  0x82   : > { %1148 = vrot.lane.b32.xlu1 %v670_v32, %s2039_s14  ;;  %1079 = vrot.lane.b32.xlu0 %v2202_v36, %s2038_s24 }
  0x86   : > { %944 = vrot.lane.b32.xlu1 %v670_v32, %s2036_s22  ;;  %875 = vrot.lane.b32.xlu0 %v2202_v36, %s2033_s19  ;;  %v571_v36 = vld [vmem:[%s485_s11 + $0x8] sm:$0xff] }
  0x87   : > { %575 = vst.msk [vmem:[#allocation2 + $0xe0] sm:$0xff] %vm537_vm0, %v571_v36 }
  0x8a   : > { %1218 = vrot.lane.b32.xlu1 %v776_v39, %s2040_s26  ;;  %1150 = vrot.lane.b32.xlu0 %v672_v40, %s2039_s14 }
  0x8e   : > { %946 = vrot.lane.b32.xlu1 %v672_v40, %s2036_s22  ;;  %704 = vrot.lane.b32.xlu0 %v670_v32, %s2035_s21  ;;  %v787_v32 = vrot.slane %v597_v22, 2 }
  0x92   : > { %1220 = vrot.lane.b32.xlu1 %v778_v44, %s2040_s26  ;;  %1014 = vrot.lane.b32.xlu0 %v776_v39, %s2037_s23 }
  0x93   : > { %v864_v46 = vpop.permute.xlu1 %863 }
  0x94   : > { %v862_v47 = vpop.permute.xlu0 %861 }
  0x96   : > { %810 = vrot.lane.b32.xlu1 %v776_v39, %s2034_s20  ;;  %706 = vrot.lane.b32.xlu0 %v672_v40, %s2035_s21 }
  0x98   : > { %v795_v48 = vpop.permute.xlu1 %794  ;;  %v689_v49 = vpop.permute.xlu0 %688 }
  0x99   : > { %737 = vst.msk [vmem:[#allocation3] sm:$0xff] %vm736_vm5, %v689_v49 }
  0x9a   : > { %843 = vst.msk [vmem:[#allocation3] sm:$0xff] %vm842_vm6, %v795_v48  ;;  %1081 = vrot.lane.b32.xlu1 %v2211_v42, %s2038_s24  ;;  %1016 = vrot.lane.b32.xlu0 %v778_v44, %s2037_s23 }
  0x9b   : > { %910 = vst.msk [vmem:[#allocation3] sm:$0xff] %vm909_vm7, %v862_v47 }
  0x9c   : > { %v797_v52 = vpop.permute.xlu1 %796  ;;  %v691_v53 = vpop.permute.xlu0 %690 }
  0x9d   : > { %738 = vst.msk [vmem:[#allocation3 + $0x8] sm:$0xff] %vm736_vm5, %v691_v53  ;;  %v790_v53 = vrot.slane %v2312_v19, 2 }
  0x9e   : > { %844 = vst.msk [vmem:[#allocation3 + $0x8] sm:$0xff] %vm842_vm6, %v797_v52  ;;  %877 = vrot.lane.b32.xlu1 %v2211_v42, %s2033_s19  ;;  %812 = vrot.lane.b32.xlu0 %v778_v44, %s2034_s20  ;;  %v683_v44 = vrot.slane %v2300_v16, 1  ;;  %v789_v52 = vrot.slane %v2300_v16, 2 }
  0x9f   : > { %911 = vst.msk [vmem:[#allocation3 + $0x8] sm:$0xff] %vm909_vm7, %v864_v46 }
  0xa0   : > { %v693_v55 = vpop.permute.xlu1 %692  ;;  %v933_v56 = vpop.permute.xlu0 %932  ;;  %v685_v48 = vsel %vm647_vm3, %v683_v44, %v684_v45  ;;  %v791_v59 = vsel %vm753_vm2, %v789_v52, %v790_v53 }
  0xa1   : > { %739 = vst.msk [vmem:[#allocation3 + $0x10] sm:$0xff] %vm736_vm5, %v693_v55 }
  0xa2   : > { %981 = vst.msk [vmem:[#allocation3] sm:$0xff] %vm980_vm8, %v933_v56  ;;  %1152 = vrot.lane.b32.xlu1 %v675_v54, %s2039_s14  ;;  %1083 = vrot.lane.b32.xlu0 %v2213_v43, %s2038_s24 }
  0xa4   : > { %v1003_v63 = vpop.permute.xlu1 %1002  ;;  %v935_v0 = vpop.permute.xlu0 %934 }
  0xa5   : > { %1051 = vst.msk [vmem:[#allocation3] sm:$0xff] %vm1050_vm9, %v1003_v63  ;;  %v792_v63 = vrot.slane %v600_v51, 2 }
  0xa6   : > { %982 = vst.msk [vmem:[#allocation3 + $0x8] sm:$0xff] %vm980_vm8, %v935_v0  ;;  %948 = vrot.lane.b32.xlu1 %v675_v54, %s2036_s22  ;;  %879 = vrot.lane.b32.xlu0 %v2213_v43, %s2033_s19  ;;  %v783_v43 = vsel %vm753_vm2, %v780_v61, %v782_v4 }
  0xa8   : > { %v799_v3 = vpop.permute.xlu1 %798  ;;  %v695_v42 = vpop.permute.xlu0 %694 }
  0xa9   : > { %845 = vst.msk [vmem:[#allocation3 + $0x10] sm:$0xff] %vm842_vm6, %v799_v3 }
  0xaa   : > { %740 = vst.msk [vmem:[#allocation3 + $0x18] sm:$0xff] %vm736_vm5, %v695_v42  ;;  %1222 = vrot.lane.b32.xlu1 %v781_v1, %s2040_s26  ;;  %1154 = vrot.lane.b32.xlu0 %v677_v2, %s2039_s14 }
  0xac   : > { %v1070_v5 = vpop.permute.xlu1 %1069  ;;  %v1005_v6 = vpop.permute.xlu0 %1004 }
  0xad   : > { %1118 = vst.msk [vmem:[#allocation3] sm:$0xff] %vm1117_vm10, %v1070_v5 }
  0xae   : > { %1052 = vst.msk [vmem:[#allocation3 + $0x8] sm:$0xff] %vm1050_vm9, %v1005_v6  ;;  %950 = vrot.lane.b32.xlu1 %v677_v2, %s2036_s22  ;;  %708 = vrot.lane.b32.xlu0 %v675_v54, %s2035_s21  ;;  %v686_v54 = vrot.slane %v600_v51, 1  ;;  %v601_v6 = vld [vmem:[#allocation2 + $0xc0] sm:$0xff] }
  0xb0   : > { %v866_v7 = vpop.permute.xlu1 %865  ;;  %v801_v8 = vpop.permute.xlu0 %800 }
  0xb1   : > { %912 = vst.msk [vmem:[#allocation3 + $0x10] sm:$0xff] %vm909_vm7, %v866_v7 }
  0xb2   : > { %846 = vst.msk [vmem:[#allocation3 + $0x18] sm:$0xff] %vm842_vm6, %v801_v8  ;;  %1224 = vrot.lane.b32.xlu1 %v783_v43, %s2040_s26  ;;  %1018 = vrot.lane.b32.xlu0 %v781_v1, %s2037_s23  ;;  %v602_v8 = vld [vmem:[#allocation2 + $0xc8] sm:$0xff] }
  0xb4   : > { %v1141_v9 = vpop.permute.xlu1 %1140  ;;  %v1072_v10 = vpop.permute.xlu0 %1071 }
  0xb5   : > { %1189 = vst.msk [vmem:[#allocation3] sm:$0xff] %vm1188_vm11, %v1141_v9  ;;  %v927_v9 = vrot.slane %v601_v6, 1 }
  0xb6   : > { %1119 = vst.msk [vmem:[#allocation3 + $0x8] sm:$0xff] %vm1117_vm10, %v1072_v10  ;;  %814 = vrot.lane.b32.xlu1 %v781_v1, %s2034_s20  ;;  %710 = vrot.lane.b32.xlu0 %v677_v2, %s2035_s21  ;;  %v928_v10 = vrot.slane %v602_v8, 1 }
  0xb8   : > { %v937_v11 = vpop.permute.xlu1 %936  ;;  %v868_v12 = vpop.permute.xlu0 %867  ;;  %v929_v13 = vsel %vm647_vm3, %v927_v9, %v928_v10 }
  0xb9   : > { %983 = vst.msk [vmem:[#allocation3 + $0x10] sm:$0xff] %vm980_vm8, %v937_v11 }
  0xba   : > { %913 = vst.msk [vmem:[#allocation3 + $0x18] sm:$0xff] %vm909_vm7, %v868_v12  ;;  %1085 = vrot.lane.b32.xlu1 %v2243_v57, %s2038_s24  ;;  %1020 = vrot.lane.b32.xlu0 %v783_v43, %s2037_s23 }
  0xbc   : > { %v1211_v15 = vpop.permute.xlu1 %1210  ;;  %v1143_v17 = vpop.permute.xlu0 %1142 }
  0xbd   : > { %1259 = vst.msk [vmem:[#allocation3] sm:$0xff] %vm1258_vm12, %v1211_v15 }
  0xbe   : > { %1190 = vst.msk [vmem:[#allocation3 + $0x8] sm:$0xff] %vm1188_vm11, %v1143_v17  ;;  %881 = vrot.lane.b32.xlu1 %v2243_v57, %s2033_s19  ;;  %816 = vrot.lane.b32.xlu0 %v783_v43, %s2034_s20  ;;  %v682_v57 = vsel %vm647_vm3, %v679_v14, %v681_v25  ;;  %v603_v17 = vld [vmem:[#allocation2 + $0xd0] sm:$0x3] }
  0xc0   : > { %v939_v20 = vpop.permute.xlu1 %938  ;;  %v697_v21 = vpop.permute.xlu0 %696 }
  0xc1   : > { %984 = vst.msk [vmem:[#allocation3 + $0x18] sm:$0xff] %vm980_vm8, %v939_v20  ;;  %v998_v20 = vrot.slane %v602_v8, 2 }
  0xc2   : > { %741 = vst.msk [vmem:[#allocation3 + $0x20] sm:$0xff] %vm736_vm5, %v697_v21  ;;  %1156 = vrot.lane.b32.xlu1 %v680_v18, %s2039_s14  ;;  %1087 = vrot.lane.b32.xlu0 %v2255_v60, %s2038_s24  ;;  %v930_v21 = vrot.slane %v603_v17, 1 }
  0xc4   : > { %v1213_v26 = vpop.permute.xlu1 %1212  ;;  %v1007_v27 = vpop.permute.xlu0 %1006  ;;  %v1275_v28 = vld [vmem:[#allocation3] sm:$0xff]  ;;  %v931_v25 = vsel %vm647_vm3, %v928_v10, %v930_v21 }
  0xc5   : > { %1260 = vst.msk [vmem:[#allocation3 + $0x8] sm:$0xff] %vm1258_vm12, %v1213_v26  ;;  %1903 = vmatprep.mubr.msk.f32.mxu0 %vm1296_vm13, %v1275_v28 }
  0xc6   : > { %1053 = vst.msk [vmem:[#allocation3 + $0x10] sm:$0xff] %vm1050_vm9, %v1007_v27  ;;  %952 = vrot.lane.b32.xlu1 %v680_v18, %s2036_s22  ;;  %883 = vrot.lane.b32.xlu0 %v2255_v60, %s2033_s19  ;;  %v788_v60 = vsel %vm753_vm2, %v785_v24, %v787_v32 }
  0xc8   : > { %v803_v30 = vpop.permute.xlu1 %802  ;;  %v699_v31 = vpop.permute.xlu0 %698 }
  0xc9   : > { %847 = vst.msk [vmem:[#allocation3 + $0x20] sm:$0xff] %vm842_vm6, %v803_v30 }
  0xca   : > { %742 = vst.msk [vmem:[#allocation3 + $0x28] sm:$0xff] %vm736_vm5, %v699_v31  ;;  %1226 = vrot.lane.b32.xlu1 %v786_v29, %s2040_s26  ;;  %1158 = vrot.lane.b32.xlu0 %v682_v57, %s2039_s14 }
  0xcc   : > { %v1074_v33 = vpop.permute.xlu1 %1073  ;;  %v1009_v34 = vpop.permute.xlu0 %1008  ;;  %v1276_v37 = vld [vmem:[#allocation3 + $0x8] sm:$0xff] }
  0xcd   : > { %1120 = vst.msk [vmem:[#allocation3 + $0x10] sm:$0xff] %vm1117_vm10, %v1074_v33  ;;  %1904 = vmatmul.mubr.msk.f32.vlgmr.msra.gmra.mrb[0].mxu0 %vm1296_vm13, %v1276_v37  ;;  %v604_v37 = vld [vmem:[#allocation2 + $0xd8] sm:$0xff] }
  0xce   : > { %1054 = vst.msk [vmem:[#allocation3 + $0x18] sm:$0xff] %vm1050_vm9, %v1009_v34  ;;  %954 = vrot.lane.b32.xlu1 %v682_v57, %s2036_s22  ;;  %712 = vrot.lane.b32.xlu0 %v680_v18, %s2035_s21  ;;  %v997_v18 = vrot.slane %v601_v6, 2  ;;  %v1205_v44 = vrot.slane %v604_v37, 2 }
  0xd0   : > { %v870_v38 = vpop.permute.xlu1 %869  ;;  %v805_v39 = vpop.permute.xlu0 %804  ;;  %v999_v26 = vsel %vm753_vm2, %v997_v18, %v998_v20 }
  0xd1   : > { %914 = vst.msk [vmem:[#allocation3 + $0x20] sm:$0xff] %vm909_vm7, %v870_v38  ;;  %v606_v38 = vld [vmem:[#allocation2 + $0xe8] sm:$0x3] }
  0xd2   : > { %848 = vst.msk [vmem:[#allocation3 + $0x28] sm:$0xff] %vm842_vm6, %v805_v39  ;;  %1228 = vrot.lane.b32.xlu1 %v788_v60, %s2040_s26  ;;  %1022 = vrot.lane.b32.xlu0 %v786_v29, %s2037_s23  ;;  %v1135_v39 = vrot.slane %v604_v37, 1 }
  0xd4   : > { %v1145_v40 = vpop.permute.xlu1 %1144  ;;  %v1076_v35 = vpop.permute.xlu0 %1075 }
  0xd5   : > { %1191 = vst.msk [vmem:[#allocation3 + $0x10] sm:$0xff] %vm1188_vm11, %v1145_v40 }
  0xd6   : > { %1121 = vst.msk [vmem:[#allocation3 + $0x18] sm:$0xff] %vm1117_vm10, %v1076_v35  ;;  %818 = vrot.lane.b32.xlu1 %v786_v29, %s2034_s20  ;;  %714 = vrot.lane.b32.xlu0 %v682_v57, %s2035_s21  ;;  %v1000_v29 = vrot.slane %v603_v17, 2  ;;  %v1138_v35 = vrot.slane %v606_v38, 1 }
  0xd8   : > { %v941_v41 = vpop.permute.xlu1 %940  ;;  %v872_v36 = vpop.permute.xlu0 %871  ;;  %v1001_v32 = vsel %vm753_vm2, %v998_v20, %v1000_v29 }
  0xd9   : > { %985 = vst.msk [vmem:[#allocation3 + $0x20] sm:$0xff] %vm980_vm8, %v941_v41 }
  0xda   : > { %915 = vst.msk [vmem:[#allocation3 + $0x28] sm:$0xff] %vm909_vm7, %v872_v36  ;;  %1089 = vrot.lane.b32.xlu1 %v2300_v16, %s2038_s24  ;;  %1024 = vrot.lane.b32.xlu0 %v788_v60, %s2037_s23 }
  0xdc   : > { %v1215_v46 = vpop.permute.xlu1 %1214  ;;  %v1147_v47 = vpop.permute.xlu0 %1146 }
  0xdd   : > { %1261 = vst.msk [vmem:[#allocation3 + $0x10] sm:$0xff] %vm1258_vm12, %v1215_v46 }
  0xde   : > { %1192 = vst.msk [vmem:[#allocation3 + $0x18] sm:$0xff] %vm1188_vm11, %v1147_v47  ;;  %885 = vrot.lane.b32.xlu1 %v2300_v16, %s2033_s19  ;;  %820 = vrot.lane.b32.xlu0 %v788_v60, %s2034_s20  ;;  %v687_v16 = vsel %vm647_vm3, %v684_v45, %v686_v54  ;;  %v605_v60 = vld [vmem:[#allocation2 + $0xe0] sm:$0xff] }
  0xdf   : > { %v1136_v40 = vrot.slane %v605_v60, 1  ;;  %v1206_v45 = vrot.slane %v605_v60, 2 }
  0xe0   : > { %v943_v49 = vpop.permute.xlu1 %942  ;;  %v701_v50 = vpop.permute.xlu0 %700 }
  0xe1   : > { %986 = vst.msk [vmem:[#allocation3 + $0x28] sm:$0xff] %vm980_vm8, %v943_v49  ;;  %v1137_v46 = vsel %vm647_vm3, %v1135_v39, %v1136_v40  ;;  %v1139_v47 = vsel %vm647_vm3, %v1136_v40, %v1138_v35  ;;  %v1207_v51 = vsel %vm753_vm2, %v1205_v44, %v1206_v45 }
  0xe2   : > { %743 = vst.msk [vmem:[#allocation3 + $0x30] sm:$0xff] %vm736_vm5, %v701_v50  ;;  %1160 = vrot.lane.b32.xlu1 %v685_v48, %s2039_s14  ;;  %1091 = vrot.lane.b32.xlu0 %v2312_v19, %s2038_s24 }
  0xe4   : > { %v1217_v55 = vpop.permute.xlu1 %1216  ;;  %v1011_v56 = vpop.permute.xlu0 %1010  ;;  %v1277_v58 = vld [vmem:[#allocation3 + $0x10] sm:$0xff] }
  0xe5   : > { %1262 = vst.msk [vmem:[#allocation3 + $0x18] sm:$0xff] %vm1258_vm12, %v1217_v55  ;;  %1906 = vmatprep.mubr.msk.f32.mxu0 %vm1296_vm13, %v1277_v58 }
  0xe6   : > { %1055 = vst.msk [vmem:[#allocation3 + $0x20] sm:$0xff] %vm1050_vm9, %v1011_v56  ;;  %956 = vrot.lane.b32.xlu1 %v685_v48, %s2036_s22  ;;  %887 = vrot.lane.b32.xlu0 %v2312_v19, %s2033_s19  ;;  %v793_v19 = vsel %vm753_vm2, %v790_v53, %v792_v63 }
  0xe8   : > { %v807_v61 = vpop.permute.xlu1 %806  ;;  %v703_v62 = vpop.permute.xlu0 %702 }
  0xe9   : > { %849 = vst.msk [vmem:[#allocation3 + $0x30] sm:$0xff] %vm842_vm6, %v807_v61 }
  0xea   : > { %744 = vst.msk [vmem:[#allocation3 + $0x38] sm:$0xff] %vm736_vm5, %v703_v62  ;;  %1230 = vrot.lane.b32.xlu1 %v791_v59, %s2040_s26  ;;  %1162 = vrot.lane.b32.xlu0 %v687_v16, %s2039_s14 }
  0xec   : > { %v1078_v0 = vpop.permute.xlu1 %1077  ;;  %v1013_v1 = vpop.permute.xlu0 %1012  ;;  %v1278_v2 = vld [vmem:[#allocation3 + $0x18] sm:$0xff] }
  0xed   : > { %1122 = vst.msk [vmem:[#allocation3 + $0x20] sm:$0xff] %vm1117_vm10, %v1078_v0  ;;  %1907 = vmatmul.mubr.msk.f32.gmra.mrb[2].mxu0 %vm1296_vm13, %v1278_v2 }
  0xee   : > { %1056 = vst.msk [vmem:[#allocation3 + $0x28] sm:$0xff] %vm1050_vm9, %v1013_v1  ;;  %958 = vrot.lane.b32.xlu1 %v687_v16, %s2036_s22  ;;  %716 = vrot.lane.b32.xlu0 %v685_v48, %s2035_s21  ;;  %v1208_v48 = vrot.slane %v606_v38, 2 }
  0xf0   : > { %v874_v3 = vpop.permute.xlu1 %873  ;;  %v809_v42 = vpop.permute.xlu0 %808  ;;  %v1209_v52 = vsel %vm753_vm2, %v1206_v45, %v1208_v48 }
  0xf1   : > { %916 = vst.msk [vmem:[#allocation3 + $0x30] sm:$0xff] %vm909_vm7, %v874_v3 }
  0xf2   : > { %850 = vst.msk [vmem:[#allocation3 + $0x38] sm:$0xff] %vm842_vm6, %v809_v42  ;;  %1232 = vrot.lane.b32.xlu1 %v793_v19, %s2040_s26  ;;  %1026 = vrot.lane.b32.xlu0 %v791_v59, %s2037_s23 }
  0xf4   : > { %v1149_v4 = vpop.permute.xlu1 %1148  ;;  %v1080_v5 = vpop.permute.xlu0 %1079 }
  0xf5   : > { %1193 = vst.msk [vmem:[#allocation3 + $0x20] sm:$0xff] %vm1188_vm11, %v1149_v4 }
  0xf6   : > { %1123 = vst.msk [vmem:[#allocation3 + $0x28] sm:$0xff] %vm1117_vm10, %v1080_v5  ;;  %718 = vrot.lane.b32.xlu0 %v687_v16, %s2035_s21  ;;  %822 = vrot.lane.b32.xlu1 %v791_v59, %s2034_s20 }
  0xf8   : > { %v945_v43 = vpop.permute.xlu1 %944  ;;  %v876_v7 = vpop.permute.xlu0 %875 }
  0xf9   : > { %987 = vst.msk [vmem:[#allocation3 + $0x30] sm:$0xff] %vm980_vm8, %v945_v43 }
  0xfa   : > { %917 = vst.msk [vmem:[#allocation3 + $0x38] sm:$0xff] %vm909_vm7, %v876_v7  ;;  %1028 = vrot.lane.b32.xlu0 %v793_v19, %s2037_s23  ;;  %1093 = vrot.lane.b32.xlu1 %v601_v6, %s2038_s24 }
  0xfc   : > { %v1219_v11 = vpop.permute.xlu1 %1218  ;;  %v1151_v12 = vpop.permute.xlu0 %1150 }
  0xfd   : > { %1263 = vst.msk [vmem:[#allocation3 + $0x20] sm:$0xff] %vm1258_vm12, %v1219_v11 }
  0xfe   : > { %1194 = vst.msk [vmem:[#allocation3 + $0x28] sm:$0xff] %vm1188_vm11, %v1151_v12  ;;  %824 = vrot.lane.b32.xlu0 %v793_v19, %s2034_s20  ;;  %889 = vrot.lane.b32.xlu1 %v601_v6, %s2033_s19 }
 0x100   : > { %v947_v14 = vpop.permute.xlu1 %946  ;;  %v705_v15 = vpop.permute.xlu0 %704 }
 0x101   : > { %988 = vst.msk [vmem:[#allocation3 + $0x38] sm:$0xff] %vm980_vm8, %v947_v14 }
 0x102   : > { %745 = vst.msk [vmem:[#allocation3 + $0x40] sm:$0xff] %vm736_vm5, %v705_v15  ;;  %1095 = vrot.lane.b32.xlu0 %v602_v8, %s2038_s24  ;;  %1164 = vrot.lane.b32.xlu1 %v929_v13, %s2039_s14 }
 0x104   : > { %v1221_v22 = vpop.permute.xlu1 %1220  ;;  %v1015_v23 = vpop.permute.xlu0 %1014  ;;  %v1279_v24 = vld [vmem:[#allocation3 + $0x20] sm:$0xff] }
 0x105   : > { %1264 = vst.msk [vmem:[#allocation3 + $0x28] sm:$0xff] %vm1258_vm12, %v1221_v22  ;;  %1909 = vmatprep.mubr.msk.f32.mxu0 %vm1296_vm13, %v1279_v24 }
 0x106   : > { %1057 = vst.msk [vmem:[#allocation3 + $0x30] sm:$0xff] %vm1050_vm9, %v1015_v23  ;;  %891 = vrot.lane.b32.xlu0 %v602_v8, %s2033_s19  ;;  %960 = vrot.lane.b32.xlu1 %v929_v13, %s2036_s22  ;;  %s1837_s19 = sshll.u32 %s2759_s28, 5 }
 0x107   : > { %s495_s20 = sadd.s32 %s1837_s19, %s2763_s12 }
 0x108   : > { %v811_v27 = vpop.permute.xlu1 %810  ;;  %v707_v28 = vpop.permute.xlu0 %706  ;;  %s1838_s21 = sshll.u32 %s495_s20, 3 }
 0x109   : > { %851 = vst.msk [vmem:[#allocation3 + $0x40] sm:$0xff] %vm842_vm6, %v811_v27 }
 0x10a   : > { %746 = vst.msk [vmem:[#allocation3 + $0x48] sm:$0xff] %vm736_vm5, %v707_v28  ;;  %1166 = vrot.lane.b32.xlu0 %v931_v25, %s2039_s14  ;;  %1234 = vrot.lane.b32.xlu1 %v999_v26, %s2040_s26 }
 0x10c   : > { %v1082_v57 = vpop.permute.xlu1 %1081  ;;  %v1017_v30 = vpop.permute.xlu0 %1016  ;;  %v1280_v31 = vld [vmem:[#allocation3 + $0x28] sm:$0xff] }
 0x10d   : > { %1124 = vst.msk [vmem:[#allocation3 + $0x30] sm:$0xff] %vm1117_vm10, %v1082_v57  ;;  %1910 = vmatmul.mubr.msk.f32.gmra.mrb[4].mxu0 %vm1296_vm13, %v1280_v31 }
 0x10e   : > { %1058 = vst.msk [vmem:[#allocation3 + $0x38] sm:$0xff] %vm1050_vm9, %v1017_v30  ;;  %962 = vrot.lane.b32.xlu0 %v931_v25, %s2036_s22  ;;  %1030 = vrot.lane.b32.xlu1 %v999_v26, %s2037_s23 }
 0x110   : > { %v878_v33 = vpop.permute.xlu1 %877  ;;  %v813_v34 = vpop.permute.xlu0 %812 }
 0x111   : > { %918 = vst.msk [vmem:[#allocation3 + $0x40] sm:$0xff] %vm909_vm7, %v878_v33 }
 0x112   : > { %852 = vst.msk [vmem:[#allocation3 + $0x48] sm:$0xff] %vm842_vm6, %v813_v34  ;;  %1236 = vrot.lane.b32.xlu0 %v1001_v32, %s2040_s26  ;;  %1032 = vrot.lane.b32.xlu1 %v1001_v32, %s2037_s23 }
 0x114   : > { %v1153_v41 = vpop.permute.xlu1 %1152  ;;  %v1084_v36 = vpop.permute.xlu0 %1083 }
 0x115   : > { %1195 = vst.msk [vmem:[#allocation3 + $0x30] sm:$0xff] %vm1188_vm11, %v1153_v41 }
 0x116   : > { %1125 = vst.msk [vmem:[#allocation3 + $0x38] sm:$0xff] %vm1117_vm10, %v1084_v36  ;;  %1097 = vrot.lane.b32.xlu0 %v604_v37, %s2038_s24  ;;  %1099 = vrot.lane.b32.xlu1 %v605_v60, %s2038_s24  ;;  %s2649_s24 = scalar_lea.vmem %s2745_s6, %s1838_s21 }
 0x118   : > { %v949_v49 = vpop.permute.xlu1 %948  ;;  %v880_v50 = vpop.permute.xlu0 %879 }
 0x119   : > { %989 = vst.msk [vmem:[#allocation3 + $0x40] sm:$0xff] %vm980_vm8, %v949_v49 }
 0x11a   : > { %919 = vst.msk [vmem:[#allocation3 + $0x48] sm:$0xff] %vm909_vm7, %v880_v50  ;;  %1168 = vrot.lane.b32.xlu0 %v1137_v46, %s2039_s14  ;;  %1170 = vrot.lane.b32.xlu1 %v1139_v47, %s2039_s14  ;;  %s1839_s14 = sshll.u32 %s2759_s28, 1 }
 0x11c   : > { %v1223_v53 = vpop.permute.xlu1 %1222  ;;  %v1155_v54 = vpop.permute.xlu0 %1154 }
 0x11d   : > { %1265 = vst.msk [vmem:[#allocation3 + $0x30] sm:$0xff] %vm1258_vm12, %v1223_v53 }
 0x11e   : > { %1196 = vst.msk [vmem:[#allocation3 + $0x38] sm:$0xff] %vm1188_vm11, %v1155_v54  ;;  %1238 = vrot.lane.b32.xlu0 %v1207_v51, %s2040_s26  ;;  %1240 = vrot.lane.b32.xlu1 %v1209_v52, %s2040_s26  ;;  %s504_s26 = sadd.s32 %s1839_s14, %s2765_s27 }
 0x11f   : > { %s505_s16 = scalar_lea.vmem %s2746_s7, %s504_s26  ;;  %s512_s18 = scalar_lea.vmem %s2747_s8, %s504_s26 }
 0x120   : > { %v951_v55 = vpop.permute.xlu1 %950  ;;  %v709_v56 = vpop.permute.xlu0 %708 }
 0x121   : > { %990 = vst.msk [vmem:[#allocation3 + $0x48] sm:$0xff] %vm980_vm8, %v951_v55 }
 0x122   : > { %747 = vst.msk [vmem:[#allocation3 + $0x50] sm:$0xff] %vm736_vm5, %v709_v56 }
 0x124   : > { %v1225_v58 = vpop.permute.xlu1 %1224  ;;  %v1019_v59 = vpop.permute.xlu0 %1018  ;;  %v1281_v16 = vld [vmem:[#allocation3 + $0x30] sm:$0xff] }
 0x125   : > { %1266 = vst.msk [vmem:[#allocation3 + $0x38] sm:$0xff] %vm1258_vm12, %v1225_v58  ;;  %1912 = vmatprep.mubr.msk.f32.mxu0 %vm1296_vm13, %v1281_v16 }
 0x126   : > { %1059 = vst.msk [vmem:[#allocation3 + $0x40] sm:$0xff] %vm1050_vm9, %v1019_v59 }
 0x128   : > { %v815_v61 = vpop.permute.xlu1 %814  ;;  %v711_v62 = vpop.permute.xlu0 %710 }
 0x129   : > { %853 = vst.msk [vmem:[#allocation3 + $0x50] sm:$0xff] %vm842_vm6, %v815_v61 }
 0x12a   : > { %748 = vst.msk [vmem:[#allocation3 + $0x58] sm:$0xff] %vm736_vm5, %v711_v62 }
 0x12c   : > { %v1086_v63 = vpop.permute.xlu1 %1085  ;;  %v1021_v0 = vpop.permute.xlu0 %1020  ;;  %v1282_v1 = vld [vmem:[#allocation3 + $0x38] sm:$0xff] }
 0x12d   : > { %1126 = vst.msk [vmem:[#allocation3 + $0x40] sm:$0xff] %vm1117_vm10, %v1086_v63  ;;  %1913 = vmatmul.mubr.msk.f32.gmra.mrb[6].mxu0 %vm1296_vm13, %v1282_v1 }
 0x12e   : > { %1060 = vst.msk [vmem:[#allocation3 + $0x48] sm:$0xff] %vm1050_vm9, %v1021_v0 }
 0x130   : > { %v882_v2 = vpop.permute.xlu1 %881  ;;  %v817_v19 = vpop.permute.xlu0 %816 }
 0x131   : > { %920 = vst.msk [vmem:[#allocation3 + $0x50] sm:$0xff] %vm909_vm7, %v882_v2 }
 0x132   : > { %854 = vst.msk [vmem:[#allocation3 + $0x58] sm:$0xff] %vm842_vm6, %v817_v19 }
 0x134   : > { %v1157_v3 = vpop.permute.xlu1 %1156  ;;  %v1088_v42 = vpop.permute.xlu0 %1087 }
 0x135   : > { %1197 = vst.msk [vmem:[#allocation3 + $0x40] sm:$0xff] %vm1188_vm11, %v1157_v3 }
 0x136   : > { %1127 = vst.msk [vmem:[#allocation3 + $0x48] sm:$0xff] %vm1117_vm10, %v1088_v42 }
 0x138   : > { %v953_v4 = vpop.permute.xlu1 %952  ;;  %v884_v5 = vpop.permute.xlu0 %883 }
 0x139   : > { %991 = vst.msk [vmem:[#allocation3 + $0x50] sm:$0xff] %vm980_vm8, %v953_v4 }
 0x13a   : > { %921 = vst.msk [vmem:[#allocation3 + $0x58] sm:$0xff] %vm909_vm7, %v884_v5 }
 0x13c   : > { %v1227_v6 = vpop.permute.xlu1 %1226  ;;  %v1159_v43 = vpop.permute.xlu0 %1158 }
 0x13d   : > { %1267 = vst.msk [vmem:[#allocation3 + $0x40] sm:$0xff] %vm1258_vm12, %v1227_v6 }
 0x13e   : > { %1198 = vst.msk [vmem:[#allocation3 + $0x48] sm:$0xff] %vm1188_vm11, %v1159_v43 }
 0x140   : > { %v955_v7 = vpop.permute.xlu1 %954  ;;  %v713_v8 = vpop.permute.xlu0 %712 }
 0x141   : > { %992 = vst.msk [vmem:[#allocation3 + $0x58] sm:$0xff] %vm980_vm8, %v955_v7 }
 0x142   : > { %749 = vst.msk [vmem:[#allocation3 + $0x60] sm:$0xff] %vm736_vm5, %v713_v8 }
 0x144   : > { %v1229_v9 = vpop.permute.xlu1 %1228  ;;  %v1023_v10 = vpop.permute.xlu0 %1022  ;;  %v1283_v11 = vld [vmem:[#allocation3 + $0x40] sm:$0xff] }
 0x145   : > { %1268 = vst.msk [vmem:[#allocation3 + $0x48] sm:$0xff] %vm1258_vm12, %v1229_v9  ;;  %1915 = vmatprep.mubr.msk.f32.mxu1 %vm1296_vm13, %v1283_v11 }
 0x146   : > { %1061 = vst.msk [vmem:[#allocation3 + $0x50] sm:$0xff] %vm1050_vm9, %v1023_v10 }
 0x148   : > { %v819_v12 = vpop.permute.xlu1 %818  ;;  %v715_v13 = vpop.permute.xlu0 %714 }
 0x149   : > { %855 = vst.msk [vmem:[#allocation3 + $0x60] sm:$0xff] %vm842_vm6, %v819_v12 }
 0x14a   : > { %750 = vst.msk [vmem:[#allocation3 + $0x68] sm:$0xff] %vm736_vm5, %v715_v13 }
 0x14c   : > { %v1090_v14 = vpop.permute.xlu1 %1089  ;;  %v1025_v15 = vpop.permute.xlu0 %1024  ;;  %v1284_v17 = vld [vmem:[#allocation3 + $0x48] sm:$0xff] }
 0x14d   : > { %1128 = vst.msk [vmem:[#allocation3 + $0x50] sm:$0xff] %vm1117_vm10, %v1090_v14  ;;  %1916 = vmatmul.mubr.msk.f32.vlgmr.msra.gmra.mrb[0].mxu1 %vm1296_vm13, %v1284_v17 }
 0x14e   : > { %1062 = vst.msk [vmem:[#allocation3 + $0x58] sm:$0xff] %vm1050_vm9, %v1025_v15 }
 0x150   : > { %v886_v18 = vpop.permute.xlu1 %885  ;;  %v821_v20 = vpop.permute.xlu0 %820 }
 0x151   : > { %922 = vst.msk [vmem:[#allocation3 + $0x60] sm:$0xff] %vm909_vm7, %v886_v18 }
 0x152   : > { %856 = vst.msk [vmem:[#allocation3 + $0x68] sm:$0xff] %vm842_vm6, %v821_v20 }
 0x154   : > { %v1161_v21 = vpop.permute.xlu1 %1160  ;;  %v1092_v22 = vpop.permute.xlu0 %1091 }
 0x155   : > { %1199 = vst.msk [vmem:[#allocation3 + $0x50] sm:$0xff] %vm1188_vm11, %v1161_v21 }
 0x156   : > { %1129 = vst.msk [vmem:[#allocation3 + $0x58] sm:$0xff] %vm1117_vm10, %v1092_v22 }
 0x158   : > { %v957_v23 = vpop.permute.xlu1 %956  ;;  %v888_v24 = vpop.permute.xlu0 %887 }
 0x159   : > { %993 = vst.msk [vmem:[#allocation3 + $0x60] sm:$0xff] %vm980_vm8, %v957_v23 }
 0x15a   : > { %923 = vst.msk [vmem:[#allocation3 + $0x68] sm:$0xff] %vm909_vm7, %v888_v24 }
 0x15c   : > { %v1231_v25 = vpop.permute.xlu1 %1230  ;;  %v1163_v26 = vpop.permute.xlu0 %1162 }
 0x15d   : > { %1269 = vst.msk [vmem:[#allocation3 + $0x50] sm:$0xff] %vm1258_vm12, %v1231_v25 }
 0x15e   : > { %1200 = vst.msk [vmem:[#allocation3 + $0x58] sm:$0xff] %vm1188_vm11, %v1163_v26 }
 0x160   : > { %v959_v27 = vpop.permute.xlu1 %958  ;;  %v717_v28 = vpop.permute.xlu0 %716 }
 0x161   : > { %994 = vst.msk [vmem:[#allocation3 + $0x68] sm:$0xff] %vm980_vm8, %v959_v27 }
 0x162   : > { %751 = vst.msk [vmem:[#allocation3 + $0x70] sm:$0xff] %vm736_vm5, %v717_v28 }
 0x164   : > { %v1233_v29 = vpop.permute.xlu1 %1232  ;;  %v1027_v57 = vpop.permute.xlu0 %1026  ;;  %v1285_v30 = vld [vmem:[#allocation3 + $0x50] sm:$0xff] }
 0x165   : > { %1270 = vst.msk [vmem:[#allocation3 + $0x58] sm:$0xff] %vm1258_vm12, %v1233_v29  ;;  %1918 = vmatprep.mubr.msk.f32.mxu1 %vm1296_vm13, %v1285_v30 }
 0x166   : > { %1063 = vst.msk [vmem:[#allocation3 + $0x60] sm:$0xff] %vm1050_vm9, %v1027_v57 }
 0x168   : > { %v719_v31 = vpop.permute.xlu0 %718  ;;  %v823_v32 = vpop.permute.xlu1 %822 }
 0x169   : > { %752 = vst.msk [vmem:[#allocation3 + $0x78] sm:$0xff] %vm736_vm5, %v719_v31 }
 0x16a   : > { %857 = vst.msk [vmem:[#allocation3 + $0x70] sm:$0xff] %vm842_vm6, %v823_v32 }
 0x16c   : > { %v1029_v33 = vpop.permute.xlu0 %1028  ;;  %v1094_v34 = vpop.permute.xlu1 %1093  ;;  %v1286_v37 = vld [vmem:[#allocation3 + $0x58] sm:$0xff] }
 0x16d   : > { %1064 = vst.msk [vmem:[#allocation3 + $0x68] sm:$0xff] %vm1050_vm9, %v1029_v33  ;;  %1919 = vmatmul.mubr.msk.f32.gmra.mrb[2].mxu1 %vm1296_vm13, %v1286_v37 }
 0x16e   : > { %1130 = vst.msk [vmem:[#allocation3 + $0x60] sm:$0xff] %vm1117_vm10, %v1094_v34 }
 0x170   : > { %v825_v60 = vpop.permute.xlu0 %824  ;;  %v890_v38 = vpop.permute.xlu1 %889 }
 0x171   : > { %858 = vst.msk [vmem:[#allocation3 + $0x78] sm:$0xff] %vm842_vm6, %v825_v60 }
 0x172   : > { %924 = vst.msk [vmem:[#allocation3 + $0x70] sm:$0xff] %vm909_vm7, %v890_v38 }
 0x174   : > { %v1096_v39 = vpop.permute.xlu0 %1095  ;;  %v1165_v40 = vpop.permute.xlu1 %1164 }
 0x175   : > { %1131 = vst.msk [vmem:[#allocation3 + $0x68] sm:$0xff] %vm1117_vm10, %v1096_v39 }
 0x176   : > { %1201 = vst.msk [vmem:[#allocation3 + $0x60] sm:$0xff] %vm1188_vm11, %v1165_v40 }
 0x178   : > { %v892_v35 = vpop.permute.xlu0 %891  ;;  %v961_v41 = vpop.permute.xlu1 %960 }
 0x179   : > { %925 = vst.msk [vmem:[#allocation3 + $0x78] sm:$0xff] %vm909_vm7, %v892_v35 }
 0x17a   : > { %995 = vst.msk [vmem:[#allocation3 + $0x70] sm:$0xff] %vm980_vm8, %v961_v41 }
 0x17c   : > { %v1167_v36 = vpop.permute.xlu0 %1166  ;;  %v1235_v44 = vpop.permute.xlu1 %1234 }
 0x17d   : > { %1202 = vst.msk [vmem:[#allocation3 + $0x68] sm:$0xff] %vm1188_vm11, %v1167_v36 }
 0x17e   : > { %1271 = vst.msk [vmem:[#allocation3 + $0x60] sm:$0xff] %vm1258_vm12, %v1235_v44 }
 0x180   : > { %v963_v45 = vpop.permute.xlu0 %962  ;;  %v1031_v46 = vpop.permute.xlu1 %1030 }
 0x181   : > { %996 = vst.msk [vmem:[#allocation3 + $0x78] sm:$0xff] %vm980_vm8, %v963_v45 }
 0x182   : > { %1065 = vst.msk [vmem:[#allocation3 + $0x70] sm:$0xff] %vm1050_vm9, %v1031_v46 }
 0x184   : > { %v1237_v47 = vpop.permute.xlu0 %1236  ;;  %v1033_v48 = vpop.permute.xlu1 %1032 }
 0x185   : > { %v1287_v49 = vld [vmem:[#allocation3 + $0x60] sm:$0xff]  ;;  %1272 = vst.msk [vmem:[#allocation3 + $0x68] sm:$0xff] %vm1258_vm12, %v1237_v47 }
 0x186   : > { %1066 = vst.msk [vmem:[#allocation3 + $0x78] sm:$0xff] %vm1050_vm9, %v1033_v48  ;;  %1921 = vmatprep.mubr.msk.f32.mxu1 %vm1296_vm13, %v1287_v49 }
 0x188   : > { %v1098_v50 = vpop.permute.xlu0 %1097  ;;  %v1100_v51 = vpop.permute.xlu1 %1099 }
 0x189   : > { %1132 = vst.msk [vmem:[#allocation3 + $0x70] sm:$0xff] %vm1117_vm10, %v1098_v50  ;;  %1133 = vst.msk [vmem:[#allocation3 + $0x78] sm:$0xff] %vm1117_vm10, %v1100_v51 }
 0x18c   : > { %v1169_v52 = vpop.permute.xlu0 %1168  ;;  %v1171_v53 = vpop.permute.xlu1 %1170  ;;  %v1288_v54 = vld [vmem:[#allocation3 + $0x68] sm:$0xff] }
 0x18d   : > { %1203 = vst.msk [vmem:[#allocation3 + $0x70] sm:$0xff] %vm1188_vm11, %v1169_v52  ;;  %1204 = vst.msk [vmem:[#allocation3 + $0x78] sm:$0xff] %vm1188_vm11, %v1171_v53  ;;  %1922 = vmatmul.mubr.msk.f32.gmra.mrb[4].mxu1 %vm1296_vm13, %v1288_v54 }
 0x190   : > { %v1239_v55 = vpop.permute.xlu0 %1238  ;;  %v1241_v56 = vpop.permute.xlu1 %1240 }
 0x191   : > { %1273 = vst.msk [vmem:[#allocation3 + $0x70] sm:$0xff] %vm1258_vm12, %v1239_v55  ;;  %1274 = vst.msk [vmem:[#allocation3 + $0x78] sm:$0xff] %vm1258_vm12, %v1241_v56 }
 0x198   : > { %v1289_v58 = vld [vmem:[#allocation3 + $0x70] sm:$0xff]  ;;  %v1290_v59 = vld [vmem:[#allocation3 + $0x78] sm:$0xff] }
 0x199   : > { %1924 = vmatprep.mubr.msk.f32.mxu1 %vm1296_vm13, %v1289_v58 }
 0x19a   : > { %1925 = vmatmul.mubr.msk.f32.gmra.mrb[6].mxu1 %vm1296_vm13, %v1290_v59 }
 0x1a0   : > { %v1905_v16 = vpop.f32.mrb[0].mxu0 }
 0x1a1   : > { %1496 = vst.msk [vmem:[%s2649_s24 + $0x8] sm:$0xff] %vm1494_vm14, %v1905_v16  ;;  %v1512_v61 = vsel %vm1494_vm14, %v1905_v16, 0.0  ;;  %v1551_v62 = vmul.f32 %v1905_v16, %v1905_v16  ;;  %v1415_v63 = vpop.f32.mrb[1].mxu0 }
 0x1a2   : > { %1495 = vst.msk [vmem:[%s2649_s24] sm:$0xff] %vm1494_vm14, %v1415_v63  ;;  %v1511_v0 = vsel %vm1494_vm14, %v1415_v63, 0.0  ;;  %v1550_v1 = vmul.f32 %v1415_v63, %v1415_v63 }
 0x1a3   : > { %v1567_v2 = vsel %vm1494_vm14, %v1551_v62, 0.0  ;;  %v1513_v19 = vadd.f32 %v1512_v61, %v1511_v0 }
 0x1a4   : > { %v1566_v3 = vsel %vm1494_vm14, %v1550_v1, 0.0 }
 0x1a5   : > { %v1568_v42 = vadd.f32 %v1567_v2, %v1566_v3 }
 0x1c0   : > { %v1908_v4 = vpop.f32.mrb[2].mxu0 }
 0x1c1   : > { %1498 = vst.msk [vmem:[%s2649_s24 + $0x18] sm:$0xff] %vm1494_vm14, %v1908_v4  ;;  %v1425_v5 = vpop.f32.mrb[3].mxu0  ;;  %v1553_v6 = vmul.f32 %v1908_v4, %v1908_v4  ;;  %v1516_v9 = vsel %vm1494_vm14, %v1908_v4, 0.0 }
 0x1c2   : > { %1497 = vst.msk [vmem:[%s2649_s24 + $0x10] sm:$0xff] %vm1494_vm14, %v1425_v5  ;;  %v1514_v43 = vsel %vm1494_vm14, %v1425_v5, 0.0  ;;  %v1552_v7 = vmul.f32 %v1425_v5, %v1425_v5 }
 0x1c3   : > { %v1515_v8 = vadd.f32 %v1514_v43, %v1513_v19  ;;  %v1571_v13 = vsel %vm1494_vm14, %v1553_v6, 0.0 }
 0x1c4   : > { %v1569_v10 = vsel %vm1494_vm14, %v1552_v7, 0.0 }
 0x1c5   : > { %v1570_v11 = vadd.f32 %v1569_v10, %v1568_v42  ;;  %v1517_v12 = vadd.f32 %v1516_v9, %v1515_v8 }
 0x1c7   : > { %v1572_v14 = vadd.f32 %v1571_v13, %v1570_v11 }
 0x1e0   : > { %v1911_v15 = vpop.f32.mrb[4].mxu0 }
 0x1e1   : > { %1500 = vst.msk [vmem:[%s2649_s24 + $0x28] sm:$0xff] %vm1494_vm14, %v1911_v15  ;;  %v1435_v17 = vpop.f32.mrb[5].mxu0  ;;  %v1555_v18 = vmul.f32 %v1911_v15, %v1911_v15  ;;  %v1520_v23 = vsel %vm1494_vm14, %v1911_v15, 0.0 }
 0x1e2   : > { %1499 = vst.msk [vmem:[%s2649_s24 + $0x20] sm:$0xff] %vm1494_vm14, %v1435_v17  ;;  %v1518_v20 = vsel %vm1494_vm14, %v1435_v17, 0.0  ;;  %v1554_v21 = vmul.f32 %v1435_v17, %v1435_v17 }
 0x1e3   : > { %v1519_v22 = vadd.f32 %v1518_v20, %v1517_v12  ;;  %v1575_v27 = vsel %vm1494_vm14, %v1555_v18, 0.0 }
 0x1e4   : > { %v1573_v24 = vsel %vm1494_vm14, %v1554_v21, 0.0 }
 0x1e5   : > { %v1574_v25 = vadd.f32 %v1573_v24, %v1572_v14  ;;  %v1521_v26 = vadd.f32 %v1520_v23, %v1519_v22 }
 0x1e7   : > { %v1576_v28 = vadd.f32 %v1575_v27, %v1574_v25 }
 0x200   : > { %v1914_v29 = vpop.f32.mrb[6].mxu0 }
 0x201   : > { %1502 = vst.msk [vmem:[%s2649_s24 + $0x38] sm:$0xff] %vm1494_vm14, %v1914_v29  ;;  %v1445_v57 = vpop.f32.mrb[7].mxu0  ;;  %v1557_v30 = vmul.f32 %v1914_v29, %v1914_v29  ;;  %v1524_v34 = vsel %vm1494_vm14, %v1914_v29, 0.0 }
 0x202   : > { %1501 = vst.msk [vmem:[%s2649_s24 + $0x30] sm:$0xff] %vm1494_vm14, %v1445_v57  ;;  %v1522_v31 = vsel %vm1494_vm14, %v1445_v57, 0.0  ;;  %v1556_v32 = vmul.f32 %v1445_v57, %v1445_v57 }
 0x203   : > { %v1523_v33 = vadd.f32 %v1522_v31, %v1521_v26  ;;  %v1579_v39 = vsel %vm1494_vm14, %v1557_v30, 0.0 }
 0x204   : > { %v1577_v37 = vsel %vm1494_vm14, %v1556_v32, 0.0 }
 0x205   : > { %v1525_v60 = vadd.f32 %v1524_v34, %v1523_v33  ;;  %v1578_v38 = vadd.f32 %v1577_v37, %v1576_v28 }
 0x207   : > { %v1580_v40 = vadd.f32 %v1579_v39, %v1578_v38 }
 0x220   : > { %v1917_v35 = vpop.f32.mrb[0].mxu1 }
 0x221   : > { %1504 = vst.msk [vmem:[%s2649_s24 + $0x48] sm:$0xff] %vm1494_vm14, %v1917_v35  ;;  %v1455_v41 = vpop.f32.mrb[1].mxu1  ;;  %v1559_v36 = vmul.f32 %v1917_v35, %v1917_v35  ;;  %v1528_v47 = vsel %vm1494_vm14, %v1917_v35, 0.0 }
 0x222   : > { %1503 = vst.msk [vmem:[%s2649_s24 + $0x40] sm:$0xff] %vm1494_vm14, %v1455_v41  ;;  %v1526_v44 = vsel %vm1494_vm14, %v1455_v41, 0.0  ;;  %v1558_v45 = vmul.f32 %v1455_v41, %v1455_v41 }
 0x223   : > { %v1527_v46 = vadd.f32 %v1526_v44, %v1525_v60  ;;  %v1583_v51 = vsel %vm1494_vm14, %v1559_v36, 0.0 }
 0x224   : > { %v1581_v48 = vsel %vm1494_vm14, %v1558_v45, 0.0 }
 0x225   : > { %v1582_v49 = vadd.f32 %v1581_v48, %v1580_v40  ;;  %v1529_v50 = vadd.f32 %v1528_v47, %v1527_v46 }
 0x227   : > { %v1584_v52 = vadd.f32 %v1583_v51, %v1582_v49 }
 0x240   : > { %v1920_v53 = vpop.f32.mrb[2].mxu1 }
 0x241   : > { %1506 = vst.msk [vmem:[%s2649_s24 + $0x58] sm:$0xff] %vm1494_vm14, %v1920_v53  ;;  %v1465_v54 = vpop.f32.mrb[3].mxu1  ;;  %v1561_v55 = vmul.f32 %v1920_v53, %v1920_v53  ;;  %v1532_v16 = vsel %vm1494_vm14, %v1920_v53, 0.0 }
 0x242   : > { %1505 = vst.msk [vmem:[%s2649_s24 + $0x50] sm:$0xff] %vm1494_vm14, %v1465_v54  ;;  %v1530_v56 = vsel %vm1494_vm14, %v1465_v54, 0.0  ;;  %v1560_v58 = vmul.f32 %v1465_v54, %v1465_v54 }
 0x243   : > { %v1531_v59 = vadd.f32 %v1530_v56, %v1529_v50  ;;  %v1587_v0 = vsel %vm1494_vm14, %v1561_v55, 0.0 }
 0x244   : > { %v1585_v61 = vsel %vm1494_vm14, %v1560_v58, 0.0 }
 0x245   : > { %v1586_v62 = vadd.f32 %v1585_v61, %v1584_v52  ;;  %v1533_v63 = vadd.f32 %v1532_v16, %v1531_v59 }
 0x247   : > { %v1588_v1 = vadd.f32 %v1587_v0, %v1586_v62 }
 0x260   : > { %v1923_v2 = vpop.f32.mrb[4].mxu1 }
 0x261   : > { %1508 = vst.msk [vmem:[%s2649_s24 + $0x68] sm:$0xff] %vm1494_vm14, %v1923_v2  ;;  %v1475_v19 = vpop.f32.mrb[5].mxu1  ;;  %v1563_v3 = vmul.f32 %v1923_v2, %v1923_v2  ;;  %v1536_v6 = vsel %vm1494_vm14, %v1923_v2, 0.0 }
 0x262   : > { %1507 = vst.msk [vmem:[%s2649_s24 + $0x60] sm:$0xff] %vm1494_vm14, %v1475_v19  ;;  %v1534_v42 = vsel %vm1494_vm14, %v1475_v19, 0.0  ;;  %v1562_v4 = vmul.f32 %v1475_v19, %v1475_v19 }
 0x263   : > { %v1535_v5 = vadd.f32 %v1534_v42, %v1533_v63  ;;  %v1591_v9 = vsel %vm1494_vm14, %v1563_v3, 0.0 }
 0x264   : > { %v1589_v43 = vsel %vm1494_vm14, %v1562_v4, 0.0 }
 0x265   : > { %v1590_v7 = vadd.f32 %v1589_v43, %v1588_v1  ;;  %v1537_v8 = vadd.f32 %v1536_v6, %v1535_v5 }
 0x267   : > { %v1592_v10 = vadd.f32 %v1591_v9, %v1590_v7 }
 0x26d   : > { %v1926_v11 = vpop.f32.mrb[6].mxu1 }
 0x26e   : > { %1510 = vst.msk [vmem:[%s2649_s24 + $0x78] sm:$0xff] %vm1494_vm14, %v1926_v11  ;;  %v1485_v12 = vpop.f32.mrb[7].mxu1  ;;  %v1565_v13 = vmul.f32 %v1926_v11, %v1926_v11  ;;  %v1540_v18 = vsel %vm1494_vm14, %v1926_v11, 0.0 }
 0x26f   : > { %1509 = vst.msk [vmem:[%s2649_s24 + $0x70] sm:$0xff] %vm1494_vm14, %v1485_v12  ;;  %v1538_v14 = vsel %vm1494_vm14, %v1485_v12, 0.0  ;;  %v1564_v15 = vmul.f32 %v1485_v12, %v1485_v12 }
 0x270   : > { %v1539_v17 = vadd.f32 %v1538_v14, %v1537_v8  ;;  %v1595_v23 = vsel %vm1494_vm14, %v1565_v13, 0.0 }
 0x271   : > { %v1593_v20 = vsel %vm1494_vm14, %v1564_v15, 0.0 }
 0x272   : > { %v1541_v21 = vadd.f32 %v1540_v18, %v1539_v17  ;;  %v1594_v22 = vadd.f32 %v1593_v20, %v1592_v10 }
 0x274   : > { %v1542_v24 = vrot.slane %v1541_v21, 4  ;;  %v1596_v25 = vadd.f32 %v1595_v23, %v1594_v22 }
 0x276   : > { %v1543_v26 = vadd.f32 %v1542_v24, %v1541_v21  ;;  %v1597_v27 = vrot.slane %v1596_v25, 4 }
 0x278   : > { %v1544_v28 = vrot.slane %v1543_v26, 2  ;;  %v1598_v29 = vadd.f32 %v1597_v27, %v1596_v25 }
 0x27a   : > { %v1545_v57 = vadd.f32 %v1544_v28, %v1543_v26  ;;  %v1599_v30 = vrot.slane %v1598_v29, 2 }
 0x27c   : > { %v1546_v31 = vrot.slane %v1545_v57, 1  ;;  %v1600_v32 = vadd.f32 %v1599_v30, %v1598_v29 }
 0x27e   : > { %v1547_v33 = vadd.f32 %v1546_v31, %v1545_v57  ;;  %v1601_v34 = vrot.slane %v1600_v32, 1 }
 0x280   : > { %1549 = vst.msk [vmem:[%s505_s16] sm:$0x1] %vm1548_vm15, %v1547_v33  ;;  %v1602_v37 = vadd.f32 %v1601_v34, %v1600_v32 }
 0x282   : > { %1603 = vst.msk [vmem:[%s512_s18] sm:$0x1] %vm1548_vm15, %v1602_v37 }
 0x283 PF: > { %s19_s4 = sadd.s32 1, %s2031_s4   ;;  %s2748_s27 = smov %s2023_s29 }
 0x284   : > { %p16_p11 = scmp.ge.s32.totalorder %s19_s4, 6   ;;  %s2749_s28 = smov %s2027_s30 }
 0x285   : > { %s2750_s29 = smov %s2753_s5  ;;  %s2751_s30 = smov %s2757_s9 }
 0x286   :  { %18 = sbr.rel (!%p16_p11) target bundleno = 3 (0x3), region = 106 }

// kernel: double_conv.4
= control target key start
LH: loop header
LB: loop body
LE: loop exit
PB: predicated region body
PF: predicated region fallthrough
CT: control target
= control target key end

     0   :  { %s2476_s27 = smov 0   ;;  %s2478_s28 = smov 0   ;;  %s3488_s0 = inlined_call_operand.vmem [shape: f32[2,18,18,8], index: 0, kind: input, shape index: {}, may-alias: {0,1,2}]   ;;  %s3489_s1 = inlined_call_operand.vmem [shape: f32[2,18,18,8], index: 1, kind: input, shape index: {}, may-alias: {0,1,2}]   ;;  %s3490_s2 = inlined_call_operand.vmem [shape: f32[2,18,18,8], index: 2, kind: input, shape index: {}, may-alias: {0,1,2}]   ;;  %s3491_s3 = inlined_call_operand.vmem [shape: f32[72,8], index: 3, kind: input, shape index: {}]   ;;  %s3492_s4 = inlined_call_operand.vmem [shape: f32[1,1,8], index: 4, kind: input, shape index: {}]   ;;  %s3493_s5 = inlined_call_operand.vmem [shape: f32[1,1,8], index: 5, kind: input, shape index: {}]   ;;  %s3494_s6 = inlined_call_operand.vmem [shape: f32[2,256,8], index: 6, kind: output, shape index: {0}]   ;;  %s3495_s7 = inlined_call_operand.vmem [shape: f32[2,2,1,8], index: 7, kind: output, shape index: {1}]   ;;  %s3496_s8 = inlined_call_operand.vmem [shape: f32[2,2,1,8], index: 8, kind: output, shape index: {2}]  }
   0x1   :  { %s2480_s29 = smov 0   ;;  %s2482_s30 = smov 0  }
   0x2   :  { %s2484_s9 = smov 0  }
   0x3 LB: > { %s28_s10 = sadd.s32 1, %s2413_s29  ;;  %s31_s11 = sadd.s32 1, %s2417_s30  ;;  %s2421_s9 = sphi %s2484_s9, %s19_s9   ;;  %s2417_s30 = sphi %s2482_s30, %s3544_s30   ;;  %s2413_s29 = sphi %s2480_s29, %s3543_s29   ;;  %s2409_s28 = sphi %s2478_s28, %s3542_s28   ;;  %s2405_s27 = sphi %s2476_s27, %s3541_s27  }
   0x4   : > { %p29_p0 = scmp.ge.s32.totalorder %s28_s10, 2  ;;  %p2193_p1 = scmp.ge.s32.totalorder %s2421_s9, 1 }
   0x5   : > { %p355_p2 = scmp.lt.s32.totalorder %s2421_s9, 5 }
   0x6   : > { %s3546_s10 = smov (%p29_p0, %s28_s10), 0  ;;  %s3548_s11 = smov (!%p29_p0, %s31_s11), %s2417_s30 }
   0x7   : > { %p356_p3 = pnand %p2193_p1, %p355_p2  ;;  %p33_p4 = scmp.ge.s32.totalorder %s3548_s11, 2 }
   0x8   : > { %s2509_s12 = sshll.u32 (!%p356_p3), %s2405_s27, 3  ;;  %p446_p5 = scmp.lt.s32.totalorder (!%p356_p3), %s2409_s28, 1  ;;  %vm537_vm0 = vcmask (!%p356_p3), 64512   ;;  %v588_v2 = vlaneseq (!%p356_p3)  ;;  %vm540_vm1 = vcmask (!%p356_p3), 58368   ;;  %v2559_v18 = vld [vmem:[%s3492_s4] ss:$0 sm:$0xff] (!%p356_p3) }
   0x9   : > { %s3550_s11 = smov (%p33_p4, %s3548_s11), 0  ;;  %359 = sbr.rel (%p356_p3) target bundleno = 658 (0x292), region = 44 }
   0xa   : > { %p448_p6 = scmp.lt.s32.totalorder (!%p356_p3), %s2509_s12, 17  ;;  %v2519_v0 = vstv (!%p356_p3), %s2509_s12  ;;  %v2543_v12 = vshrl.u32 (!%p356_p3), %v588_v2, 7  ;;  %v2577_v23 = vld [vmem:[%s3493_s5] ss:$0 sm:$0xff] (!%p356_p3)  ;;  %s2423_s25 = smov (!%p356_p3), 24  }
   0xb   : > { %v579_v1 = vadd.s32 (!%p356_p3), 1, %v2519_v0  ;;  %v580_v6 = vadd.s32 (!%p356_p3), 2, %v2519_v0  ;;  %v2553_v16 = vadd.s32 (!%p356_p3), 3, %v2519_v0  ;;  %vm592_vm8 = vcmp.ge.s32.totalorder (!%p356_p3), %v2519_v0, 1  ;;  %s2424_s26 = smov (!%p356_p3), 48   ;;  %s3499_s22 = smov (!%p356_p3), 40  }
   0xc   : > { %v2566_v21 = vadd.s32 (!%p356_p3), 16, %v2543_v12  ;;  %vm602_vm9 = vcmp.le.s32.totalorder (!%p356_p3), %v2519_v0, 16  ;;  %v2592_v27 = vadd.s32 (!%p356_p3), 4, %v2519_v0  ;;  %vm622_vm10 = vcmp.ge.s32.totalorder (!%p356_p3), %v2543_v12, 1  ;;  %s2430_s24 = smov (!%p356_p3), 64   ;;  %p501_p10 = scmp.lt.s32.totalorder (!%p356_p3), %s2405_s27, 1 }
   0xd   : > { %vm593_vm2 = vcmp.ge.s32.totalorder (!%p356_p3), %v579_v1, 1  ;;  %vm603_vm3 = vcmp.le.s32.totalorder (!%p356_p3), %v579_v1, 16  ;;  %vm594_vm4 = vcmp.ge.s32.totalorder (!%p356_p3), %v580_v6, 1  ;;  %vm604_vm5 = vcmp.le.s32.totalorder (!%p356_p3), %v580_v6, 16  ;;  %vm2612_vm14 = vmand (!%p356_p3), %vm592_vm8, %vm602_vm9 }
   0xe   : > { %vm2570_vm6 = vmand (!%p356_p3), %vm593_vm2, %vm603_vm3  ;;  %vm595_vm11 = vcmp.ge.s32.totalorder (!%p356_p3), %v2553_v16, 1  ;;  %vm605_vm12 = vcmp.le.s32.totalorder (!%p356_p3), %v2553_v16, 16  ;;  %vm657_vm13 = vcmp.le.s32.totalorder (!%p356_p3), %v2566_v21, 16  ;;  %vm596_vm2 = vcmp.ge.s32.totalorder (!%p356_p3), %v2592_v27, 1 }
   0xf   : > { %vm2585_vm7 = vmand (!%p356_p3), %vm594_vm4, %vm604_vm5 }
  0x10   : > { %s3552_s28 = smov (!%p446_p5, %s2409_s28), 1  ;;  %vm2623_vm15 = vmand %vm2570_vm6, %vm622_vm10 }
  0x11   : > { %s449_s13 = scalar_select %p448_p6, %s2509_s12, 17  ;;  %vm2635_vm3 = vmand %vm2585_vm7, %vm622_vm10 }
  0x12   : > { %s2516_s14 = smul.u32 54, %s3552_s28  ;;  %vm2647_vm4 = vmand %vm2612_vm14, %vm622_vm10 }
  0x13   : > { %s2331_s15 = smul.u32 3, %s449_s13  ;;  %vm2656_vm5 = vmand %vm2612_vm14, %vm657_vm13  ;;  %s3497_s13 = smov 16  }
  0x14   : > { %vm2665_vm8 = vmand %vm2570_vm6, %vm657_vm13 }
  0x15   : > { %s452_s16 = sadd.s32 %s2516_s14, %s2331_s15  ;;  %vm2711_vm9 = vmand %vm2585_vm7, %vm657_vm13  ;;  %s2426_s15 = smov 8  }
  0x16   : > { %s2195_s17 = sshll.u32 %s452_s16, 3  ;;  %s2427_s16 = smov 32  }
  0x17   : > { %s2525_s20 = scalar_lea.vmem %s3488_s0, %s2195_s17  ;;  %s2429_s17 = smov 56  }
  0x18   : > { %v517_v3 = vld [vmem:[%s2525_s20 + $0x20] sm:$0xff]  ;;  %v516_v4 = vld [vmem:[%s2525_s20 + $0x18] sm:$0xff]  ;;  %v519_v5 = vld [vmem:[%s2525_s20 + $0x30] sm:$0xff] }
  0x19   : > { %543 = vst.msk [vmem:[#allocation2 + $0x20] sm:$0xff] %vm537_vm0, %v517_v3  ;;  %542 = vst.msk [vmem:[#allocation2 + $0x18] sm:$0xff] %vm537_vm0, %v516_v4  ;;  %v520_v7 = vld [vmem:[%s2525_s20 + $0x38] sm:$0xff]  ;;  %v513_v8 = vld [vmem:[%s2525_s20] sm:$0xff] }
  0x1a   : > { %545 = vst.msk [vmem:[#allocation2 + $0x30] sm:$0xff] %vm537_vm0, %v519_v5  ;;  %v514_v9 = vld [vmem:[%s2525_s20 + $0x8] sm:$0xff]  ;;  %546 = vst.msk [vmem:[#allocation2 + $0x38] sm:$0xff] %vm537_vm0, %v520_v7  ;;  %v515_v10 = vld [vmem:[%s2525_s20 + $0x10] sm:$0x3] }
  0x1b   : > { %538 = vst.msk [vmem:[#allocation2] sm:$0xff] %vm537_vm0, %v513_v8  ;;  %539 = vst.msk [vmem:[#allocation2 + $0x8] sm:$0xff] %vm537_vm0, %v514_v9  ;;  %v518_v11 = vld [vmem:[%s2525_s20 + $0x28] sm:$0x3]  ;;  %v521_v13 = vld [vmem:[%s2525_s20 + $0x40] sm:$0x3] }
  0x1c   : > { %541 = vst.msk [vmem:[#allocation2 + $0x10] sm:$0x3] %vm540_vm1, %v515_v10  ;;  %544 = vst.msk [vmem:[#allocation2 + $0x28] sm:$0x3] %vm540_vm1, %v518_v11  ;;  %v522_v14 = vld [vmem:[%s2525_s20 + $0x48] sm:$0xff]  ;;  %v523_v15 = vld [vmem:[%s2525_s20 + $0x50] sm:$0xff] }
  0x1d   : > { %547 = vst.msk [vmem:[#allocation2 + $0x40] sm:$0x3] %vm540_vm1, %v521_v13  ;;  %v524_v17 = vld [vmem:[%s2525_s20 + $0x58] sm:$0x3]  ;;  %v525_v19 = vld [vmem:[%s2525_s20 + $0x60] sm:$0xff]  ;;  %v526_v20 = vld [vmem:[%s2525_s20 + $0x68] sm:$0xff] }
  0x1e   : > { %548 = vst.msk [vmem:[#allocation2 + $0x48] sm:$0xff] %vm537_vm0, %v522_v14  ;;  %549 = vst.msk [vmem:[#allocation2 + $0x50] sm:$0xff] %vm537_vm0, %v523_v15  ;;  %v527_v24 = vld [vmem:[%s2525_s20 + $0x70] sm:$0x3]  ;;  %v528_v25 = vld [vmem:[%s2525_s20 + $0x78] sm:$0xff] }
  0x1f   : > { %550 = vst.msk [vmem:[#allocation2 + $0x58] sm:$0x3] %vm540_vm1, %v524_v17  ;;  %553 = vst.msk [vmem:[#allocation2 + $0x70] sm:$0x3] %vm540_vm1, %v527_v24  ;;  %v529_v28 = vld [vmem:[%s2525_s20 + $0x80] sm:$0xff] }
  0x20   : > { %551 = vst.msk [vmem:[#allocation2 + $0x60] sm:$0xff] %vm537_vm0, %v525_v19  ;;  %552 = vst.msk [vmem:[#allocation2 + $0x68] sm:$0xff] %vm537_vm0, %v526_v20  ;;  %v530_v29 = vld [vmem:[%s2525_s20 + $0x88] sm:$0x3]  ;;  %v692_v30 = vld [vmem:[#allocation2 + $0x20] sm:$0xff] }
  0x21   : > { %554 = vst.msk [vmem:[#allocation2 + $0x78] sm:$0xff] %vm537_vm0, %v528_v25  ;;  %v691_v31 = vld [vmem:[#allocation2 + $0x18] sm:$0xff]  ;;  %v694_v32 = vld [vmem:[#allocation2 + $0x30] sm:$0xff]  ;;  %555 = vst.msk [vmem:[#allocation2 + $0x80] sm:$0xff] %vm537_vm0, %v529_v28  ;;  %v729_v33 = vmul.f32 %v2559_v18, %v692_v30 }
  0x22   : > { %556 = vst.msk [vmem:[#allocation2 + $0x88] sm:$0x3] %vm540_vm1, %v530_v29  ;;  %v728_v34 = vmul.f32 %v2559_v18, %v691_v31  ;;  %v731_v35 = vmul.f32 %v2559_v18, %v694_v32  ;;  %v695_v36 = vld [vmem:[#allocation2 + $0x38] sm:$0xff]  ;;  %v688_v37 = vld [vmem:[#allocation2] sm:$0xff]  ;;  %v689_v38 = vld [vmem:[#allocation2 + $0x8] sm:$0xff] }
  0x23   : > { %v732_v39 = vmul.f32 %v2559_v18, %v695_v36  ;;  %v725_v41 = vmul.f32 %v2559_v18, %v688_v37  ;;  %v726_v42 = vmul.f32 %v2559_v18, %v689_v38  ;;  %v690_v43 = vld [vmem:[#allocation2 + $0x10] sm:$0x3]  ;;  %v693_v44 = vld [vmem:[#allocation2 + $0x28] sm:$0x3]  ;;  %v766_v45 = vadd.f32 %v2577_v23, %v729_v33 }
  0x24   : > { %v765_v47 = vadd.f32 %v2577_v23, %v728_v34  ;;  %v768_v48 = vadd.f32 %v2577_v23, %v731_v35  ;;  %v727_v49 = vmul.f32 %v2559_v18, %v690_v43  ;;  %v730_v54 = vmul.f32 %v2559_v18, %v693_v44  ;;  %v696_v60 = vld [vmem:[#allocation2 + $0x40] sm:$0x3] }
  0x25   : > { %v769_v51 = vadd.f32 %v2577_v23, %v732_v39  ;;  %v762_v52 = vadd.f32 %v2577_v23, %v725_v41  ;;  %v763_v53 = vadd.f32 %v2577_v23, %v726_v42  ;;  %v796_v55 = vmax.f32 %v766_v45, 0.0  ;;  %v697_v61 = vld [vmem:[#allocation2 + $0x48] sm:$0xff]  ;;  %v698_v4 = vld [vmem:[#allocation2 + $0x50] sm:$0xff] }
  0x26   : > { %v795_v56 = vmax.f32 %v765_v47, 0.0  ;;  %v798_v57 = vmax.f32 %v768_v48, 0.0  ;;  %v764_v59 = vadd.f32 %v2577_v23, %v727_v49  ;;  %v767_v3 = vadd.f32 %v2577_v23, %v730_v54  ;;  %v699_v5 = vld [vmem:[#allocation2 + $0x58] sm:$0x3]  ;;  %v702_v36 = vld [vmem:[#allocation2 + $0x70] sm:$0x3] }
  0x27   : > { %v799_v62 = vmax.f32 %v769_v51, 0.0  ;;  %v792_v63 = vmax.f32 %v762_v52, 0.0  ;;  %v793_v1 = vmax.f32 %v763_v53, 0.0  ;;  %v886_v7 = vsel %vm2570_vm6, %v796_v55, 0.0  ;;  %v700_v11 = vld [vmem:[#allocation2 + $0x60] sm:$0xff]  ;;  %v701_v13 = vld [vmem:[#allocation2 + $0x68] sm:$0xff]  ;;  %vm2694_vm6 = vmand %vm595_vm11, %vm605_vm12 }
  0x28   : > { %v885_v8 = vsel %vm2623_vm15, %v795_v56, 0.0  ;;  %v888_v9 = vsel %vm2635_vm3, %v798_v57, 0.0  ;;  %v794_v10 = vmax.f32 %v764_v59, 0.0  ;;  %916 = vst.msk [vmem:[#allocation2 + $0x20] sm:$0xff] %vm537_vm0, %v886_v7  ;;  %v797_v19 = vmax.f32 %v767_v3, 0.0  ;;  %vm2723_vm12 = vmand %vm2694_vm6, %vm622_vm10  ;;  %v703_v26 = vld [vmem:[#allocation2 + $0x78] sm:$0xff] }
  0x29   : > { %915 = vst.msk [vmem:[#allocation2 + $0x18] sm:$0xff] %vm537_vm0, %v885_v8  ;;  %918 = vst.msk [vmem:[#allocation2 + $0x30] sm:$0xff] %vm537_vm0, %v888_v9  ;;  %v889_v14 = vsel %vm2585_vm7, %v799_v62, 0.0  ;;  %v882_v15 = vsel %vm2647_vm4, %v792_v63, 0.0  ;;  %v883_v17 = vsel %vm2612_vm14, %v793_v1, 0.0  ;;  %v733_v22 = vmul.f32 %v2559_v18, %v696_v60  ;;  %v704_v47 = vld [vmem:[#allocation2 + $0x80] sm:$0xff] }
  0x2a   : > { %919 = vst.msk [vmem:[#allocation2 + $0x38] sm:$0xff] %vm537_vm0, %v889_v14  ;;  %912 = vst.msk [vmem:[#allocation2] sm:$0xff] %vm537_vm0, %v882_v15  ;;  %v884_v20 = vsel %vm2656_vm5, %v794_v10, 0.0  ;;  %v734_v25 = vmul.f32 %v2559_v18, %v697_v61  ;;  %v735_v28 = vmul.f32 %v2559_v18, %v698_v4  ;;  %v887_v29 = vsel %vm2665_vm8, %v797_v19, 0.0  ;;  %v531_v62 = vld [vmem:[%s2525_s20 + $0x90] sm:$0xff]  ;;  %v532_v10 = vld [vmem:[%s2525_s20 + $0x98] sm:$0xff] }
  0x2b   : > { %913 = vst.msk [vmem:[#allocation2 + $0x8] sm:$0xff] %vm537_vm0, %v883_v17  ;;  %v736_v30 = vmul.f32 %v2559_v18, %v699_v5  ;;  %v737_v31 = vmul.f32 %v2559_v18, %v700_v11  ;;  %v738_v32 = vmul.f32 %v2559_v18, %v701_v13  ;;  %v770_v33 = vadd.f32 %v2577_v23, %v733_v22 }
  0x2c   : > { %914 = vst.msk [vmem:[#allocation2 + $0x10] sm:$0x3] %vm540_vm1, %v884_v20  ;;  %917 = vst.msk [vmem:[#allocation2 + $0x28] sm:$0x3] %vm540_vm1, %v887_v29  ;;  %v771_v34 = vadd.f32 %v2577_v23, %v734_v25  ;;  %v772_v35 = vadd.f32 %v2577_v23, %v735_v28  ;;  %vm606_vm11 = vcmp.le.s32.totalorder %v2592_v27, 16  ;;  %v583_v41 = vadd.s32 5, %v2519_v0 }
  0x2d   : > { %v800_v38 = vmax.f32 %v770_v33, 0.0  ;;  %v773_v42 = vadd.f32 %v2577_v23, %v736_v30  ;;  %vm2731_vm7 = vmand %vm596_vm2, %vm606_vm11  ;;  %v774_v44 = vadd.f32 %v2577_v23, %v737_v31  ;;  %v775_v45 = vadd.f32 %v2577_v23, %v738_v32  ;;  %557 = vst.msk [vmem:[#allocation2 + $0x90] sm:$0xff] %vm537_vm0, %v531_v62  ;;  %v705_v32 = vld [vmem:[#allocation2 + $0x88] sm:$0x3] }
  0x2e   : > { %v801_v39 = vmax.f32 %v771_v34, 0.0  ;;  %v802_v40 = vmax.f32 %v772_v35, 0.0  ;;  %v739_v46 = vmul.f32 %v2559_v18, %v702_v36  ;;  %v740_v53 = vmul.f32 %v2559_v18, %v703_v26  ;;  %vm2778_vm2 = vmand %vm2694_vm6, %vm657_vm13  ;;  %558 = vst.msk [vmem:[#allocation2 + $0x98] sm:$0xff] %vm537_vm0, %v532_v10 }
  0x2f   : > { %v2738_v48 = vld [vmem:[#allocation2 + $0x20] sm:$0xff]  ;;  %v890_v27 = vsel %vm2711_vm9, %v800_v38, 0.0  ;;  %vm597_vm14 = vcmp.ge.s32.totalorder %v583_v41, 1  ;;  %vm607_vm15 = vcmp.le.s32.totalorder %v583_v41, 16  ;;  %v741_v57 = vmul.f32 %v2559_v18, %v704_v47  ;;  %vm2787_vm3 = vmand %vm2731_vm7, %vm622_vm10 }
  0x30   : > { %v2740_v49 = vld [vmem:[#allocation2 + $0x18] sm:$0xff]  ;;  %v2742_v50 = vld [vmem:[#allocation2 + $0x30] sm:$0xff]  ;;  %v891_v51 = vsel %vm2723_vm12, %v801_v39, 0.0  ;;  %v892_v52 = vsel %vm2694_vm6, %v802_v40, 0.0  ;;  %1228 = vrot.lane.b32.xlu1 %v2738_v48, %s2423_s25  ;;  %975 = vst.msk [vmem:[#allocation3 + $0x18] sm:$0xff] %vm537_vm0, %v2738_v48  ;;  %v803_v59 = vmax.f32 %v773_v42, 0.0  ;;  %v776_v1 = vadd.f32 %v2577_v23, %v739_v46  ;;  %vm2800_vm5 = vmand %vm597_vm14, %vm607_vm15 }
  0x31   : > { %1226 = vrot.lane.b32.xlu0 %v2740_v49, %s2423_s25  ;;  %974 = vst.msk [vmem:[#allocation3 + $0x10] sm:$0xff] %vm537_vm0, %v2740_v49  ;;  %976 = vst.msk [vmem:[#allocation3 + $0x20] sm:$0xff] %vm537_vm0, %v2742_v50  ;;  %v2761_v54 = vld [vmem:[#allocation2 + $0x38] sm:$0xff]  ;;  %v942_v55 = vld [vmem:[#allocation2] sm:$0xff]  ;;  %v804_v60 = vmax.f32 %v774_v44, 0.0  ;;  %v805_v61 = vmax.f32 %v775_v45, 0.0  ;;  %v777_v2 = vadd.f32 %v2577_v23, %v740_v53  ;;  %v778_v9 = vadd.f32 %v2577_v23, %v741_v57 }
  0x32   : > { %v2763_v56 = vld [vmem:[#allocation2 + $0x8] sm:$0xff]  ;;  %920 = vst.msk [vmem:[#allocation2 + $0x40] sm:$0x3] %vm540_vm1, %v890_v27  ;;  %vm1118_vm4 = vcmask 1045504   ;;  %v1119_v3 = vrot.slane %v942_v55, 2  ;;  %v1013_v6 = vrot.slane %v942_v55, 1  ;;  %vm2818_vm6 = vmand %vm2731_vm7, %vm657_vm13  ;;  %v742_v36 = vmul.f32 %v2559_v18, %v705_v32 }
  0x33   : > { %921 = vst.msk [vmem:[#allocation2 + $0x48] sm:$0xff] %vm537_vm0, %v891_v51  ;;  %922 = vst.msk [vmem:[#allocation2 + $0x50] sm:$0xff] %vm537_vm0, %v892_v52  ;;  %v1120_v5 = vrot.slane %v2763_v56, 2  ;;  %v1014_v7 = vrot.slane %v2763_v56, 1  ;;  %v944_v8 = vld [vmem:[#allocation2 + $0x10] sm:$0x3] }
  0x34   : > { %977 = vst.msk [vmem:[#allocation3 + $0x28] sm:$0xff] %vm537_vm0, %v2761_v54  ;;  %972 = vst.msk [vmem:[#allocation3] sm:$0xff] %vm537_vm0, %v942_v55  ;;  %1434 = vrot.lane.b32.xlu1 %v2742_v50, %s2424_s26  ;;  %vm1012_vm8 = vcmask 1046528   ;;  %v893_v11 = vsel %vm2778_vm2, %v803_v59, 0.0  ;;  %v894_v13 = vsel %vm2787_vm3, %v804_v60, 0.0  ;;  %v895_v14 = vsel %vm2731_vm7, %v805_v61, 0.0 }
  0x35   : > { %973 = vst.msk [vmem:[#allocation3 + $0x8] sm:$0xff] %vm537_vm0, %v2763_v56  ;;  %1436 = vrot.lane.b32.xlu0 %v2761_v54, %s2424_s26  ;;  %924 = vst.msk [vmem:[#allocation2 + $0x60] sm:$0xff] %vm537_vm0, %v894_v13  ;;  %v806_v20 = vmax.f32 %v776_v1, 0.0  ;;  %v807_v22 = vmax.f32 %v777_v2, 0.0  ;;  %v1122_v24 = vrot.slane %v944_v8, 2  ;;  %v1016_v25 = vrot.slane %v944_v8, 1 }
  0x36   : > { %923 = vst.msk [vmem:[#allocation2 + $0x58] sm:$0x3] %vm540_vm1, %v893_v11  ;;  %vm640_vm9 = vmand %vm2800_vm5, %vm622_vm10  ;;  %v1121_v28 = vsel %vm1118_vm4, %v1119_v3, %v1120_v5  ;;  %v1015_v29 = vsel %vm1012_vm8, %v1013_v6, %v1014_v7  ;;  %v808_v31 = vmax.f32 %v778_v9, 0.0  ;;  %v1018_v34 = vrot.slane %v2740_v49, 1  ;;  %v706_v37 = vld [vmem:[#allocation2 + $0x90] sm:$0xff]  ;;  %v707_v45 = vld [vmem:[#allocation2 + $0x98] sm:$0xff] }
  0x37   : > { %925 = vst.msk [vmem:[#allocation2 + $0x68] sm:$0xff] %vm537_vm0, %v895_v14  ;;  %v896_v30 = vsel %vm2818_vm6, %v806_v20, 0.0  ;;  %v897_v16 = vsel %vm640_vm9, %v807_v22, 0.0  ;;  %v1019_v35 = vrot.slane %v2738_v48, 1  ;;  %v1123_v26 = vsel %vm1118_vm4, %v1120_v5, %v1122_v24  ;;  %v2858_v39 = vld [vmem:[#allocation2 + $0x28] sm:$0x3]  ;;  %vm675_vm11 = vmand %vm2800_vm5, %vm657_vm13 }
  0x38   : > { %1230 = vrot.lane.b32.xlu1 %v2742_v50, %s2423_s25  ;;  %926 = vst.msk [vmem:[#allocation2 + $0x70] sm:$0x3] %vm540_vm1, %v896_v30  ;;  %v898_v33 = vsel %vm2800_vm5, %v808_v31, 0.0  ;;  %v1017_v38 = vsel %vm1012_vm8, %v1014_v7, %v1016_v25  ;;  %v584_v40 = vadd.s32 6, %v2519_v0  ;;  %v533_v41 = vld [vmem:[%s2525_s20 + $0xa0] sm:$0x3]  ;;  %v779_v44 = vadd.f32 %v2577_v23, %v742_v36 }
  0x39   : > { %1232 = vrot.lane.b32.xlu0 %v2761_v54, %s2423_s25  ;;  %927 = vst.msk [vmem:[#allocation2 + $0x78] sm:$0xff] %vm537_vm0, %v897_v16  ;;  %928 = vst.msk [vmem:[#allocation2 + $0x80] sm:$0xff] %vm537_vm0, %v898_v33  ;;  %v743_v46 = vmul.f32 %v2559_v18, %v706_v37  ;;  %v1020_v47 = vsel %vm1012_vm8, %v1018_v34, %v1019_v35  ;;  %v1124_v27 = vrot.slane %v2740_v49, 2  ;;  %v1125_v52 = vrot.slane %v2738_v48, 2  ;;  %v1656_v1 = vld [vmem:[%s3491_s3] sm:$0xff]  ;;  %v1657_v2 = vld [vmem:[%s3491_s3 + $0x8] sm:$0xff] }
  0x3a   : > { %v2823_v17 = vld [vmem:[#allocation2 + $0x48] sm:$0xff]  ;;  %v2825_v19 = vld [vmem:[#allocation2 + $0x50] sm:$0xff]  ;;  %559 = vst.msk [vmem:[#allocation2 + $0xa0] sm:$0x3] %vm540_vm1, %v533_v41  ;;  %v809_v51 = vmax.f32 %v779_v44, 0.0  ;;  %v1021_v53 = vrot.slane %v2858_v39, 1  ;;  %v744_v55 = vmul.f32 %v2559_v18, %v707_v45  ;;  %v2305_v6 = vpack.c.bf16 %v1657_v2, %v1656_v1 }
  0x3b   : > { %978 = vst.msk [vmem:[#allocation3 + $0x30] sm:$0xff] %vm537_vm0, %v2823_v17  ;;  %979 = vst.msk [vmem:[#allocation3 + $0x38] sm:$0xff] %vm537_vm0, %v2825_v19  ;;  %vm598_vm12 = vcmp.ge.s32.totalorder %v584_v40, 1  ;;  %vm608_vm7 = vcmp.le.s32.totalorder %v584_v40, 16  ;;  %v780_v49 = vadd.f32 %v2577_v23, %v743_v46  ;;  %v1126_v59 = vsel %vm1118_vm4, %v1124_v27, %v1125_v52  ;;  %v1658_v13 = vld [vmem:[%s3491_s3 + $0x10] sm:$0xff]  ;;  %v1659_v14 = vld [vmem:[%s3491_s3 + $0x18] sm:$0xff] }
  0x3c   : > { %1159 = vrot.lane.b32.xlu1 %v1121_v28, %s3497_s13  ;;  %v2862_v42 = vld [vmem:[#allocation2 + $0x60] sm:$0xff]  ;;  %v899_v57 = vsel %vm675_vm11, %v809_v51, 0.0  ;;  %vm2896_vm14 = vmand %vm598_vm12, %vm608_vm7  ;;  %v1022_v60 = vsel %vm1012_vm8, %v1019_v35, %v1021_v53  ;;  %v781_v61 = vadd.f32 %v2577_v23, %v744_v55  ;;  %v1023_v8 = vrot.slane %v2742_v50, 1  ;;  %2306 = vmatprep.subr.bf16.mxu0 %v2305_v6  ;;  %v1661_v30 = vld [vmem:[%s3491_s3 + $0x28] sm:$0xff] }
  0x3d   : > { %1053 = vrot.lane.b32.xlu0 %v1015_v29, %s2426_s15  ;;  %980 = vst.msk [vmem:[#allocation3 + $0x40] sm:$0xff] %vm537_vm0, %v2862_v42  ;;  %vm643_vm15 = vmand %vm2896_vm14, %vm622_vm10  ;;  %v810_v62 = vmax.f32 %v780_v49, 0.0  ;;  %v1024_v9 = vrot.slane %v2761_v54, 1  ;;  %v1127_v10 = vrot.slane %v2858_v39, 2  ;;  %2321 = vmatprep.subr.bf16.mxu1 %v2305_v6  ;;  %v2309_v20 = vpack.c.bf16 %v1659_v14, %v1658_v13  ;;  %v950_v28 = vld [vmem:[#allocation2 + $0x40] sm:$0x3] }
  0x3e   : > { %v2864_v43 = vld [vmem:[#allocation2 + $0x68] sm:$0xff]  ;;  %929 = vst.msk [vmem:[#allocation2 + $0x88] sm:$0x3] %vm540_vm1, %v899_v57  ;;  %v811_v4 = vmax.f32 %v781_v61, 0.0  ;;  %2308 = vmatpush3.bf16.msra.mxu0 %v2305_v6  ;;  %2326 = vmatpush3.bf16.msra.mxu1 %v2305_v6  ;;  %vm678_vm2 = vmand %vm2896_vm14, %vm657_vm13  ;;  %v1660_v29 = vld [vmem:[%s3491_s3 + $0x20] sm:$0xff]  ;;  %v1129_v33 = vrot.slane %v2742_v50, 2 }
  0x3f   : > { %981 = vst.msk [vmem:[#allocation3 + $0x48] sm:$0xff] %vm537_vm0, %v2864_v43  ;;  %v900_v5 = vsel %vm643_vm15, %v810_v62, 0.0  ;;  %v1025_v24 = vsel %vm1012_vm8, %v1023_v8, %v1024_v9  ;;  %v1128_v25 = vsel %vm1118_vm4, %v1125_v52, %v1127_v10  ;;  %2310 = vmatprep.subr.bf16.mxu0 %v2309_v20  ;;  %2322 = vmatprep.subr.bf16.mxu1 %v2309_v20  ;;  %v534_v16 = vld [vmem:[%s2525_s20 + $0xa8] sm:$0xff]  ;;  %v1130_v34 = vrot.slane %v2761_v54, 2  ;;  %v1662_v37 = vld [vmem:[%s3491_s3 + $0x30] sm:$0xff]  ;;  %v1663_v50 = vld [vmem:[%s3491_s3 + $0x38] sm:$0xff] }
  0x40   : > { %1161 = vrot.lane.b32.xlu1 %v1123_v26, %s3497_s13  ;;  %v2884_v56 = vld [vmem:[#allocation2 + $0x78] sm:$0xff]  ;;  %v2888_v58 = vld [vmem:[#allocation2 + $0x80] sm:$0xff]  ;;  %930 = vst.msk [vmem:[#allocation2 + $0x90] sm:$0xff] %vm537_vm0, %v900_v5  ;;  %v901_v11 = vsel %vm2896_vm14, %v811_v4, 0.0  ;;  %v2313_v32 = vpack.c.bf16 %v1661_v30, %v1660_v29  ;;  %v1026_v35 = vrot.slane %v950_v28, 1  ;;  %560 = vst.msk [vmem:[#allocation2 + $0xa8] sm:$0xff] %vm537_vm0, %v534_v16  ;;  %v2317_v54 = vpack.c.bf16 %v1663_v50, %v1662_v37 }
  0x41   : > { %1055 = vrot.lane.b32.xlu0 %v1017_v38, %s2426_s15  ;;  %982 = vst.msk [vmem:[#allocation3 + $0x50] sm:$0xff] %vm537_vm0, %v2884_v56  ;;  %983 = vst.msk [vmem:[#allocation3 + $0x58] sm:$0xff] %vm537_vm0, %v2888_v58  ;;  %v708_v63 = vld [vmem:[#allocation2 + $0xa0] sm:$0x3]  ;;  %v1131_v26 = vsel %vm1118_vm4, %v1129_v33, %v1130_v34  ;;  %v535_v39 = vld [vmem:[%s2525_s20 + $0xb0] sm:$0xff]  ;;  %v1132_v44 = vrot.slane %v950_v28, 2 }
  0x42   : > { %v745_v3 = vmul.f32 %v2559_v18, %v708_v63  ;;  %931 = vst.msk [vmem:[#allocation2 + $0x98] sm:$0xff] %vm537_vm0, %v901_v11  ;;  %2312 = vmatpush3.bf16.msra.mxu0 %v2309_v20  ;;  %2327 = vmatpush3.bf16.msra.mxu1 %v2309_v20  ;;  %v1027_v38 = vsel %vm1012_vm8, %v1024_v9, %v1026_v35  ;;  %561 = vst.msk [vmem:[#allocation2 + $0xb0] sm:$0xff] %vm537_vm0, %v535_v39  ;;  %v1664_v40 = vld [vmem:[%s3491_s3 + $0x40] sm:$0xff]  ;;  %v585_v46 = vadd.s32 7, %v2519_v0  ;;  %v536_v55 = vld [vmem:[%s2525_s20 + $0xb8] sm:$0x3] }
  0x43   : > { %2314 = vmatprep.subr.bf16.mxu0 %v2313_v32  ;;  %2323 = vmatprep.subr.bf16.mxu1 %v2313_v32  ;;  %v1133_v27 = vsel %vm1118_vm4, %v1130_v34, %v1132_v44  ;;  %562 = vst.msk [vmem:[#allocation2 + $0xb8] sm:$0x3] %vm540_vm1, %v536_v55  ;;  %s3006_s20 = sadd.s32 8, %s2509_s12  ;;  %v1028_v2 = vrot.slane %v2823_v17, 1  ;;  %v953_v8 = vld [vmem:[#allocation2 + $0x58] sm:$0x3] }
  0x44   : > { %1057 = vrot.lane.b32.xlu1 %v1020_v47, %s2426_s15  ;;  %v782_v7 = vadd.f32 %v2577_v23, %v745_v3  ;;  %vm599_vm3 = vcmp.ge.s32.totalorder %v585_v46, 1  ;;  %vm609_vm5 = vcmp.le.s32.totalorder %v585_v46, 16  ;;  %p465_p7 = scmp.lt.s32.totalorder %s3006_s20, 17  ;;  %v1029_v3 = vrot.slane %v2825_v19, 1 }
  0x45   : > { %1297 = vrot.lane.b32.xlu0 %v1020_v47, %s2427_s16  ;;  %vm2982_vm6 = vmand %vm599_vm3, %vm609_vm5  ;;  %v1134_v9 = vrot.slane %v2823_v17, 2  ;;  %v1135_v10 = vrot.slane %v2825_v19, 2  ;;  %v1031_v11 = vrot.slane %v953_v8, 1  ;;  %v1033_v39 = vrot.slane %v2862_v42, 1 }
  0x46   : > { %v812_v15 = vmax.f32 %v782_v7, 0.0  ;;  %2316 = vmatpush3.bf16.msra.mxu0 %v2313_v32  ;;  %2328 = vmatpush3.bf16.msra.mxu1 %v2313_v32  ;;  %vm646_vm9 = vmand %vm2982_vm6, %vm622_vm10  ;;  %s466_s12 = scalar_select %p465_p7, %s3006_s20, 17  ;;  %v1030_v7 = vsel %vm1012_vm8, %v1028_v2, %v1029_v3 }
  0x47   : > { %v2945_v31 = vld [vmem:[#allocation2 + $0x90] sm:$0xff]  ;;  %2318 = vmatprep.subr.bf16.mxu0 %v2317_v54  ;;  %2324 = vmatprep.subr.bf16.mxu1 %v2317_v54  ;;  %v709_v41 = vld [vmem:[#allocation2 + $0xa8] sm:$0xff]  ;;  %vm681_vm11 = vmand %vm2982_vm6, %vm657_vm13  ;;  %v1136_v14 = vsel %vm1118_vm4, %v1134_v9, %v1135_v10 }
  0x48   : > { %1367 = vrot.lane.b32.xlu1 %v1126_v59, %s3499_s22  ;;  %v902_v22 = vsel %vm678_vm2, %v812_v15, 0.0  ;;  %984 = vst.msk [vmem:[#allocation3 + $0x60] sm:$0xff] %vm537_vm0, %v2945_v31  ;;  %v746_v45 = vmul.f32 %v2559_v18, %v709_v41  ;;  %s2333_s21 = smul.u32 3, %s466_s12  ;;  %v1032_v15 = vsel %vm1012_vm8, %v1029_v3, %v1031_v11  ;;  %s3540_s12 = smov 16  }
  0x49   : > { %1299 = vrot.lane.b32.xlu0 %v1022_v60, %s2427_s16  ;;  %932 = vst.msk [vmem:[#allocation2 + $0xa0] sm:$0x3] %vm540_vm1, %v902_v22  ;;  %v2954_v36 = vld [vmem:[#allocation2 + $0x98] sm:$0xff]  ;;  %v710_v52 = vld [vmem:[#allocation2 + $0xb0] sm:$0xff] }
  0x4a   : > { %985 = vst.msk [vmem:[#allocation3 + $0x68] sm:$0xff] %vm537_vm0, %v2954_v36  ;;  %2320 = vmatpush3.bf16.msra.mxu0 %v2317_v54  ;;  %2329 = vmatpush3.bf16.msra.mxu1 %v2317_v54  ;;  %v783_v47 = vadd.f32 %v2577_v23, %v746_v45  ;;  %v747_v57 = vmul.f32 %v2559_v18, %v710_v52  ;;  %v711_v61 = vld [vmem:[#allocation2 + $0xb8] sm:$0x3]  ;;  %s469_s23 = sadd.s32 %s2333_s21, %s2516_s14  ;;  %v1139_v52 = vrot.slane %v2862_v42, 2 }
  0x4b   : > { %2279 = vmatprep.subr.mxu0 %v1664_v40  ;;  %2325 = vmatprep.subr.mxu1 %v1664_v40  ;;  %v748_v62 = vmul.f32 %v2559_v18, %v711_v61  ;;  %s2197_s18 = sshll.u32 %s469_s23, 3  ;;  %v587_v61 = vadd.s32 9, %v2519_v0 }
  0x4c   : > { %1163 = vrot.lane.b32.xlu1 %v1126_v59, %s3497_s13  ;;  %v813_v53 = vmax.f32 %v783_v47, 0.0  ;;  %v784_v48 = vadd.f32 %v2577_v23, %v747_v57 }
  0x4d   : > { %1059 = vrot.lane.b32.xlu0 %v1022_v60, %s2426_s15  ;;  %v785_v1 = vadd.f32 %v2577_v23, %v748_v62  ;;  %vm601_vm3 = vcmp.ge.s32.totalorder %v587_v61, 1  ;;  %vm611_vm5 = vcmp.le.s32.totalorder %v587_v61, 16 }
  0x4e   : > { %2280 = vmatpush3.msra.mxu0 %v1664_v40  ;;  %2330 = vmatpush3.msra.mxu1 %v1664_v40  ;;  %v903_v49 = vsel %vm646_vm9, %v813_v53, 0.0  ;;  %v814_v59 = vmax.f32 %v784_v48, 0.0  ;;  %v1034_v40 = vrot.slane %v2864_v43, 1  ;;  %v1140_v53 = vrot.slane %v2864_v43, 2 }
  0x4f   : > { %933 = vst.msk [vmem:[#allocation2 + $0xa8] sm:$0xff] %vm537_vm0, %v903_v49  ;;  %v815_v4 = vmax.f32 %v785_v1, 0.0 }
  0x50   : > { %1505 = vrot.lane.b32.xlu1 %v1025_v24, %s2429_s17  ;;  %v904_v60 = vsel %vm2982_vm6, %v814_v59, 0.0  ;;  %v1035_v46 = vsel %vm1012_vm8, %v1033_v39, %v1034_v40  ;;  %v1141_v49 = vsel %vm1118_vm4, %v1139_v52, %v1140_v53  ;;  %vm621_vm6 = vmand %vm601_vm3, %vm611_vm5  ;;  %vm1665_vm3 = vcmask 588800  }
  0x51   : > { %1369 = vrot.lane.b32.xlu0 %v1128_v25, %s3499_s22  ;;  %934 = vst.msk [vmem:[#allocation2 + $0xb0] sm:$0xff] %vm537_vm0, %v904_v60  ;;  %v905_v6 = vsel %vm681_vm11, %v815_v4, 0.0  ;;  %vm652_vm9 = vmand %vm621_vm6, %vm622_vm10 }
  0x52   : > { %935 = vst.msk [vmem:[#allocation2 + $0xb8] sm:$0x3] %vm540_vm1, %v905_v6  ;;  %vm687_vm11 = vmand %vm621_vm6, %vm657_vm13 }
  0x54   : > { %1301 = vrot.lane.b32.xlu1 %v1025_v24, %s2427_s16 }
  0x55   : > { %1165 = vrot.lane.b32.xlu0 %v1128_v25, %s3497_s13  ;;  %v586_v25 = vadd.s32 8, %v2519_v0 }
  0x56   : > { %v3003_v63 = vld [vmem:[#allocation2 + $0xa8] sm:$0xff] }
  0x57   : > { %986 = vst.msk [vmem:[#allocation3 + $0x70] sm:$0xff] %vm537_vm0, %v3003_v63  ;;  %vm600_vm12 = vcmp.ge.s32.totalorder %v586_v25, 1  ;;  %vm610_vm7 = vcmp.le.s32.totalorder %v586_v25, 16  ;;  %v959_v25 = vld [vmem:[#allocation2 + $0x88] sm:$0x3] }
  0x58   : > { %1575 = vrot.lane.b32.xlu1 %v1131_v26, %s2430_s24  ;;  %v3025_v5 = vld [vmem:[#allocation2 + $0xb0] sm:$0xff]  ;;  %vm3055_vm14 = vmand %vm600_vm12, %vm610_vm7  ;;  %vm1345_vm12 = vcmask 326912   ;;  %vm1415_vm7 = vcmask 392512  }
  0x59   : > { %1507 = vrot.lane.b32.xlu0 %v1027_v38, %s2429_s17  ;;  %987 = vst.msk [vmem:[#allocation3 + $0x78] sm:$0xff] %vm537_vm0, %v3025_v5  ;;  %vm649_vm15 = vmand %vm3055_vm14, %vm622_vm10  ;;  %vm1207_vm10 = vcmask 195712  }
  0x5a   : > { %vm684_vm2 = vmand %vm3055_vm14, %vm657_vm13  ;;  %vm1274_vm13 = vcmask 261312  }
  0x5c   : > { %1303 = vrot.lane.b32.xlu1 %v1027_v38, %s2427_s16 }
  0x5d   : > { %1061 = vrot.lane.b32.xlu0 %v1025_v24, %s2426_s15 }
  0x60   : > { %1577 = vrot.lane.b32.xlu1 %v1133_v27, %s2430_s24 }
  0x61   : > { %1371 = vrot.lane.b32.xlu0 %v1131_v26, %s3499_s22 }
  0x64   : > { %1167 = vrot.lane.b32.xlu1 %v1131_v26, %s3497_s13 }
  0x65   : > { %1063 = vrot.lane.b32.xlu0 %v1027_v38, %s2426_s15 }
  0x68   : > { %1438 = vrot.lane.b32.xlu1 %v2823_v17, %s2424_s26 }
  0x69   : > { %1373 = vrot.lane.b32.xlu0 %v1133_v27, %s3499_s22  ;;  %s471_s22 = scalar_lea.vmem %s3489_s1, %s2197_s18 }
  0x6a   : > { %v563_v13 = vld [vmem:[%s471_s22] sm:$0xff]  ;;  %v564_v20 = vld [vmem:[%s471_s22 + $0x8] sm:$0xff]  ;;  %v565_v29 = vld [vmem:[%s471_s22 + $0x10] sm:$0x3]  ;;  %s476_s22 = sadd.s32 1, %s3006_s20 }
  0x6b   : > { %567 = vst.msk [vmem:[#allocation2 + $0xc0] sm:$0xff] %vm537_vm0, %v563_v13  ;;  %568 = vst.msk [vmem:[#allocation2 + $0xc8] sm:$0xff] %vm537_vm0, %v564_v20  ;;  %p479_p8 = scmp.lt.s32.totalorder %s476_s22, 17  ;;  %v1038_v13 = vrot.slane %v2884_v56, 1 }
  0x6c   : > { %1234 = vrot.lane.b32.xlu1 %v2823_v17, %s2423_s25  ;;  %v1137_v17 = vrot.slane %v953_v8, 2  ;;  %569 = vst.msk [vmem:[#allocation2 + $0xd0] sm:$0x3] %vm540_vm1, %v565_v29  ;;  %v1041_v29 = vrot.slane %v959_v25, 1 }
  0x6d   : > { %1169 = vrot.lane.b32.xlu0 %v1133_v27, %s3497_s13  ;;  %s3539_s13 = smov 40   ;;  %s3554_s22 = smov (!%p479_p8, %s476_s22), 17  ;;  %v956_v27 = vld [vmem:[#allocation2 + $0x70] sm:$0x3] }
  0x6e   : > { %v1138_v28 = vsel %vm1118_vm4, %v1135_v10, %v1137_v17  ;;  %s2334_s21 = smul.u32 3, %s3554_s22  ;;  %v1036_v55 = vrot.slane %v956_v27, 1  ;;  %v1142_v3 = vrot.slane %v956_v27, 2 }
  0x70   : > { %1509 = vrot.lane.b32.xlu1 %v1030_v7, %s2429_s17  ;;  %s483_s20 = sadd.s32 %s2334_s21, %s2516_s14  ;;  %v1037_v48 = vsel %vm1012_vm8, %v1034_v40, %v1036_v55  ;;  %v1143_v9 = vsel %vm1118_vm4, %v1140_v53, %v1142_v3  ;;  %v962_v53 = vld [vmem:[#allocation2 + $0xa0] sm:$0x3]  ;;  %v1149_v55 = vrot.slane %v2945_v31, 2  ;;  %s2200_s14 = sshll.u32 %s2405_s27, 4 }
  0x71   : > { %1440 = vrot.lane.b32.xlu0 %v2825_v19, %s2424_s26  ;;  %s2199_s23 = sshll.u32 %s483_s20, 3  ;;  %p492_p9 = scmp.lt.s32.totalorder %s2200_s14, 31 }
  0x72   : > { %v712_v22 = vld [vmem:[#allocation2 + $0xc0] sm:$0xff]  ;;  %v713_v16 = vld [vmem:[#allocation2 + $0xc8] sm:$0xff]  ;;  %s485_s22 = scalar_lea.vmem %s3490_s2, %s2199_s23  ;;  %s3558_s27 = smov (!%p501_p10, %s2405_s27), 1 }
  0x73   : > { %v749_v24 = vmul.f32 %v2559_v18, %v712_v22  ;;  %v750_v33 = vmul.f32 %v2559_v18, %v713_v16  ;;  %v714_v54 = vld [vmem:[#allocation2 + $0xd0] sm:$0x3]  ;;  %v570_v45 = vld [vmem:[%s485_s22] sm:$0xff]  ;;  %v571_v47 = vld [vmem:[%s485_s22 + $0x8] sm:$0xff]  ;;  %s3556_s14 = smov (!%p492_p9, %s2200_s14), 31 }
  0x74   : > { %1305 = vrot.lane.b32.xlu1 %v1030_v7, %s2427_s16  ;;  %v751_v26 = vmul.f32 %v2559_v18, %v714_v54  ;;  %574 = vst.msk [vmem:[#allocation2 + $0xd8] sm:$0xff] %vm537_vm0, %v570_v45  ;;  %v572_v51 = vld [vmem:[%s485_s22 + $0x10] sm:$0x3]  ;;  %575 = vst.msk [vmem:[#allocation2 + $0xe0] sm:$0xff] %vm537_vm0, %v571_v47  ;;  %v1044_v45 = vrot.slane %v2954_v36, 1 }
  0x75   : > { %1236 = vrot.lane.b32.xlu0 %v2825_v19, %s2423_s25  ;;  %v786_v19 = vadd.f32 %v2577_v23, %v749_v24  ;;  %v787_v35 = vadd.f32 %v2577_v23, %v750_v33  ;;  %576 = vst.msk [vmem:[#allocation2 + $0xe8] sm:$0x3] %vm540_vm1, %v572_v51 }
  0x76   : > { %v788_v38 = vadd.f32 %v2577_v23, %v751_v26 }
  0x77   : > { %v816_v32 = vmax.f32 %v786_v19, 0.0  ;;  %v817_v37 = vmax.f32 %v787_v35, 0.0  ;;  %v1144_v19 = vrot.slane %v2884_v56, 2  ;;  %v1147_v35 = vrot.slane %v959_v25, 2 }
  0x78   : > { %1579 = vrot.lane.b32.xlu1 %v1136_v14, %s2430_s24  ;;  %v818_v41 = vmax.f32 %v788_v38, 0.0 }
  0x79   : > { %1511 = vrot.lane.b32.xlu0 %v1032_v15, %s2429_s17  ;;  %v906_v34 = vsel %vm649_vm15, %v816_v32, 0.0  ;;  %v907_v50 = vsel %vm3055_vm14, %v817_v37, 0.0  ;;  %vm1482_vm14 = vcmask 458112   ;;  %vm1553_vm15 = vcmask 523712  }
  0x7a   : > { %936 = vst.msk [vmem:[#allocation2 + $0xc0] sm:$0xff] %vm537_vm0, %v906_v34  ;;  %937 = vst.msk [vmem:[#allocation2 + $0xc8] sm:$0xff] %vm537_vm0, %v907_v50  ;;  %v908_v44 = vsel %vm684_vm2, %v818_v41, 0.0  ;;  %vm1623_vm2 = vcmask 589312  }
  0x7b   : > { %938 = vst.msk [vmem:[#allocation2 + $0xd0] sm:$0x3] %vm540_vm1, %v908_v44  ;;  %v715_v57 = vld [vmem:[#allocation2 + $0xd8] sm:$0xff]  ;;  %v716_v60 = vld [vmem:[#allocation2 + $0xe0] sm:$0xff]  ;;  %v1043_v44 = vrot.slane %v2945_v31, 1 }
  0x7c   : > { %1307 = vrot.lane.b32.xlu1 %v1032_v15, %s2427_s16  ;;  %v752_v59 = vmul.f32 %v2559_v18, %v715_v57  ;;  %v717_v62 = vld [vmem:[#allocation2 + $0xe8] sm:$0x3]  ;;  %v1150_v57 = vrot.slane %v2954_v36, 2 }
  0x7d   : > { %1065 = vrot.lane.b32.xlu0 %v1030_v7, %s2426_s15  ;;  %v754_v2 = vmul.f32 %v2559_v18, %v717_v62  ;;  %v1045_v27 = vsel %vm1012_vm8, %v1043_v44, %v1044_v45 }
  0x7e   : > { %v789_v1 = vadd.f32 %v2577_v23, %v752_v59  ;;  %v1151_v61 = vsel %vm1118_vm4, %v1149_v55, %v1150_v57 }
  0x7f   : > { %v791_v0 = vadd.f32 %v2577_v23, %v754_v2 }
  0x80   : > { %1581 = vrot.lane.b32.xlu1 %v1138_v28, %s2430_s24  ;;  %v819_v4 = vmax.f32 %v789_v1, 0.0  ;;  %v1152_v1 = vrot.slane %v962_v53, 2 }
  0x81   : > { %1375 = vrot.lane.b32.xlu0 %v1136_v14, %s3539_s13  ;;  %v821_v8 = vmax.f32 %v791_v0, 0.0 }
  0x82   : > { %v909_v7 = vsel %vm652_vm9, %v819_v4, 0.0 }
  0x83   : > { %939 = vst.msk [vmem:[#allocation2 + $0xd8] sm:$0xff] %vm537_vm0, %v909_v7 }
  0x84   : > { %1171 = vrot.lane.b32.xlu1 %v1136_v14, %s3540_s12  ;;  %v1039_v14 = vrot.slane %v2888_v58, 1 }
  0x85   : > { %1067 = vrot.lane.b32.xlu0 %v1032_v15, %s2426_s15 }
  0x86   : > { %v1040_v17 = vsel %vm1012_vm8, %v1038_v13, %v1039_v14 }
  0x88   : > { %1442 = vrot.lane.b32.xlu1 %v2862_v42, %s2424_s26 }
  0x89   : > { %1377 = vrot.lane.b32.xlu0 %v1138_v28, %s3539_s13 }
  0x8c   : > { %1238 = vrot.lane.b32.xlu1 %v2862_v42, %s2423_s25  ;;  %v753_v42 = vmul.f32 %v2559_v18, %v716_v60 }
  0x8d   : > { %1173 = vrot.lane.b32.xlu0 %v1138_v28, %s3540_s12  ;;  %v1145_v28 = vrot.slane %v2888_v58, 2 }
  0x8f   : > { %v1146_v16 = vsel %vm1118_vm4, %v1144_v19, %v1145_v28  ;;  %v1148_v50 = vsel %vm1118_vm4, %v1145_v28, %v1147_v35 }
  0x90   : > { %1513 = vrot.lane.b32.xlu1 %v1035_v46, %s2429_s17 }
  0x91   : > { %1444 = vrot.lane.b32.xlu0 %v2864_v43, %s2424_s26 }
  0x94   : > { %1309 = vrot.lane.b32.xlu1 %v1035_v46, %s2427_s16 }
  0x95   : > { %1240 = vrot.lane.b32.xlu0 %v2864_v43, %s2423_s25  ;;  %v790_v43 = vadd.f32 %v2577_v23, %v753_v42  ;;  %v911_v23 = vsel %vm687_vm11, %v821_v8, 0.0 }
  0x96   : > { %941 = vst.msk [vmem:[#allocation2 + $0xe8] sm:$0x3] %vm540_vm1, %v911_v23  ;;  %vm1101_vm1 = vcmask 130112   ;;  %v1049_v23 = vrot.slane %v3025_v5, 1 }
  0x97   : > { %v820_v6 = vmax.f32 %v790_v43, 0.0 }
  0x98   : > { %1583 = vrot.lane.b32.xlu1 %v1141_v49, %s2430_s24 }
  0x99   : > { %1515 = vrot.lane.b32.xlu0 %v1037_v48, %s2429_s17  ;;  %v910_v18 = vsel %vm621_vm6, %v820_v6, 0.0 }
  0x9a   : > { %940 = vst.msk [vmem:[#allocation2 + $0xe0] sm:$0xff] %vm537_vm0, %v910_v18 }
  0x9c   : > { %1311 = vrot.lane.b32.xlu1 %v1037_v48, %s2427_s16 }
  0x9d   : > { %1069 = vrot.lane.b32.xlu0 %v1035_v46, %s2426_s15 }
  0xa0   : > { %1585 = vrot.lane.b32.xlu1 %v1143_v9, %s2430_s24 }
  0xa1   : > { %1379 = vrot.lane.b32.xlu0 %v1141_v49, %s3539_s13 }
  0xa2   : > { %v1229_v12 = vpop.permute.xlu1 %1228 }
  0xa3   : > { %v1227_v10 = vpop.permute.xlu0 %1226 }
  0xa4   : > { %1175 = vrot.lane.b32.xlu1 %v1141_v49, %s3540_s12  ;;  %v1046_v49 = vrot.slane %v962_v53, 1 }
  0xa5   : > { %1071 = vrot.lane.b32.xlu0 %v1037_v48, %s2426_s15 }
  0xa6   : > { %v1435_v21 = vpop.permute.xlu1 %1434 }
  0xa7   : > { %v3131_v11 = vpop.permute.xlu0 %1436 }
  0xa8   : > { %1446 = vrot.lane.b32.xlu1 %v2884_v56, %s2424_s26 }
  0xa9   : > { %1381 = vrot.lane.b32.xlu0 %v1143_v9, %s3539_s13 }
  0xaa   : > { %v1231_v15 = vpop.permute.xlu1 %1230 }
  0xab   : > { %v3138_v20 = vpop.permute.xlu0 %1232 }
  0xac   : > { %1242 = vrot.lane.b32.xlu1 %v2884_v56, %s2423_s25  ;;  %v1042_v56 = vsel %vm1012_vm8, %v1039_v14, %v1041_v29  ;;  %v965_v14 = vld [vmem:[#allocation2 + $0xb8] sm:$0x3] }
  0xad   : > { %1177 = vrot.lane.b32.xlu0 %v1143_v9, %s3540_s12  ;;  %v1048_v9 = vrot.slane %v3003_v63, 1 }
  0xae   : > { %v1160_v22 = vpop.permute.xlu1 %1159 }
  0xaf   : > { %v1054_v24 = vpop.permute.xlu0 %1053 }
  0xb0   : > { %1102 = vst.msk [vmem:[#allocation3] sm:$0xff] %vm1101_vm1, %v1054_v24  ;;  %1517 = vrot.lane.b32.xlu1 %v1040_v17, %s2429_s17 }
  0xb1   : > { %1208 = vst.msk [vmem:[#allocation3] sm:$0xff] %vm1207_vm10, %v1160_v22  ;;  %1448 = vrot.lane.b32.xlu0 %v2888_v58, %s2424_s26 }
  0xb2   : > { %1275 = vst.msk [vmem:[#allocation3] sm:$0xff] %vm1274_vm13, %v1227_v10  ;;  %v1162_v30 = vpop.permute.xlu1 %1161 }
  0xb3   : > { %v1056_v32 = vpop.permute.xlu0 %1055 }
  0xb4   : > { %1103 = vst.msk [vmem:[#allocation3 + $0x8] sm:$0xff] %vm1101_vm1, %v1056_v32  ;;  %1313 = vrot.lane.b32.xlu1 %v1040_v17, %s2427_s16 }
  0xb5   : > { %1209 = vst.msk [vmem:[#allocation3 + $0x8] sm:$0xff] %vm1207_vm10, %v1162_v30  ;;  %1244 = vrot.lane.b32.xlu0 %v2888_v58, %s2423_s25  ;;  %v1157_v30 = vrot.slane %v965_v14, 2 }
  0xb6   : > { %1276 = vst.msk [vmem:[#allocation3 + $0x8] sm:$0xff] %vm1274_vm13, %v1229_v12  ;;  %v1058_v33 = vpop.permute.xlu1 %1057 }
  0xb7   : > { %v1298_v34 = vpop.permute.xlu0 %1297  ;;  %1104 = vst.msk [vmem:[#allocation3 + $0x10] sm:$0xff] %vm1101_vm1, %v1058_v33 }
  0xb8   : > { %1346 = vst.msk [vmem:[#allocation3] sm:$0xff] %vm1345_vm12, %v1298_v34  ;;  %1587 = vrot.lane.b32.xlu1 %v1146_v16, %s2430_s24 }
  0xb9   : > { %1519 = vrot.lane.b32.xlu0 %v1042_v56, %s2429_s17 }
  0xba   : > { %v1368_v58 = vpop.permute.xlu1 %1367 }
  0xbb   : > { %v1300_v37 = vpop.permute.xlu0 %1299  ;;  %1416 = vst.msk [vmem:[#allocation3] sm:$0xff] %vm1415_vm7, %v1368_v58 }
  0xbc   : > { %1347 = vst.msk [vmem:[#allocation3 + $0x8] sm:$0xff] %vm1345_vm12, %v1300_v37  ;;  %1315 = vrot.lane.b32.xlu1 %v1042_v56, %s2427_s16  ;;  %v966_v37 = vld [vmem:[#allocation2 + $0xc0] sm:$0xff] }
  0xbd   : > { %1073 = vrot.lane.b32.xlu0 %v1040_v17, %s2426_s15  ;;  %1483 = vst.msk [vmem:[#allocation3] sm:$0xff] %vm1482_vm14, %v1435_v21  ;;  %v1050_v21 = vsel %vm1012_vm8, %v1048_v9, %v1049_v23  ;;  %v1051_v17 = vrot.slane %v965_v14, 1 }
  0xbe   : > { %v1164_v54 = vpop.permute.xlu1 %1163 }
  0xbf   : > { %v1060_v26 = vpop.permute.xlu0 %1059  ;;  %1210 = vst.msk [vmem:[#allocation3 + $0x10] sm:$0xff] %vm1207_vm10, %v1164_v54 }
  0xc0   : > { %1105 = vst.msk [vmem:[#allocation3 + $0x18] sm:$0xff] %vm1101_vm1, %v1060_v26  ;;  %1589 = vrot.lane.b32.xlu1 %v1148_v50, %s2430_s24  ;;  %v967_v26 = vld [vmem:[#allocation2 + $0xc8] sm:$0xff] }
  0xc1   : > { %1277 = vst.msk [vmem:[#allocation3 + $0x10] sm:$0xff] %vm1274_vm13, %v1231_v15  ;;  %1383 = vrot.lane.b32.xlu0 %v1146_v16, %s3539_s13  ;;  %v1154_v15 = vrot.slane %v3003_v63, 2 }
  0xc2   : > { %v1506_v38 = vpop.permute.xlu1 %1505 }
  0xc3   : > { %v1370_v39 = vpop.permute.xlu0 %1369  ;;  %1554 = vst.msk [vmem:[#allocation3] sm:$0xff] %vm1553_vm15, %v1506_v38  ;;  %v1292_v38 = vrot.slane %v966_v37, 1 }
  0xc4   : > { %1417 = vst.msk [vmem:[#allocation3 + $0x8] sm:$0xff] %vm1415_vm7, %v1370_v39  ;;  %1179 = vrot.lane.b32.xlu1 %v1146_v16, %s3540_s12  ;;  %v1293_v39 = vrot.slane %v967_v26, 1 }
  0xc5   : > { %1484 = vst.msk [vmem:[#allocation3 + $0x8] sm:$0xff] %vm1482_vm14, %v3131_v11  ;;  %1075 = vrot.lane.b32.xlu0 %v1042_v56, %s2426_s15 }
  0xc6   : > { %v1302_v40 = vpop.permute.xlu1 %1301  ;;  %v1294_v44 = vsel %vm1012_vm8, %v1292_v38, %v1293_v39 }
  0xc7   : > { %v1166_v41 = vpop.permute.xlu0 %1165  ;;  %1348 = vst.msk [vmem:[#allocation3 + $0x10] sm:$0xff] %vm1345_vm12, %v1302_v40 }
  0xc8   : > { %1211 = vst.msk [vmem:[#allocation3 + $0x18] sm:$0xff] %vm1207_vm10, %v1166_v41  ;;  %1450 = vrot.lane.b32.xlu1 %v2945_v31, %s2424_s26 }
  0xc9   : > { %1278 = vst.msk [vmem:[#allocation3 + $0x18] sm:$0xff] %vm1274_vm13, %v3138_v20  ;;  %1385 = vrot.lane.b32.xlu0 %v1148_v50, %s3539_s13  ;;  %v1155_v20 = vrot.slane %v3025_v5, 2 }
  0xca   : > { %v1576_v46 = vpop.permute.xlu1 %1575 }
  0xcb   : > { %v1508_v47 = vpop.permute.xlu0 %1507  ;;  %1624 = vst.msk [vmem:[#allocation3] sm:$0xff] %vm1623_vm2, %v1576_v46  ;;  %v1156_v19 = vsel %vm1118_vm4, %v1154_v15, %v1155_v20 }
  0xcc   : > { %1555 = vst.msk [vmem:[#allocation3 + $0x8] sm:$0xff] %vm1553_vm15, %v1508_v47  ;;  %1246 = vrot.lane.b32.xlu1 %v2945_v31, %s2423_s25  ;;  %v1047_v31 = vsel %vm1012_vm8, %v1044_v45, %v1046_v49  ;;  %v968_v47 = vld [vmem:[#allocation2 + $0xd0] sm:$0x3] }
  0xcd   : > { %1181 = vrot.lane.b32.xlu0 %v1148_v50, %s3540_s12 }
  0xce   : > { %v1304_v51 = vpop.permute.xlu1 %1303 }
  0xcf   : > { %v1062_v52 = vpop.permute.xlu0 %1061  ;;  %1349 = vst.msk [vmem:[#allocation3 + $0x18] sm:$0xff] %vm1345_vm12, %v1304_v51  ;;  %v1363_v51 = vrot.slane %v967_v26, 2 }
  0xd0   : > { %1106 = vst.msk [vmem:[#allocation3 + $0x20] sm:$0xff] %vm1101_vm1, %v1062_v52  ;;  %1521 = vrot.lane.b32.xlu1 %v1045_v27, %s2429_s17  ;;  %v1295_v52 = vrot.slane %v968_v47, 1 }
  0xd1   : > { %1452 = vrot.lane.b32.xlu0 %v2954_v36, %s2424_s26 }
  0xd2   : > { %v1578_v48 = vpop.permute.xlu1 %1577  ;;  %v1640_v60 = vld [vmem:[#allocation3] sm:$0xff]  ;;  %v1296_v49 = vsel %vm1012_vm8, %v1293_v39, %v1295_v52 }
  0xd3   : > { %v1372_v59 = vpop.permute.xlu0 %1371  ;;  %1625 = vst.msk [vmem:[#allocation3 + $0x8] sm:$0xff] %vm1623_vm2, %v1578_v48  ;;  %2281 = vmatprep.mubr.msk.f32.mxu0 %vm1665_vm3, %v1640_v60 }
  0xd4   : > { %1418 = vst.msk [vmem:[#allocation3 + $0x10] sm:$0xff] %vm1415_vm7, %v1372_v59  ;;  %1317 = vrot.lane.b32.xlu1 %v1045_v27, %s2427_s16 }
  0xd5   : > { %1248 = vrot.lane.b32.xlu0 %v2954_v36, %s2423_s25  ;;  %v1153_v36 = vsel %vm1118_vm4, %v1150_v57, %v1152_v1 }
  0xd6   : > { %v1168_v42 = vpop.permute.xlu1 %1167 }
  0xd7   : > { %v1064_v62 = vpop.permute.xlu0 %1063  ;;  %1212 = vst.msk [vmem:[#allocation3 + $0x20] sm:$0xff] %vm1207_vm10, %v1168_v42 }
  0xd8   : > { %1107 = vst.msk [vmem:[#allocation3 + $0x28] sm:$0xff] %vm1101_vm1, %v1064_v62  ;;  %1591 = vrot.lane.b32.xlu1 %v1151_v61, %s2430_s24 }
  0xd9   : > { %1523 = vrot.lane.b32.xlu0 %v1047_v31, %s2429_s17 }
  0xda   : > { %v1439_v2 = vpop.permute.xlu1 %1438  ;;  %v1641_v3 = vld [vmem:[#allocation3 + $0x8] sm:$0xff] }
  0xdb   : > { %v1374_v43 = vpop.permute.xlu0 %1373  ;;  %1485 = vst.msk [vmem:[#allocation3 + $0x10] sm:$0xff] %vm1482_vm14, %v1439_v2  ;;  %2282 = vmatmul.mubr.msk.f32.vlgmr.msra.gmra.mrb[0].mxu0 %vm1665_vm3, %v1641_v3  ;;  %v969_v3 = vld [vmem:[#allocation2 + $0xd8] sm:$0xff] }
  0xdc   : > { %1419 = vst.msk [vmem:[#allocation3 + $0x18] sm:$0xff] %vm1415_vm7, %v1374_v43  ;;  %1319 = vrot.lane.b32.xlu1 %v1047_v31, %s2427_s16  ;;  %v1570_v9 = vrot.slane %v969_v3, 2 }
  0xdd   : > { %1077 = vrot.lane.b32.xlu0 %v1045_v27, %s2426_s15  ;;  %v1362_v27 = vrot.slane %v966_v37, 2 }
  0xde   : > { %v1235_v4 = vpop.permute.xlu1 %1234 }
  0xdf   : > { %v1170_v0 = vpop.permute.xlu0 %1169  ;;  %1279 = vst.msk [vmem:[#allocation3 + $0x20] sm:$0xff] %vm1274_vm13, %v1235_v4  ;;  %v1364_v48 = vsel %vm1118_vm4, %v1362_v27, %v1363_v51  ;;  %v971_v4 = vld [vmem:[#allocation2 + $0xe8] sm:$0x3] }
  0xe0   : > { %1213 = vst.msk [vmem:[#allocation3 + $0x28] sm:$0xff] %vm1207_vm10, %v1170_v0  ;;  %1593 = vrot.lane.b32.xlu1 %v1153_v36, %s2430_s24  ;;  %v1500_v0 = vrot.slane %v969_v3, 1 }
  0xe1   : > { %1387 = vrot.lane.b32.xlu0 %v1151_v61, %s3539_s13 }
  0xe2   : > { %v1510_v6 = vpop.permute.xlu1 %1509 }
  0xe3   : > { %v1441_v7 = vpop.permute.xlu0 %1440  ;;  %1556 = vst.msk [vmem:[#allocation3 + $0x10] sm:$0xff] %vm1553_vm15, %v1510_v6 }
  0xe4   : > { %1486 = vst.msk [vmem:[#allocation3 + $0x18] sm:$0xff] %vm1482_vm14, %v1441_v7  ;;  %1183 = vrot.lane.b32.xlu1 %v1151_v61, %s3540_s12  ;;  %v1365_v61 = vrot.slane %v968_v47, 2  ;;  %v1503_v7 = vrot.slane %v971_v4, 1 }
  0xe5   : > { %1079 = vrot.lane.b32.xlu0 %v1047_v31, %s2426_s15 }
  0xe6   : > { %v1306_v8 = vpop.permute.xlu1 %1305  ;;  %v1366_v1 = vsel %vm1118_vm4, %v1363_v51, %v1365_v61 }
  0xe7   : > { %v1237_v18 = vpop.permute.xlu0 %1236  ;;  %1350 = vst.msk [vmem:[#allocation3 + $0x20] sm:$0xff] %vm1345_vm12, %v1306_v8 }
  0xe8   : > { %1280 = vst.msk [vmem:[#allocation3 + $0x28] sm:$0xff] %vm1274_vm13, %v1237_v18  ;;  %1454 = vrot.lane.b32.xlu1 %v3003_v63, %s2424_s26 }
  0xe9   : > { %1389 = vrot.lane.b32.xlu0 %v1153_v36, %s3539_s13 }
  0xea   : > { %v1580_v12 = vpop.permute.xlu1 %1579 }
  0xeb   : > { %v1512_v10 = vpop.permute.xlu0 %1511  ;;  %1626 = vst.msk [vmem:[#allocation3 + $0x10] sm:$0xff] %vm1623_vm2, %v1580_v12 }
  0xec   : > { %1557 = vst.msk [vmem:[#allocation3 + $0x18] sm:$0xff] %vm1553_vm15, %v1512_v10  ;;  %1250 = vrot.lane.b32.xlu1 %v3003_v63, %s2423_s25  ;;  %v1052_v63 = vsel %vm1012_vm8, %v1049_v23, %v1051_v17 }
  0xed   : > { %1185 = vrot.lane.b32.xlu0 %v1153_v36, %s3540_s12  ;;  %v970_v36 = vld [vmem:[#allocation2 + $0xe0] sm:$0xff] }
  0xee   : > { %v1308_v11 = vpop.permute.xlu1 %1307  ;;  %v1501_v6 = vrot.slane %v970_v36, 1  ;;  %v1571_v23 = vrot.slane %v970_v36, 2 }
  0xef   : > { %v1066_v13 = vpop.permute.xlu0 %1065  ;;  %1351 = vst.msk [vmem:[#allocation3 + $0x28] sm:$0xff] %vm1345_vm12, %v1308_v11 }
  0xf0   : > { %1108 = vst.msk [vmem:[#allocation3 + $0x30] sm:$0xff] %vm1101_vm1, %v1066_v13  ;;  %1525 = vrot.lane.b32.xlu1 %v1050_v21, %s2429_s17  ;;  %v1502_v12 = vsel %vm1012_vm8, %v1500_v0, %v1501_v6  ;;  %v1504_v10 = vsel %vm1012_vm8, %v1501_v6, %v1503_v7  ;;  %v1572_v14 = vsel %vm1118_vm4, %v1570_v9, %v1571_v23 }
  0xf1   : > { %1456 = vrot.lane.b32.xlu0 %v3025_v5, %s2424_s26 }
  0xf2   : > { %v1582_v22 = vpop.permute.xlu1 %1581  ;;  %v1642_v25 = vld [vmem:[#allocation3 + $0x10] sm:$0xff] }
  0xf3   : > { %v1376_v24 = vpop.permute.xlu0 %1375  ;;  %1627 = vst.msk [vmem:[#allocation3 + $0x18] sm:$0xff] %vm1623_vm2, %v1582_v22  ;;  %2284 = vmatprep.mubr.msk.f32.mxu0 %vm1665_vm3, %v1642_v25 }
  0xf4   : > { %1420 = vst.msk [vmem:[#allocation3 + $0x20] sm:$0xff] %vm1415_vm7, %v1376_v24  ;;  %1321 = vrot.lane.b32.xlu1 %v1050_v21, %s2427_s16 }
  0xf5   : > { %1252 = vrot.lane.b32.xlu0 %v3025_v5, %s2423_s25  ;;  %v1158_v5 = vsel %vm1118_vm4, %v1155_v20, %v1157_v30 }
  0xf6   : > { %v1172_v28 = vpop.permute.xlu1 %1171 }
  0xf7   : > { %v1068_v29 = vpop.permute.xlu0 %1067  ;;  %1214 = vst.msk [vmem:[#allocation3 + $0x30] sm:$0xff] %vm1207_vm10, %v1172_v28 }
  0xf8   : > { %1109 = vst.msk [vmem:[#allocation3 + $0x38] sm:$0xff] %vm1101_vm1, %v1068_v29  ;;  %1595 = vrot.lane.b32.xlu1 %v1156_v19, %s2430_s24 }
  0xf9   : > { %1527 = vrot.lane.b32.xlu0 %v1052_v63, %s2429_s17 }
  0xfa   : > { %v1443_v32 = vpop.permute.xlu1 %1442  ;;  %v1643_v56 = vld [vmem:[#allocation3 + $0x18] sm:$0xff] }
  0xfb   : > { %v1378_v16 = vpop.permute.xlu0 %1377  ;;  %1487 = vst.msk [vmem:[#allocation3 + $0x20] sm:$0xff] %vm1482_vm14, %v1443_v32  ;;  %2285 = vmatmul.mubr.msk.f32.gmra.mrb[2].mxu0 %vm1665_vm3, %v1643_v56 }
  0xfc   : > { %1421 = vst.msk [vmem:[#allocation3 + $0x28] sm:$0xff] %vm1415_vm7, %v1378_v16  ;;  %1323 = vrot.lane.b32.xlu1 %v1052_v63, %s2427_s16 }
  0xfd   : > { %1081 = vrot.lane.b32.xlu0 %v1050_v21, %s2426_s15  ;;  %v1573_v21 = vrot.slane %v971_v4, 2 }
  0xfe   : > { %v1239_v33 = vpop.permute.xlu1 %1238 }
  0xff   : > { %v1174_v34 = vpop.permute.xlu0 %1173  ;;  %1281 = vst.msk [vmem:[#allocation3 + $0x30] sm:$0xff] %vm1274_vm13, %v1239_v33  ;;  %v1574_v15 = vsel %vm1118_vm4, %v1571_v23, %v1573_v21  ;;  %vm1912_vm4 = vcmask 57344  }
 0x100   : > { %1215 = vst.msk [vmem:[#allocation3 + $0x38] sm:$0xff] %vm1207_vm10, %v1174_v34  ;;  %1597 = vrot.lane.b32.xlu1 %v1158_v5, %s2430_s24 }
 0x101   : > { %1391 = vrot.lane.b32.xlu0 %v1156_v19, %s3539_s13 }
 0x102   : > { %v1514_v35 = vpop.permute.xlu1 %1513 }
 0x103   : > { %v1445_v58 = vpop.permute.xlu0 %1444  ;;  %1558 = vst.msk [vmem:[#allocation3 + $0x20] sm:$0xff] %vm1553_vm15, %v1514_v35 }
 0x104   : > { %1488 = vst.msk [vmem:[#allocation3 + $0x28] sm:$0xff] %vm1482_vm14, %v1445_v58  ;;  %1187 = vrot.lane.b32.xlu1 %v1156_v19, %s3540_s12 }
 0x105   : > { %1083 = vrot.lane.b32.xlu0 %v1052_v63, %s2426_s15 }
 0x106   : > { %v1310_v50 = vpop.permute.xlu1 %1309 }
 0x107   : > { %v1241_v54 = vpop.permute.xlu0 %1240  ;;  %1352 = vst.msk [vmem:[#allocation3 + $0x30] sm:$0xff] %vm1345_vm12, %v1310_v50 }
 0x108   : > { %1282 = vst.msk [vmem:[#allocation3 + $0x38] sm:$0xff] %vm1274_vm13, %v1241_v54  ;;  %1458 = vrot.lane.b32.xlu1 %v966_v37, %s2424_s26 }
 0x109   : > { %1393 = vrot.lane.b32.xlu0 %v1158_v5, %s3539_s13 }
 0x10a   : > { %v1584_v40 = vpop.permute.xlu1 %1583 }
 0x10b   : > { %v1516_v41 = vpop.permute.xlu0 %1515  ;;  %1628 = vst.msk [vmem:[#allocation3 + $0x20] sm:$0xff] %vm1623_vm2, %v1584_v40 }
 0x10c   : > { %1559 = vst.msk [vmem:[#allocation3 + $0x28] sm:$0xff] %vm1553_vm15, %v1516_v41  ;;  %1254 = vrot.lane.b32.xlu1 %v966_v37, %s2423_s25 }
 0x10d   : > { %1189 = vrot.lane.b32.xlu0 %v1158_v5, %s3540_s12 }
 0x10e   : > { %v1312_v45 = vpop.permute.xlu1 %1311 }
 0x10f   : > { %v1070_v46 = vpop.permute.xlu0 %1069  ;;  %1353 = vst.msk [vmem:[#allocation3 + $0x38] sm:$0xff] %vm1345_vm12, %v1312_v45 }
 0x110   : > { %1110 = vst.msk [vmem:[#allocation3 + $0x40] sm:$0xff] %vm1101_vm1, %v1070_v46  ;;  %1529 = vrot.lane.b32.xlu1 %v1294_v44, %s2429_s17 }
 0x111   : > { %1460 = vrot.lane.b32.xlu0 %v967_v26, %s2424_s26 }
 0x112   : > { %v1586_v53 = vpop.permute.xlu1 %1585  ;;  %v1644_v57 = vld [vmem:[#allocation3 + $0x20] sm:$0xff] }
 0x113   : > { %v1380_v55 = vpop.permute.xlu0 %1379  ;;  %1629 = vst.msk [vmem:[#allocation3 + $0x28] sm:$0xff] %vm1623_vm2, %v1586_v53  ;;  %2287 = vmatprep.mubr.msk.f32.mxu0 %vm1665_vm3, %v1644_v57 }
 0x114   : > { %1422 = vst.msk [vmem:[#allocation3 + $0x30] sm:$0xff] %vm1415_vm7, %v1380_v55  ;;  %1325 = vrot.lane.b32.xlu1 %v1294_v44, %s2427_s16 }
 0x115   : > { %1256 = vrot.lane.b32.xlu0 %v967_v26, %s2423_s25  ;;  %s2201_s25 = sshll.u32 %s3552_s28, 5 }
 0x116   : > { %v1176_v59 = vpop.permute.xlu1 %1175 }
 0x117   : > { %v1072_v60 = vpop.permute.xlu0 %1071  ;;  %1216 = vst.msk [vmem:[#allocation3 + $0x40] sm:$0xff] %vm1207_vm10, %v1176_v59 }
 0x118   : > { %1111 = vst.msk [vmem:[#allocation3 + $0x48] sm:$0xff] %vm1101_vm1, %v1072_v60  ;;  %1599 = vrot.lane.b32.xlu1 %v1364_v48, %s2430_s24 }
 0x119   : > { %1531 = vrot.lane.b32.xlu0 %v1296_v49, %s2429_s17 }
 0x11a   : > { %v1447_v31 = vpop.permute.xlu1 %1446  ;;  %v1645_v62 = vld [vmem:[#allocation3 + $0x28] sm:$0xff] }
 0x11b   : > { %v1382_v42 = vpop.permute.xlu0 %1381  ;;  %1489 = vst.msk [vmem:[#allocation3 + $0x30] sm:$0xff] %vm1482_vm14, %v1447_v31  ;;  %2288 = vmatmul.mubr.msk.f32.gmra.mrb[4].mxu0 %vm1665_vm3, %v1645_v62 }
 0x11c   : > { %1423 = vst.msk [vmem:[#allocation3 + $0x38] sm:$0xff] %vm1415_vm7, %v1382_v42  ;;  %1395 = vrot.lane.b32.xlu1 %v1364_v48, %s3539_s13 }
 0x11d   : > { %1327 = vrot.lane.b32.xlu0 %v1296_v49, %s2427_s16 }
 0x11e   : > { %v1243_v2 = vpop.permute.xlu1 %1242 }
 0x11f   : > { %v1178_v43 = vpop.permute.xlu0 %1177  ;;  %1283 = vst.msk [vmem:[#allocation3 + $0x40] sm:$0xff] %vm1274_vm13, %v1243_v2 }
 0x120   : > { %1217 = vst.msk [vmem:[#allocation3 + $0x48] sm:$0xff] %vm1207_vm10, %v1178_v43  ;;  %1397 = vrot.lane.b32.xlu1 %v1366_v1, %s3539_s13  ;;  %s2203_s13 = sshll.u32 %s3552_s28, 1 }
 0x121   : > { %1601 = vrot.lane.b32.xlu0 %v1366_v1, %s2430_s24  ;;  %s504_s12 = sadd.s32 %s2203_s13, %s3558_s27 }
 0x122   : > { %v1518_v8 = vpop.permute.xlu1 %1517  ;;  %s505_s23 = scalar_lea.vmem %s3495_s7, %s504_s12  ;;  %s512_s22 = scalar_lea.vmem %s3496_s8, %s504_s12 }
 0x123   : > { %v1449_v18 = vpop.permute.xlu0 %1448  ;;  %1560 = vst.msk [vmem:[#allocation3 + $0x30] sm:$0xff] %vm1553_vm15, %v1518_v8 }
 0x124   : > { %1490 = vst.msk [vmem:[#allocation3 + $0x38] sm:$0xff] %vm1482_vm14, %v1449_v18  ;;  %1464 = vrot.lane.b32.xlu1 %v970_v36, %s2424_s26 }
 0x125   : > { %1462 = vrot.lane.b32.xlu0 %v969_v3, %s2424_s26  ;;  %s495_s26 = sadd.s32 %s2201_s25, %s3556_s14 }
 0x126   : > { %v1314_v11 = vpop.permute.xlu1 %1313  ;;  %s2202_s15 = sshll.u32 %s495_s26, 3 }
 0x127   : > { %v1245_v13 = vpop.permute.xlu0 %1244  ;;  %1354 = vst.msk [vmem:[#allocation3 + $0x40] sm:$0xff] %vm1345_vm12, %v1314_v11 }
 0x128   : > { %1284 = vst.msk [vmem:[#allocation3 + $0x48] sm:$0xff] %vm1274_vm13, %v1245_v13  ;;  %1535 = vrot.lane.b32.xlu1 %v1504_v10, %s2429_s17 }
 0x129   : > { %1533 = vrot.lane.b32.xlu0 %v1502_v12, %s2429_s17 }
 0x12a   : > { %v1588_v20 = vpop.permute.xlu1 %1587 }
 0x12b   : > { %v1520_v17 = vpop.permute.xlu0 %1519  ;;  %1630 = vst.msk [vmem:[#allocation3 + $0x30] sm:$0xff] %vm1623_vm2, %v1588_v20 }
 0x12c   : > { %1561 = vst.msk [vmem:[#allocation3 + $0x38] sm:$0xff] %vm1553_vm15, %v1520_v17  ;;  %1605 = vrot.lane.b32.xlu1 %v1574_v15, %s2430_s24 }
 0x12d   : > { %1603 = vrot.lane.b32.xlu0 %v1572_v14, %s2430_s24  ;;  %s3398_s24 = scalar_lea.vmem %s3494_s6, %s2202_s15 }
 0x12e   : > { %v1316_v22 = vpop.permute.xlu1 %1315 }
 0x12f   : > { %v1074_v24 = vpop.permute.xlu0 %1073  ;;  %1355 = vst.msk [vmem:[#allocation3 + $0x48] sm:$0xff] %vm1345_vm12, %v1316_v22 }
 0x130   : > { %1112 = vst.msk [vmem:[#allocation3 + $0x50] sm:$0xff] %vm1101_vm1, %v1074_v24 }
 0x132   : > { %v1590_v25 = vpop.permute.xlu1 %1589  ;;  %v1646_v63 = vld [vmem:[#allocation3 + $0x30] sm:$0xff] }
 0x133   : > { %v1384_v19 = vpop.permute.xlu0 %1383  ;;  %1631 = vst.msk [vmem:[#allocation3 + $0x38] sm:$0xff] %vm1623_vm2, %v1590_v25  ;;  %2290 = vmatprep.mubr.msk.f32.mxu0 %vm1665_vm3, %v1646_v63 }
 0x134   : > { %1424 = vst.msk [vmem:[#allocation3 + $0x40] sm:$0xff] %vm1415_vm7, %v1384_v19 }
 0x136   : > { %v1180_v28 = vpop.permute.xlu1 %1179 }
 0x137   : > { %v1076_v29 = vpop.permute.xlu0 %1075  ;;  %1218 = vst.msk [vmem:[#allocation3 + $0x50] sm:$0xff] %vm1207_vm10, %v1180_v28 }
 0x138   : > { %1113 = vst.msk [vmem:[#allocation3 + $0x58] sm:$0xff] %vm1101_vm1, %v1076_v29 }
 0x13a   : > { %v1451_v30 = vpop.permute.xlu1 %1450  ;;  %v1647_v16 = vld [vmem:[#allocation3 + $0x38] sm:$0xff] }
 0x13b   : > { %v1386_v32 = vpop.permute.xlu0 %1385  ;;  %1491 = vst.msk [vmem:[#allocation3 + $0x40] sm:$0xff] %vm1482_vm14, %v1451_v30  ;;  %2291 = vmatmul.mubr.msk.f32.gmra.mrb[6].mxu0 %vm1665_vm3, %v1647_v16 }
 0x13c   : > { %1425 = vst.msk [vmem:[#allocation3 + $0x48] sm:$0xff] %vm1415_vm7, %v1386_v32 }
 0x13e   : > { %v1247_v56 = vpop.permute.xlu1 %1246 }
 0x13f   : > { %v1182_v5 = vpop.permute.xlu0 %1181  ;;  %1285 = vst.msk [vmem:[#allocation3 + $0x50] sm:$0xff] %vm1274_vm13, %v1247_v56 }
 0x140   : > { %1219 = vst.msk [vmem:[#allocation3 + $0x58] sm:$0xff] %vm1207_vm10, %v1182_v5 }
 0x142   : > { %v1522_v33 = vpop.permute.xlu1 %1521 }
 0x143   : > { %v1453_v34 = vpop.permute.xlu0 %1452  ;;  %1562 = vst.msk [vmem:[#allocation3 + $0x40] sm:$0xff] %vm1553_vm15, %v1522_v33 }
 0x144   : > { %1492 = vst.msk [vmem:[#allocation3 + $0x48] sm:$0xff] %vm1482_vm14, %v1453_v34 }
 0x146   : > { %v1318_v35 = vpop.permute.xlu1 %1317 }
 0x147   : > { %v1249_v58 = vpop.permute.xlu0 %1248  ;;  %1356 = vst.msk [vmem:[#allocation3 + $0x50] sm:$0xff] %vm1345_vm12, %v1318_v35 }
 0x148   : > { %1286 = vst.msk [vmem:[#allocation3 + $0x58] sm:$0xff] %vm1274_vm13, %v1249_v58 }
 0x14a   : > { %v1592_v37 = vpop.permute.xlu1 %1591 }
 0x14b   : > { %v1524_v50 = vpop.permute.xlu0 %1523  ;;  %1632 = vst.msk [vmem:[#allocation3 + $0x40] sm:$0xff] %vm1623_vm2, %v1592_v37 }
 0x14c   : > { %1563 = vst.msk [vmem:[#allocation3 + $0x48] sm:$0xff] %vm1553_vm15, %v1524_v50 }
 0x14e   : > { %v1320_v54 = vpop.permute.xlu1 %1319 }
 0x14f   : > { %v1078_v26 = vpop.permute.xlu0 %1077  ;;  %1357 = vst.msk [vmem:[#allocation3 + $0x58] sm:$0xff] %vm1345_vm12, %v1320_v54 }
 0x150   : > { %1114 = vst.msk [vmem:[#allocation3 + $0x60] sm:$0xff] %vm1101_vm1, %v1078_v26 }
 0x152   : > { %v1594_v38 = vpop.permute.xlu1 %1593  ;;  %v1648_v40 = vld [vmem:[#allocation3 + $0x40] sm:$0xff] }
 0x153   : > { %v1388_v39 = vpop.permute.xlu0 %1387  ;;  %1633 = vst.msk [vmem:[#allocation3 + $0x48] sm:$0xff] %vm1623_vm2, %v1594_v38  ;;  %2293 = vmatprep.mubr.msk.f32.mxu1 %vm1665_vm3, %v1648_v40 }
 0x154   : > { %1426 = vst.msk [vmem:[#allocation3 + $0x50] sm:$0xff] %vm1415_vm7, %v1388_v39 }
 0x156   : > { %v1184_v41 = vpop.permute.xlu1 %1183 }
 0x157   : > { %v1080_v44 = vpop.permute.xlu0 %1079  ;;  %1220 = vst.msk [vmem:[#allocation3 + $0x60] sm:$0xff] %vm1207_vm10, %v1184_v41 }
 0x158   : > { %1115 = vst.msk [vmem:[#allocation3 + $0x68] sm:$0xff] %vm1101_vm1, %v1080_v44 }
 0x15a   : > { %v1455_v45 = vpop.permute.xlu1 %1454  ;;  %v1649_v47 = vld [vmem:[#allocation3 + $0x48] sm:$0xff] }
 0x15b   : > { %v1390_v46 = vpop.permute.xlu0 %1389  ;;  %1493 = vst.msk [vmem:[#allocation3 + $0x50] sm:$0xff] %vm1482_vm14, %v1455_v45  ;;  %2294 = vmatmul.mubr.msk.f32.vlgmr.msra.gmra.mrb[0].mxu1 %vm1665_vm3, %v1649_v47 }
 0x15c   : > { %1427 = vst.msk [vmem:[#allocation3 + $0x58] sm:$0xff] %vm1415_vm7, %v1390_v46 }
 0x15e   : > { %v1251_v27 = vpop.permute.xlu1 %1250 }
 0x15f   : > { %v1186_v51 = vpop.permute.xlu0 %1185  ;;  %1287 = vst.msk [vmem:[#allocation3 + $0x60] sm:$0xff] %vm1274_vm13, %v1251_v27 }
 0x160   : > { %1221 = vst.msk [vmem:[#allocation3 + $0x68] sm:$0xff] %vm1207_vm10, %v1186_v51 }
 0x162   : > { %v1526_v52 = vpop.permute.xlu1 %1525 }
 0x163   : > { %v1457_v53 = vpop.permute.xlu0 %1456  ;;  %1564 = vst.msk [vmem:[#allocation3 + $0x50] sm:$0xff] %vm1553_vm15, %v1526_v52 }
 0x164   : > { %1494 = vst.msk [vmem:[#allocation3 + $0x58] sm:$0xff] %vm1482_vm14, %v1457_v53 }
 0x166   : > { %v1322_v55 = vpop.permute.xlu1 %1321 }
 0x167   : > { %v1253_v57 = vpop.permute.xlu0 %1252  ;;  %1358 = vst.msk [vmem:[#allocation3 + $0x60] sm:$0xff] %vm1345_vm12, %v1322_v55 }
 0x168   : > { %1288 = vst.msk [vmem:[#allocation3 + $0x68] sm:$0xff] %vm1274_vm13, %v1253_v57 }
 0x16a   : > { %v1596_v49 = vpop.permute.xlu1 %1595 }
 0x16b   : > { %v1528_v48 = vpop.permute.xlu0 %1527  ;;  %1634 = vst.msk [vmem:[#allocation3 + $0x50] sm:$0xff] %vm1623_vm2, %v1596_v49 }
 0x16c   : > { %1565 = vst.msk [vmem:[#allocation3 + $0x58] sm:$0xff] %vm1553_vm15, %v1528_v48 }
 0x16e   : > { %v1324_v59 = vpop.permute.xlu1 %1323 }
 0x16f   : > { %v1082_v60 = vpop.permute.xlu0 %1081  ;;  %1359 = vst.msk [vmem:[#allocation3 + $0x68] sm:$0xff] %vm1345_vm12, %v1324_v59 }
 0x170   : > { %1116 = vst.msk [vmem:[#allocation3 + $0x70] sm:$0xff] %vm1101_vm1, %v1082_v60 }
 0x172   : > { %v1598_v61 = vpop.permute.xlu1 %1597  ;;  %v1650_v42 = vld [vmem:[#allocation3 + $0x50] sm:$0xff] }
 0x173   : > { %v1392_v31 = vpop.permute.xlu0 %1391  ;;  %1635 = vst.msk [vmem:[#allocation3 + $0x58] sm:$0xff] %vm1623_vm2, %v1598_v61  ;;  %2296 = vmatprep.mubr.msk.f32.mxu1 %vm1665_vm3, %v1650_v42 }
 0x174   : > { %1428 = vst.msk [vmem:[#allocation3 + $0x60] sm:$0xff] %vm1415_vm7, %v1392_v31 }
 0x176   : > { %v1188_v1 = vpop.permute.xlu1 %1187 }
 0x177   : > { %v1084_v62 = vpop.permute.xlu0 %1083  ;;  %1222 = vst.msk [vmem:[#allocation3 + $0x70] sm:$0xff] %vm1207_vm10, %v1188_v1 }
 0x178   : > { %1117 = vst.msk [vmem:[#allocation3 + $0x78] sm:$0xff] %vm1101_vm1, %v1084_v62 }
 0x17a   : > { %v1459_v43 = vpop.permute.xlu1 %1458  ;;  %v1651_v3 = vld [vmem:[#allocation3 + $0x58] sm:$0xff] }
 0x17b   : > { %v1394_v2 = vpop.permute.xlu0 %1393  ;;  %1495 = vst.msk [vmem:[#allocation3 + $0x60] sm:$0xff] %vm1482_vm14, %v1459_v43  ;;  %2297 = vmatmul.mubr.msk.f32.gmra.mrb[2].mxu1 %vm1665_vm3, %v1651_v3 }
 0x17c   : > { %1429 = vst.msk [vmem:[#allocation3 + $0x68] sm:$0xff] %vm1415_vm7, %v1394_v2 }
 0x17e   : > { %v1255_v4 = vpop.permute.xlu1 %1254 }
 0x17f   : > { %v1190_v36 = vpop.permute.xlu0 %1189  ;;  %1289 = vst.msk [vmem:[#allocation3 + $0x70] sm:$0xff] %vm1274_vm13, %v1255_v4 }
 0x180   : > { %1223 = vst.msk [vmem:[#allocation3 + $0x78] sm:$0xff] %vm1207_vm10, %v1190_v36 }
 0x182   : > { %v1530_v6 = vpop.permute.xlu1 %1529 }
 0x183   : > { %v1461_v0 = vpop.permute.xlu0 %1460  ;;  %1566 = vst.msk [vmem:[#allocation3 + $0x60] sm:$0xff] %vm1553_vm15, %v1530_v6 }
 0x184   : > { %1496 = vst.msk [vmem:[#allocation3 + $0x68] sm:$0xff] %vm1482_vm14, %v1461_v0 }
 0x186   : > { %v1326_v8 = vpop.permute.xlu1 %1325 }
 0x187   : > { %v1257_v7 = vpop.permute.xlu0 %1256  ;;  %1360 = vst.msk [vmem:[#allocation3 + $0x70] sm:$0xff] %vm1345_vm12, %v1326_v8 }
 0x188   : > { %1290 = vst.msk [vmem:[#allocation3 + $0x78] sm:$0xff] %vm1274_vm13, %v1257_v7 }
 0x18a   : > { %v1600_v9 = vpop.permute.xlu1 %1599 }
 0x18b   : > { %v1532_v18 = vpop.permute.xlu0 %1531  ;;  %1636 = vst.msk [vmem:[#allocation3 + $0x60] sm:$0xff] %vm1623_vm2, %v1600_v9 }
 0x18c   : > { %1567 = vst.msk [vmem:[#allocation3 + $0x68] sm:$0xff] %vm1553_vm15, %v1532_v18 }
 0x18e   : > { %v1396_v12 = vpop.permute.xlu1 %1395 }
 0x18f   : > { %v1328_v23 = vpop.permute.xlu0 %1327  ;;  %1430 = vst.msk [vmem:[#allocation3 + $0x70] sm:$0xff] %vm1415_vm7, %v1396_v12 }
 0x190   : > { %1361 = vst.msk [vmem:[#allocation3 + $0x78] sm:$0xff] %vm1345_vm12, %v1328_v23 }
 0x192   : > { %v1398_v21 = vpop.permute.xlu1 %1397  ;;  %v1652_v11 = vld [vmem:[#allocation3 + $0x60] sm:$0xff] }
 0x193   : > { %v1602_v10 = vpop.permute.xlu0 %1601  ;;  %1431 = vst.msk [vmem:[#allocation3 + $0x78] sm:$0xff] %vm1415_vm7, %v1398_v21  ;;  %2299 = vmatprep.mubr.msk.f32.mxu1 %vm1665_vm3, %v1652_v11 }
 0x194   : > { %1637 = vst.msk [vmem:[#allocation3 + $0x68] sm:$0xff] %vm1623_vm2, %v1602_v10 }
 0x196   : > { %v1465_v14 = vpop.permute.xlu1 %1464 }
 0x197   : > { %v1463_v13 = vpop.permute.xlu0 %1462  ;;  %1498 = vst.msk [vmem:[#allocation3 + $0x78] sm:$0xff] %vm1482_vm14, %v1465_v14 }
 0x198   : > { %1497 = vst.msk [vmem:[#allocation3 + $0x70] sm:$0xff] %vm1482_vm14, %v1463_v13 }
 0x19a   : > { %v1536_v20 = vpop.permute.xlu1 %1535 }
 0x19b   : > { %v1534_v15 = vpop.permute.xlu0 %1533  ;;  %v1653_v17 = vld [vmem:[#allocation3 + $0x68] sm:$0xff]  ;;  %1569 = vst.msk [vmem:[#allocation3 + $0x78] sm:$0xff] %vm1553_vm15, %v1536_v20 }
 0x19c   : > { %1568 = vst.msk [vmem:[#allocation3 + $0x70] sm:$0xff] %vm1553_vm15, %v1534_v15  ;;  %2300 = vmatmul.mubr.msk.f32.gmra.mrb[4].mxu1 %vm1665_vm3, %v1653_v17 }
 0x19e   : > { %v1606_v24 = vpop.permute.xlu1 %1605 }
 0x19f   : > { %v1604_v22 = vpop.permute.xlu0 %1603  ;;  %1639 = vst.msk [vmem:[#allocation3 + $0x78] sm:$0xff] %vm1623_vm2, %v1606_v24 }
 0x1a0   : > { %1638 = vst.msk [vmem:[#allocation3 + $0x70] sm:$0xff] %vm1623_vm2, %v1604_v22 }
 0x1a6   : > { %v1655_v19 = vld [vmem:[#allocation3 + $0x78] sm:$0xff] }
 0x1a7   : > { %v1654_v25 = vld [vmem:[#allocation3 + $0x70] sm:$0xff] }
 0x1a8   : > { %2302 = vmatprep.mubr.msk.f32.mxu1 %vm1665_vm3, %v1654_v25 }
 0x1a9   : > { %2303 = vmatmul.mubr.msk.f32.gmra.mrb[6].mxu1 %vm1665_vm3, %v1655_v19 }
 0x1ae   : > { %v2283_v63 = vpop.f32.mrb[0].mxu0 }
 0x1af   : > { %1860 = vst.msk [vmem:[%s3398_s24 + $0x8] sm:$0xff] %vm537_vm0, %v2283_v63  ;;  %v1876_v28 = vsel %vm537_vm0, %v2283_v63, 0.0  ;;  %v1915_v29 = vmul.f32 %v2283_v63, %v2283_v63  ;;  %v1780_v30 = vpop.f32.mrb[1].mxu0 }
 0x1b0   : > { %1859 = vst.msk [vmem:[%s3398_s24] sm:$0xff] %vm537_vm0, %v1780_v30  ;;  %v1875_v32 = vsel %vm537_vm0, %v1780_v30, 0.0  ;;  %v1914_v16 = vmul.f32 %v1780_v30, %v1780_v30 }
 0x1b1   : > { %v1931_v56 = vsel %vm537_vm0, %v1915_v29, 0.0  ;;  %v1877_v5 = vadd.f32 %v1876_v28, %v1875_v32 }
 0x1b2   : > { %v1930_v33 = vsel %vm537_vm0, %v1914_v16, 0.0 }
 0x1b3   : > { %v1932_v34 = vadd.f32 %v1931_v56, %v1930_v33 }
 0x1ce   : > { %v2286_v35 = vpop.f32.mrb[2].mxu0 }
 0x1cf   : > { %1862 = vst.msk [vmem:[%s3398_s24 + $0x18] sm:$0xff] %vm537_vm0, %v2286_v35  ;;  %v1790_v58 = vpop.f32.mrb[3].mxu0  ;;  %v1917_v37 = vmul.f32 %v2286_v35, %v2286_v35  ;;  %v1880_v38 = vsel %vm537_vm0, %v2286_v35, 0.0 }
 0x1d0   : > { %1861 = vst.msk [vmem:[%s3398_s24 + $0x10] sm:$0xff] %vm537_vm0, %v1790_v58  ;;  %v1878_v50 = vsel %vm537_vm0, %v1790_v58, 0.0  ;;  %v1916_v54 = vmul.f32 %v1790_v58, %v1790_v58 }
 0x1d1   : > { %v1879_v26 = vadd.f32 %v1878_v50, %v1877_v5  ;;  %v1935_v44 = vsel %vm537_vm0, %v1917_v37, 0.0 }
 0x1d2   : > { %v1933_v39 = vsel %vm537_vm0, %v1916_v54, 0.0 }
 0x1d3   : > { %v1934_v40 = vadd.f32 %v1933_v39, %v1932_v34  ;;  %v1881_v41 = vadd.f32 %v1880_v38, %v1879_v26 }
 0x1d5   : > { %v1936_v45 = vadd.f32 %v1935_v44, %v1934_v40 }
 0x1ee   : > { %v2289_v46 = vpop.f32.mrb[4].mxu0 }
 0x1ef   : > { %1864 = vst.msk [vmem:[%s3398_s24 + $0x28] sm:$0xff] %vm537_vm0, %v2289_v46  ;;  %v1800_v47 = vpop.f32.mrb[5].mxu0  ;;  %v1919_v27 = vmul.f32 %v2289_v46, %v2289_v46  ;;  %v1884_v55 = vsel %vm537_vm0, %v2289_v46, 0.0 }
 0x1f0   : > { %1863 = vst.msk [vmem:[%s3398_s24 + $0x20] sm:$0xff] %vm537_vm0, %v1800_v47  ;;  %v1882_v51 = vsel %vm537_vm0, %v1800_v47, 0.0  ;;  %v1918_v52 = vmul.f32 %v1800_v47, %v1800_v47 }
 0x1f1   : > { %v1883_v53 = vadd.f32 %v1882_v51, %v1881_v41  ;;  %v1939_v59 = vsel %vm537_vm0, %v1919_v27, 0.0 }
 0x1f2   : > { %v1937_v57 = vsel %vm537_vm0, %v1918_v52, 0.0 }
 0x1f3   : > { %v1938_v49 = vadd.f32 %v1937_v57, %v1936_v45  ;;  %v1885_v48 = vadd.f32 %v1884_v55, %v1883_v53 }
 0x1f5   : > { %v1940_v60 = vadd.f32 %v1939_v59, %v1938_v49 }
 0x20e   : > { %v2292_v61 = vpop.f32.mrb[6].mxu0 }
 0x20f   : > { %1866 = vst.msk [vmem:[%s3398_s24 + $0x38] sm:$0xff] %vm537_vm0, %v2292_v61  ;;  %v1810_v31 = vpop.f32.mrb[7].mxu0  ;;  %v1921_v42 = vmul.f32 %v2292_v61, %v2292_v61  ;;  %v1888_v43 = vsel %vm537_vm0, %v2292_v61, 0.0 }
 0x210   : > { %1865 = vst.msk [vmem:[%s3398_s24 + $0x30] sm:$0xff] %vm537_vm0, %v1810_v31  ;;  %v1886_v62 = vsel %vm537_vm0, %v1810_v31, 0.0  ;;  %v1920_v1 = vmul.f32 %v1810_v31, %v1810_v31 }
 0x211   : > { %v1887_v2 = vadd.f32 %v1886_v62, %v1885_v48  ;;  %v1943_v0 = vsel %vm537_vm0, %v1921_v42, 0.0 }
 0x212   : > { %v1941_v3 = vsel %vm537_vm0, %v1920_v1, 0.0 }
 0x213   : > { %v1889_v36 = vadd.f32 %v1888_v43, %v1887_v2  ;;  %v1942_v4 = vadd.f32 %v1941_v3, %v1940_v60 }
 0x215   : > { %v1944_v6 = vadd.f32 %v1943_v0, %v1942_v4 }
 0x22e   : > { %v2295_v7 = vpop.f32.mrb[0].mxu1 }
 0x22f   : > { %1868 = vst.msk [vmem:[%s3398_s24 + $0x48] sm:$0xff] %vm537_vm0, %v2295_v7  ;;  %v1820_v8 = vpop.f32.mrb[1].mxu1  ;;  %v1923_v18 = vmul.f32 %v2295_v7, %v2295_v7  ;;  %v1892_v10 = vsel %vm537_vm0, %v2295_v7, 0.0 }
 0x230   : > { %1867 = vst.msk [vmem:[%s3398_s24 + $0x40] sm:$0xff] %vm537_vm0, %v1820_v8  ;;  %v1890_v9 = vsel %vm537_vm0, %v1820_v8, 0.0  ;;  %v1922_v23 = vmul.f32 %v1820_v8, %v1820_v8 }
 0x231   : > { %v1891_v12 = vadd.f32 %v1890_v9, %v1889_v36  ;;  %v1947_v14 = vsel %vm537_vm0, %v1923_v18, 0.0 }
 0x232   : > { %v1945_v21 = vsel %vm537_vm0, %v1922_v23, 0.0 }
 0x233   : > { %v1946_v11 = vadd.f32 %v1945_v21, %v1944_v6  ;;  %v1893_v13 = vadd.f32 %v1892_v10, %v1891_v12 }
 0x235   : > { %v1948_v15 = vadd.f32 %v1947_v14, %v1946_v11 }
 0x24e   : > { %v2298_v20 = vpop.f32.mrb[2].mxu1 }
 0x24f   : > { %1870 = vst.msk [vmem:[%s3398_s24 + $0x58] sm:$0xff] %vm537_vm0, %v2298_v20  ;;  %v1830_v17 = vpop.f32.mrb[3].mxu1  ;;  %v1925_v22 = vmul.f32 %v2298_v20, %v2298_v20  ;;  %v1896_v63 = vsel %vm537_vm0, %v2298_v20, 0.0 }
 0x250   : > { %1869 = vst.msk [vmem:[%s3398_s24 + $0x50] sm:$0xff] %vm537_vm0, %v1830_v17  ;;  %v1894_v24 = vsel %vm537_vm0, %v1830_v17, 0.0  ;;  %v1924_v25 = vmul.f32 %v1830_v17, %v1830_v17 }
 0x251   : > { %v1895_v19 = vadd.f32 %v1894_v24, %v1893_v13  ;;  %v1951_v32 = vsel %vm537_vm0, %v1925_v22, 0.0 }
 0x252   : > { %v1949_v28 = vsel %vm537_vm0, %v1924_v25, 0.0 }
 0x253   : > { %v1950_v29 = vadd.f32 %v1949_v28, %v1948_v15  ;;  %v1897_v30 = vadd.f32 %v1896_v63, %v1895_v19 }
 0x255   : > { %v1952_v16 = vadd.f32 %v1951_v32, %v1950_v29 }
 0x26f   : > { %v2301_v56 = vpop.f32.mrb[4].mxu1 }
 0x270   : > { %1872 = vst.msk [vmem:[%s3398_s24 + $0x68] sm:$0xff] %vm537_vm0, %v2301_v56  ;;  %v1840_v5 = vpop.f32.mrb[5].mxu1  ;;  %v1927_v33 = vmul.f32 %v2301_v56, %v2301_v56  ;;  %v1900_v37 = vsel %vm537_vm0, %v2301_v56, 0.0 }
 0x271   : > { %1871 = vst.msk [vmem:[%s3398_s24 + $0x60] sm:$0xff] %vm537_vm0, %v1840_v5  ;;  %v1898_v34 = vsel %vm537_vm0, %v1840_v5, 0.0  ;;  %v1926_v35 = vmul.f32 %v1840_v5, %v1840_v5 }
 0x272   : > { %v1899_v58 = vadd.f32 %v1898_v34, %v1897_v30  ;;  %v1955_v38 = vsel %vm537_vm0, %v1927_v33, 0.0 }
 0x273   : > { %v1953_v50 = vsel %vm537_vm0, %v1926_v35, 0.0 }
 0x274   : > { %v1954_v54 = vadd.f32 %v1953_v50, %v1952_v16  ;;  %v1901_v26 = vadd.f32 %v1900_v37, %v1899_v58 }
 0x276   : > { %v1956_v39 = vadd.f32 %v1955_v38, %v1954_v54 }
 0x27c   : > { %v2304_v40 = vpop.f32.mrb[6].mxu1 }
 0x27d   : > { %1874 = vst.msk [vmem:[%s3398_s24 + $0x78] sm:$0xff] %vm537_vm0, %v2304_v40  ;;  %v1850_v41 = vpop.f32.mrb[7].mxu1  ;;  %v1929_v44 = vmul.f32 %v2304_v40, %v2304_v40  ;;  %v1904_v27 = vsel %vm537_vm0, %v2304_v40, 0.0 }
 0x27e   : > { %1873 = vst.msk [vmem:[%s3398_s24 + $0x70] sm:$0xff] %vm537_vm0, %v1850_v41  ;;  %v1902_v45 = vsel %vm537_vm0, %v1850_v41, 0.0  ;;  %v1928_v46 = vmul.f32 %v1850_v41, %v1850_v41 }
 0x27f   : > { %v1903_v47 = vadd.f32 %v1902_v45, %v1901_v26  ;;  %v1959_v55 = vsel %vm537_vm0, %v1929_v44, 0.0 }
 0x280   : > { %v1957_v51 = vsel %vm537_vm0, %v1928_v46, 0.0 }
 0x281   : > { %v1905_v52 = vadd.f32 %v1904_v27, %v1903_v47  ;;  %v1958_v53 = vadd.f32 %v1957_v51, %v1956_v39 }
 0x283   : > { %v1906_v57 = vrot.slane %v1905_v52, 4  ;;  %v1960_v49 = vadd.f32 %v1959_v55, %v1958_v53 }
 0x285   : > { %v1907_v48 = vadd.f32 %v1906_v57, %v1905_v52  ;;  %v1961_v59 = vrot.slane %v1960_v49, 4 }
 0x287   : > { %v1908_v60 = vrot.slane %v1907_v48, 2  ;;  %v1962_v61 = vadd.f32 %v1961_v59, %v1960_v49 }
 0x289   : > { %v1909_v31 = vadd.f32 %v1908_v60, %v1907_v48  ;;  %v1963_v42 = vrot.slane %v1962_v61, 2 }
 0x28b   : > { %v1910_v62 = vrot.slane %v1909_v31, 1  ;;  %v1964_v1 = vadd.f32 %v1963_v42, %v1962_v61 }
 0x28d   : > { %v1911_v2 = vadd.f32 %v1910_v62, %v1909_v31  ;;  %v1965_v43 = vrot.slane %v1964_v1, 1 }
 0x28f   : > { %1913 = vst.msk [vmem:[%s505_s23] sm:$0x1] %vm1912_vm4, %v1911_v2  ;;  %v1966_v3 = vadd.f32 %v1965_v43, %v1964_v1 }
 0x291   : > { %1967 = vst.msk [vmem:[%s512_s22] sm:$0x1] %vm1912_vm4, %v1966_v3 }
 0x292 PF: > { %s19_s9 = sadd.s32 1, %s2421_s9   ;;  %s3541_s27 = smov %s2413_s29 }
 0x293   : > { %p16_p11 = scmp.ge.s32.totalorder %s19_s9, 6   ;;  %s3542_s28 = smov %s2417_s30 }
 0x294   : > { %s3543_s29 = smov %s3546_s10  ;;  %s3544_s30 = smov %s3550_s11 }
 0x295   :  { %18 = sbr.rel (!%p16_p11) target bundleno = 3 (0x3), region = 106 }

</bundles_post_ra>
